<compile_context>
chip_gen: v5e
topology: v5e:2x2
jax: 0.10.0
libtpu: 0.0.40
codegen_flags: <defaults>
</compile_context>

<pallas_src>
import jax
import jax.numpy as jnp
from jax.experimental import pallas as pl
from jax.experimental.pallas import tpu as pltpu

NUM_CLASSES = 5           # num_classes argument of the module
C_FEAT = 2048             # ResNet-50 final feature channels
H1_CLS = 512              # classification head hidden dim
H1_SEV = 256              # severity head hidden dim
FUSED_H = H1_CLS + H1_SEV  # 768: fused first-layer width
OUT_PAD = 128             # lane-dense packed output width (cols 0..4 disease, col 5 severity)


def _heads_kernel(pooled_ref, w1_ref, b1_ref, w2_ref, b2_ref, out_ref):
    # pooled_ref: [tile_b, 2048] f32 (exact AdaptiveAvgPool2d result from XLA).
    pooled = pooled_ref[...]

    # Fused first layers of both heads (512 ++ 256 = 768 cols): bf16 weights
    # resident in VMEM, f32 MXU accumulation.  Dropout(0.3) = identity (eval).
    h = jnp.dot(pooled.astype(jnp.bfloat16), w1_ref[...],
                preferred_element_type=jnp.float32) + b1_ref[...]
    h = jnp.maximum(h, 0.0)                                     # ReLU (both heads)

    # Fused zero-padded second layer: cols 0..4 = disease logits, col 5 =
    # severity pre-activation, cols 6..127 = zero padding (discarded in wrapper).
    z = jnp.dot(h.astype(jnp.bfloat16), w2_ref[...],
                preferred_element_type=jnp.float32) + b2_ref[...]
    lane = jax.lax.broadcasted_iota(jnp.int32, z.shape, 1)
    out_ref[...] = jnp.where(lane == NUM_CLASSES, jax.nn.sigmoid(z), z)


def disease_detection_heads(features, params):
    """features: [B, 2048, H, W] (NCHW backbone output). Returns (disease, severity)."""
    B, C, H, W = features.shape
    assert C == C_FEAT

    # AdaptiveAvgPool2d(1) + Flatten as a plain-XLA spatial mean.  In a real
    # pipeline this fuses with the backbone's last op, so the full feature
    # tensor never makes an extra HBM round trip before the Pallas kernel.
    pooled = jnp.mean(features.astype(jnp.float32), axis=(2, 3))   # [B, 2048] f32

    # Pack head parameters (bf16 weights, f32 biases).
    w1 = jnp.concatenate([params["w1c"], params["w1s"]], axis=1).astype(jnp.bfloat16)
    b1 = jnp.concatenate([params["b1c"], params["b1s"]], axis=1).astype(jnp.float32)
    w2 = jnp.zeros((FUSED_H, OUT_PAD), jnp.float32)
    w2 = w2.at[:H1_CLS, :NUM_CLASSES].set(params["w2c"])
    w2 = w2.at[H1_CLS:, NUM_CLASSES].set(params["w2s"][:, 0])
    w2 = w2.astype(jnp.bfloat16)
    b2 = jnp.zeros((1, OUT_PAD), jnp.float32)
    b2 = b2.at[:, :NUM_CLASSES].set(params["b2c"][0])
    b2 = b2.at[:, NUM_CLASSES].set(params["b2s"][0, 0])

    # Batch tiling: per-tile VMEM is tiny (tile_b x 2048 f32 <= 2 MiB at 256),
    # so the only constraints are (8,128) alignment and giving v7x's two
    # TensorCores >= 2 grid steps whenever the batch is big enough.
    if B >= 16:
        tile_b = min(256, max(8, ((B // 2) // 8) * 8))
        b_pad = pl.cdiv(B, tile_b) * tile_b
        if b_pad != B:
            pooled = jnp.pad(pooled, ((0, b_pad - B), (0, 0)))
    else:
        tile_b = B            # block == full array dim (allowed by the (8,128) rule)
        b_pad = B
    grid = (b_pad // tile_b,)

    cost = pl.CostEstimate(
        flops=2 * b_pad * C_FEAT * FUSED_H + 2 * b_pad * FUSED_H * OUT_PAD,
        transcendentals=b_pad * OUT_PAD,
        bytes_accessed=b_pad * C_FEAT * 4 + w1.size * 2 + w2.size * 2
                       + b1.size * 4 + b2.size * 4 + b_pad * OUT_PAD * 4,
    )

    out = pl.pallas_call(
        _heads_kernel,
        out_shape=jax.ShapeDtypeStruct((b_pad, OUT_PAD), jnp.float32),
        grid=grid,
        in_specs=[
            pl.BlockSpec((tile_b, C_FEAT), lambda i: (i, 0)),    # pooled feats: streamed
            pl.BlockSpec((C_FEAT, FUSED_H), lambda i: (0, 0)),   # fused W1: resident
            pl.BlockSpec((1, FUSED_H), lambda i: (0, 0)),        # fused b1: resident
            pl.BlockSpec((FUSED_H, OUT_PAD), lambda i: (0, 0)),  # fused W2: resident
            pl.BlockSpec((1, OUT_PAD), lambda i: (0, 0)),        # fused b2: resident
        ],
        out_specs=pl.BlockSpec((tile_b, OUT_PAD), lambda i: (i, 0)),
        compiler_params=pltpu.CompilerParams(
            dimension_semantics=("parallel",),
            vmem_limit_bytes=32 * 1024 * 1024),
        cost_estimate=cost,
    )(pooled, w1, b1, w2, b2)

    disease = out[:B, :NUM_CLASSES]
    severity = out[:B, NUM_CLASSES:NUM_CLASSES + 1]
    return disease, severity


def _linear_init(key, fan_in, fan_out):
    """PyTorch nn.Linear default init: U(-1/sqrt(fan_in), 1/sqrt(fan_in)).

    Weight is stored transposed ([in, out]) for row-major matmul; bias is [1, out].
    (Anyone loading real torch weights must transpose [out,in] -> [in,out].)
    """
    kw, kb = jax.random.split(key)
    bound = 1.0 / (fan_in ** 0.5)
    w = jax.random.uniform(kw, (fan_in, fan_out), jnp.float32, -bound, bound)
    b = jax.random.uniform(kb, (1, fan_out), jnp.float32, -bound, bound)
    return w, b


def init_params(key):
    k1, k2, k3, k4 = jax.random.split(key, 4)
    w1c, b1c = _linear_init(k1, C_FEAT, H1_CLS)
    w2c, b2c = _linear_init(k2, H1_CLS, NUM_CLASSES)
    w1s, b1s = _linear_init(k3, C_FEAT, H1_SEV)
    w2s, b2s = _linear_init(k4, H1_SEV, 1)
    return dict(w1c=w1c, b1c=b1c, w2c=w2c, b2c=b2c,
                w1s=w1s, b1s=b1s, w2s=w2s, b2s=b2s)


def _reference(features, p):
    """Plain-JAX f32 reference, faithful to the PyTorch module (eval mode)."""
    pooled = jnp.mean(features.reshape(features.shape[0], C_FEAT, -1), axis=-1)
    h = jnp.maximum(pooled @ p["w1c"] + p["b1c"], 0.0)
    dis = h @ p["w2c"] + p["b2c"]
    g = jnp.maximum(pooled @ p["w1s"] + p["b1s"], 0.0)
    sev = jax.nn.sigmoid(g @ p["w2s"] + p["b2s"])
    return dis, sev


if __name__ == "__main__":
    key = jax.random.PRNGKey(0)
    k_feat, k_params = jax.random.split(key)

    # Synthetic ResNet-50 feature map: a 64x64 RGB input (x: [2, 3, 64, 64])
    # gives features of shape [2, 2048, 2, 2] after the stride-32 backbone.
    B, H, W = 2, 2, 2
    features = jax.random.normal(k_feat, (B, C_FEAT, H, W), jnp.float32)
    params = init_params(k_params)

    heads = jax.jit(disease_detection_heads)
    disease_pred, severity_pred = heads(features, params)
    jax.block_until_ready((disease_pred, severity_pred))

    # Sanity check against the f32 reference (kernel uses bf16 weights -> loose tol).
    dis_ref, sev_ref = _reference(features, params)
    assert disease_pred.shape == (B, NUM_CLASSES)
    assert severity_pred.shape == (B, 1)
    assert jnp.allclose(disease_pred, dis_ref, atol=2e-2, rtol=2e-2), (
        float(jnp.max(jnp.abs(disease_pred - dis_ref))))
    assert jnp.allclose(severity_pred, sev_ref, atol=1e-2, rtol=1e-2), (
        float(jnp.max(jnp.abs(severity_pred - sev_ref))))

    print("KERNEL_OK")
</pallas_src>

<mosaic_0001>
module attributes {stable_mosaic.version = 11 : i64} {
  func.func @_heads_kernel(%arg0: i32, %arg1: memref<2x2048xf32, #tpu.memory_space<vmem>>, %arg2: memref<2048x768xbf16, #tpu.memory_space<vmem>>, %arg3: memref<1x768xf32, #tpu.memory_space<vmem>>, %arg4: memref<768x128xbf16, #tpu.memory_space<vmem>>, %arg5: memref<1x128xf32, #tpu.memory_space<vmem>>, %arg6: memref<2x128xf32, #tpu.memory_space<vmem>>) attributes {dimension_semantics = [#tpu.dimension_semantics<parallel>], iteration_bounds = array<i64: 1>, scalar_prefetch = 0 : i64, scratch_operands = 0 : i64, tpu.core_type = #tpu.core_type<tc>, window_params = [{transform_indices = @transform_0, window_bounds = array<i64: 2, 2048>}, {pipeline_mode = #tpu.pipeline_mode<synchronous>, transform_indices = @transform_1, window_bounds = array<i64: 2048, 768>}, {pipeline_mode = #tpu.pipeline_mode<synchronous>, transform_indices = @transform_2, window_bounds = array<i64: 1, 768>}, {pipeline_mode = #tpu.pipeline_mode<synchronous>, transform_indices = @transform_3, window_bounds = array<i64: 768, 128>}, {pipeline_mode = #tpu.pipeline_mode<synchronous>, transform_indices = @transform_4, window_bounds = array<i64: 1, 128>}, {transform_indices = @transform_5, window_bounds = array<i64: 2, 128>}]} {
    %c0 = arith.constant 0 : index
    %c0_0 = arith.constant 0 : index
    %0 = vector.load %arg1[%c0, %c0_0] : memref<2x2048xf32, #tpu.memory_space<vmem>>, vector<2x2048xf32>
    %1 = arith.truncf %0 : vector<2x2048xf32> to vector<2x2048xbf16>
    %c0_1 = arith.constant 0 : index
    %c0_2 = arith.constant 0 : index
    %2 = vector.load %arg2[%c0_1, %c0_2] : memref<2048x768xbf16, #tpu.memory_space<vmem>>, vector<2048x768xbf16>
    %cst = arith.constant dense<0.000000e+00> : vector<2x768xf32>
    %3 = tpu.matmul %1, %2, %cst {dimension_numbers = #tpu.dot_dimension_numbers<[1], [0], [0], [1], [0, 0, 1, 1], [], []>} : vector<2x2048xbf16>, vector<2048x768xbf16>, vector<2x768xf32> -> vector<2x768xf32>
    %c0_3 = arith.constant 0 : index
    %c0_4 = arith.constant 0 : index
    %4 = vector.load %arg3[%c0_3, %c0_4] : memref<1x768xf32, #tpu.memory_space<vmem>>, vector<1x768xf32>
    %5 = vector.broadcast %4 : vector<1x768xf32> to vector<2x768xf32>
    %6 = arith.addf %3, %5 : vector<2x768xf32>
    %cst_5 = arith.constant 0.000000e+00 : f32
    %7 = vector.broadcast %cst_5 : f32 to vector<2x768xf32>
    %8 = arith.maximumf %6, %7 : vector<2x768xf32>
    %9 = arith.truncf %8 : vector<2x768xf32> to vector<2x768xbf16>
    %c0_6 = arith.constant 0 : index
    %c0_7 = arith.constant 0 : index
    %10 = vector.load %arg4[%c0_6, %c0_7] : memref<768x128xbf16, #tpu.memory_space<vmem>>, vector<768x128xbf16>
    %cst_8 = arith.constant dense<0.000000e+00> : vector<2x128xf32>
    %11 = tpu.matmul %9, %10, %cst_8 {dimension_numbers = #tpu.dot_dimension_numbers<[1], [0], [0], [1], [0, 0, 1, 1], [], []>} : vector<2x768xbf16>, vector<768x128xbf16>, vector<2x128xf32> -> vector<2x128xf32>
    %c0_9 = arith.constant 0 : index
    %c0_10 = arith.constant 0 : index
    %12 = vector.load %arg5[%c0_9, %c0_10] : memref<1x128xf32, #tpu.memory_space<vmem>>, vector<1x128xf32>
    %13 = vector.broadcast %12 : vector<1x128xf32> to vector<2x128xf32>
    %14 = arith.addf %11, %13 : vector<2x128xf32>
    %15 = tpu.iota {dimensions = array<i32: 1>} : vector<2x128xi32>
    %c5_i32 = arith.constant 5 : i32
    %16 = vector.broadcast %c5_i32 : i32 to vector<2x128xi32>
    %17 = arith.cmpi eq, %15, %16 : vector<2x128xi32>
    %18 = arith.negf %14 : vector<2x128xf32>
    %19 = math.exp %18 : vector<2x128xf32>
    %cst_11 = arith.constant 1.000000e+00 : f32
    %20 = vector.broadcast %cst_11 : f32 to vector<2x128xf32>
    %21 = arith.addf %20, %19 : vector<2x128xf32>
    %22 = arith.divf %20, %21 : vector<2x128xf32>
    %23 = arith.select %17, %22, %14 : vector<2x128xi1>, vector<2x128xf32>
    %c0_12 = arith.constant 0 : index
    %c0_13 = arith.constant 0 : index
    %24 = vector.load %arg6[%c0_12, %c0_13] : memref<2x128xf32, #tpu.memory_space<vmem>>, vector<2x128xf32>
    tpu.vector_store %arg6[%c0_12, %c0_13], %23 {strides = array<i32>} : memref<2x128xf32, #tpu.memory_space<vmem>>, vector<2x128xf32>,
    return
  }
  func.func @transform_0(%arg0: i32) -> (i32, i32) {
    %c0_i32 = arith.constant 0 : i32
    %c0_i32_0 = arith.constant 0 : i32
    return %arg0, %c0_i32 : i32, i32
  }
  func.func @transform_1(%arg0: i32) -> (i32, i32) {
    %c0_i32 = arith.constant 0 : i32
    %c0_i32_0 = arith.constant 0 : i32
    %c0_i32_1 = arith.constant 0 : i32
    return %c0_i32, %c0_i32_0 : i32, i32
  }
  func.func @transform_2(%arg0: i32) -> (i32, i32) {
    %c0_i32 = arith.constant 0 : i32
    %c0_i32_0 = arith.constant 0 : i32
    %c0_i32_1 = arith.constant 0 : i32
    return %c0_i32, %c0_i32_0 : i32, i32
  }
  func.func @transform_3(%arg0: i32) -> (i32, i32) {
    %c0_i32 = arith.constant 0 : i32
    %c0_i32_0 = arith.constant 0 : i32
    %c0_i32_1 = arith.constant 0 : i32
    return %c0_i32, %c0_i32_0 : i32, i32
  }
  func.func @transform_4(%arg0: i32) -> (i32, i32) {
    %c0_i32 = arith.constant 0 : i32
    %c0_i32_0 = arith.constant 0 : i32
    %c0_i32_1 = arith.constant 0 : i32
    return %c0_i32, %c0_i32_0 : i32, i32
  }
  func.func @transform_5(%arg0: i32) -> (i32, i32) {
    %c0_i32 = arith.constant 0 : i32
    %c0_i32_0 = arith.constant 0 : i32
    return %arg0, %c0_i32 : i32, i32
  }
}

</mosaic_0001>

<bundles_post_ra>
// kernel: disease_detection_heads.1
= control target key start
LH: loop header
LB: loop body
LE: loop exit
PB: predicated region body
PF: predicated region fallthrough
CT: control target
= control target key end

     0   :  { %s15566_s1 = inlined_call_operand.vmem [shape: bf16[2048,768], index: 1, kind: input, shape index: {}]   ;;  %s15567_s0 = inlined_call_operand.vmem [shape: f32[2,2048], index: 0, kind: input, shape index: {}]   ;;  %s15568_s2 = inlined_call_operand.vmem [shape: f32[1,768], index: 2, kind: input, shape index: {}]   ;;  %s15569_s3 = inlined_call_operand.vmem [shape: bf16[768,128], index: 3, kind: input, shape index: {}]   ;;  %s15570_s4 = inlined_call_operand.vmem [shape: f32[1,128], index: 4, kind: input, shape index: {}]   ;;  %s15571_s5 = inlined_call_operand.vmem [shape: f32[2,128], index: 5, kind: output, shape index: {}]  }
   0x1   :  { %v6627_v0 = vld [vmem:[%s15566_s1 + $0x150] sm:$0xf]  ;;  %v9767_v1 = vld [vmem:[%s15566_s1 + $0x164] sm:$0xf0]  ;;  %v6603_v11 = vld [vmem:[%s15566_s1 + $0x120] sm:$0xf] }
   0x2   :  { %v6819_v2 = vld [vmem:[%s15566_s1 + $0x2d0] sm:$0xf]  ;;  %v6628_v3 = vor.u32 %v9767_v1, %v6627_v0  ;;  %v9815_v4 = vld [vmem:[%s15566_s1 + $0x2e4] sm:$0xf0]  ;;  %v9761_v13 = vld [vmem:[%s15566_s1 + $0x134] sm:$0xf0] }
   0x3   :  { %v7011_v5 = vld [vmem:[%s15566_s1 + $0x450] sm:$0xf]  ;;  %v9863_v6 = vld [vmem:[%s15566_s1 + $0x464] sm:$0xf0]  ;;  %v6820_v7 = vor.u32 %v9815_v4, %v6819_v2  ;;  %v6795_v14 = vld [vmem:[%s15566_s1 + $0x2a0] sm:$0xf]  ;;  %v6604_v16 = vor.u32 %v9761_v13, %v6603_v11 }
   0x4   :  { %v7012_v8 = vor.u32 %v9863_v6, %v7011_v5  ;;  %v7203_v9 = vld [vmem:[%s15566_s1 + $0x5d0] sm:$0xf]  ;;  %v9911_v10 = vld [vmem:[%s15566_s1 + $0x5e4] sm:$0xf0]  ;;  %4703 = vmatpush.bf16.msra.mxu0 %v6628_v3  ;;  %v9809_v15 = vld [vmem:[%s15566_s1 + $0x2b4] sm:$0xf0] }
   0x5   :  { %v7204_v12 = vor.u32 %v9911_v10, %v7203_v9  ;;  %4716 = vmatpush.bf16.msra.mxu1 %v6820_v7  ;;  %v6796_v17 = vor.u32 %v9809_v15, %v6795_v14  ;;  %v6987_v18 = vld [vmem:[%s15566_s1 + $0x420] sm:$0xf]  ;;  %v9857_v19 = vld [vmem:[%s15566_s1 + $0x434] sm:$0xf0]  ;;  %v6579_v23 = vld [vmem:[%s15566_s1 + $0xf0] sm:$0xf] }
   0x6   :  { %4729 = vmatpush.bf16.msra.mxu2 %v7012_v8  ;;  %v7179_v20 = vld [vmem:[%s15566_s1 + $0x5a0] sm:$0xf]  ;;  %v6988_v21 = vor.u32 %v9857_v19, %v6987_v18  ;;  %v9905_v22 = vld [vmem:[%s15566_s1 + $0x5b4] sm:$0xf0]  ;;  %v9755_v24 = vld [vmem:[%s15566_s1 + $0x104] sm:$0xf0] }
   0x7   :  { %4742 = vmatpush.bf16.msra.mxu3 %v7204_v12  ;;  %v7180_v25 = vor.u32 %v9905_v22, %v7179_v20  ;;  %v6771_v26 = vld [vmem:[%s15566_s1 + $0x270] sm:$0xf]  ;;  %v9803_v27 = vld [vmem:[%s15566_s1 + $0x284] sm:$0xf0]  ;;  %v6580_v29 = vor.u32 %v9755_v24, %v6579_v23  ;;  %v6555_v35 = vld [vmem:[%s15566_s1 + $0xc0] sm:$0xf] }
   0x8   :  { %v6963_v28 = vld [vmem:[%s15566_s1 + $0x3f0] sm:$0xf]  ;;  %4704 = vmatpush.bf16.msra.mxu0 %v6604_v16  ;;  %v9851_v30 = vld [vmem:[%s15566_s1 + $0x404] sm:$0xf0]  ;;  %v6772_v33 = vor.u32 %v9803_v27, %v6771_v26  ;;  %v9749_v36 = vld [vmem:[%s15566_s1 + $0xd4] sm:$0xf0] }
   0x9   :  { %v7155_v31 = vld [vmem:[%s15566_s1 + $0x570] sm:$0xf]  ;;  %v9899_v32 = vld [vmem:[%s15566_s1 + $0x584] sm:$0xf0]  ;;  %4717 = vmatpush.bf16.msra.mxu1 %v6796_v17  ;;  %v6964_v34 = vor.u32 %v9851_v30, %v6963_v28  ;;  %v6747_v37 = vld [vmem:[%s15566_s1 + $0x240] sm:$0xf]  ;;  %v6556_v44 = vor.u32 %v9749_v36, %v6555_v35 }
   0xa   :  { %4730 = vmatpush.bf16.msra.mxu2 %v6988_v21  ;;  %v7156_v38 = vor.u32 %v9899_v32, %v7155_v31  ;;  %v9797_v39 = vld [vmem:[%s15566_s1 + $0x254] sm:$0xf0]  ;;  %v6939_v40 = vld [vmem:[%s15566_s1 + $0x3c0] sm:$0xf]  ;;  %v6531_v47 = vld [vmem:[%s15566_s1 + $0x90] sm:$0xf] }
   0xb   :  { %4743 = vmatpush.bf16.msra.mxu3 %v7180_v25  ;;  %v9845_v41 = vld [vmem:[%s15566_s1 + $0x3d4] sm:$0xf0]  ;;  %v7131_v42 = vld [vmem:[%s15566_s1 + $0x540] sm:$0xf]  ;;  %v6748_v45 = vor.u32 %v9797_v39, %v6747_v37  ;;  %v9743_v48 = vld [vmem:[%s15566_s1 + $0xa4] sm:$0xf0] }
   0xc   :  { %v9893_v43 = vld [vmem:[%s15566_s1 + $0x554] sm:$0xf0]  ;;  %4705 = vmatpush.bf16.msra.mxu0 %v6580_v29  ;;  %v6940_v46 = vor.u32 %v9845_v41, %v6939_v40  ;;  %v6723_v49 = vld [vmem:[%s15566_s1 + $0x210] sm:$0xf]  ;;  %v9791_v51 = vld [vmem:[%s15566_s1 + $0x224] sm:$0xf0]  ;;  %v6532_v56 = vor.u32 %v9743_v48, %v6531_v47 }
   0xd   :  { %4718 = vmatpush.bf16.msra.mxu1 %v6772_v33  ;;  %v7132_v50 = vor.u32 %v9893_v43, %v7131_v42  ;;  %v6915_v52 = vld [vmem:[%s15566_s1 + $0x390] sm:$0xf]  ;;  %v9839_v53 = vld [vmem:[%s15566_s1 + $0x3a4] sm:$0xf0]  ;;  %v6724_v57 = vor.u32 %v9791_v51, %v6723_v49  ;;  %v6507_v59 = vld [vmem:[%s15566_s1 + $0x60] sm:$0xf] }
   0xe   :  { %4731 = vmatpush.bf16.msra.mxu2 %v6964_v34  ;;  %v7107_v54 = vld [vmem:[%s15566_s1 + $0x510] sm:$0xf]  ;;  %v9887_v55 = vld [vmem:[%s15566_s1 + $0x524] sm:$0xf0]  ;;  %v6916_v58 = vor.u32 %v9839_v53, %v6915_v52  ;;  %v9737_v60 = vld [vmem:[%s15566_s1 + $0x74] sm:$0xf0] }
   0xf   :  { %4744 = vmatpush.bf16.msra.mxu3 %v7156_v38  ;;  %v6699_v61 = vld [vmem:[%s15566_s1 + $0x1e0] sm:$0xf]  ;;  %v7108_v62 = vor.u32 %v9887_v55, %v7107_v54  ;;  %v9785_v63 = vld [vmem:[%s15566_s1 + $0x1f4] sm:$0xf0]  ;;  %v6508_v4 = vor.u32 %v9737_v60, %v6507_v59  ;;  %v6483_v7 = vld [vmem:[%s15566_s1 + $0x30] sm:$0xf] }
  0x10   :  { %4706 = vmatpush.bf16.msra.mxu0 %v6556_v44  ;;  %v6891_v0 = vld [vmem:[%s15566_s1 + $0x360] sm:$0xf]  ;;  %v9833_v1 = vld [vmem:[%s15566_s1 + $0x374] sm:$0xf0]  ;;  %v6700_v5 = vor.u32 %v9785_v63, %v6699_v61  ;;  %v9731_v8 = vld [vmem:[%s15566_s1 + $0x44] sm:$0xf0] }
  0x11   :  { %4719 = vmatpush.bf16.msra.mxu1 %v6748_v45  ;;  %v7083_v2 = vld [vmem:[%s15566_s1 + $0x4e0] sm:$0xf]  ;;  %v9881_v3 = vld [vmem:[%s15566_s1 + $0x4f4] sm:$0xf0]  ;;  %v6892_v6 = vor.u32 %v9833_v1, %v6891_v0  ;;  %v6675_v9 = vld [vmem:[%s15566_s1 + $0x1b0] sm:$0xf]  ;;  %v6484_v16 = vor.u32 %v9731_v8, %v6483_v7 }
  0x12   :  { %4732 = vmatpush.bf16.msra.mxu2 %v6940_v46  ;;  %v7084_v10 = vor.u32 %v9881_v3, %v7083_v2  ;;  %v9779_v11 = vld [vmem:[%s15566_s1 + $0x1c4] sm:$0xf0]  ;;  %v6867_v12 = vld [vmem:[%s15566_s1 + $0x330] sm:$0xf]  ;;  %v6459_v17 = vld [vmem:[%s15566_s1] sm:$0xf] }
  0x13   :  { %4745 = vmatpush.bf16.msra.mxu3 %v7132_v50  ;;  %v9827_v13 = vld [vmem:[%s15566_s1 + $0x344] sm:$0xf0]  ;;  %v7059_v14 = vld [vmem:[%s15566_s1 + $0x4b0] sm:$0xf]  ;;  %v9725_v18 = vld [vmem:[%s15566_s1 + $0x14] sm:$0xf0]  ;;  %v6676_v19 = vor.u32 %v9779_v11, %v6675_v9 }
  0x14   :  { %4707 = vmatpush.bf16.msra.mxu0 %v6532_v56  ;;  %v9875_v15 = vld [vmem:[%s15566_s1 + $0x4c4] sm:$0xf0]  ;;  %v6868_v20 = vor.u32 %v9827_v13, %v6867_v12  ;;  %v6651_v21 = vld [vmem:[%s15566_s1 + $0x180] sm:$0xf]  ;;  %v9773_v22 = vld [vmem:[%s15566_s1 + $0x194] sm:$0xf0]  ;;  %v6460_v31 = vor.u32 %v9725_v18, %v6459_v17 }
  0x15   :  { %4720 = vmatpush.bf16.msra.mxu1 %v6724_v57  ;;  %v6843_v23 = vld [vmem:[%s15566_s1 + $0x300] sm:$0xf]  ;;  %v7060_v24 = vor.u32 %v9875_v15, %v7059_v14  ;;  %v9821_v25 = vld [vmem:[%s15566_s1 + $0x314] sm:$0xf0]  ;;  %v7395_v28 = vld [vmem:[%s15566_s1 + $0x750] sm:$0xf]  ;;  %v6652_v35 = vor.u32 %v9773_v22, %v6651_v21 }
  0x16   :  { %4733 = vmatpush.bf16.msra.mxu2 %v6916_v58  ;;  %v7035_v26 = vld [vmem:[%s15566_s1 + $0x480] sm:$0xf]  ;;  %v9869_v27 = vld [vmem:[%s15566_s1 + $0x494] sm:$0xf0]  ;;  %v9959_v29 = vld [vmem:[%s15566_s1 + $0x764] sm:$0xf0]  ;;  %v6844_v36 = vor.u32 %v9821_v25, %v6843_v23 }
  0x17   :  { %4746 = vmatpush.bf16.msra.mxu3 %v7108_v62  ;;  %v7587_v30 = vld [vmem:[%s15566_s1 + $0x8d0] sm:$0xf]  ;;  %v10007_v32 = vld [vmem:[%s15566_s1 + $0x8e4] sm:$0xf0]  ;;  %v7036_v39 = vor.u32 %v9869_v27, %v7035_v26  ;;  %v7396_v40 = vor.u32 %v9959_v29, %v7395_v28  ;;  %v7371_v43 = vld [vmem:[%s15566_s1 + $0x720] sm:$0xf] }
  0x18   :  { %4708 = vmatpush.bf16.msra.mxu0 %v6508_v4  ;;  %v7779_v33 = vld [vmem:[%s15566_s1 + $0xa50] sm:$0xf]  ;;  %v10055_v34 = vld [vmem:[%s15566_s1 + $0xa64] sm:$0xf0]  ;;  %v7588_v41 = vor.u32 %v10007_v32, %v7587_v30  ;;  %v9953_v44 = vld [vmem:[%s15566_s1 + $0x734] sm:$0xf0] }
  0x19   :  { %4721 = vmatpush.bf16.msra.mxu1 %v6700_v5  ;;  %v7971_v37 = vld [vmem:[%s15566_s1 + $0xbd0] sm:$0xf]  ;;  %v10103_v38 = vld [vmem:[%s15566_s1 + $0xbe4] sm:$0xf0]  ;;  %v7780_v42 = vor.u32 %v10055_v34, %v7779_v33  ;;  %v7563_v45 = vld [vmem:[%s15566_s1 + $0x8a0] sm:$0xf]  ;;  %v7372_v52 = vor.u32 %v9953_v44, %v7371_v43 }
  0x1a   :  { %4734 = vmatpush.bf16.msra.mxu2 %v6892_v6  ;;  %v7972_v46 = vor.u32 %v10103_v38, %v7971_v37  ;;  %v10001_v47 = vld [vmem:[%s15566_s1 + $0x8b4] sm:$0xf0]  ;;  %v7755_v48 = vld [vmem:[%s15566_s1 + $0xa20] sm:$0xf]  ;;  %v7347_v55 = vld [vmem:[%s15566_s1 + $0x6f0] sm:$0xf] }
  0x1b   :  { %4747 = vmatpush.bf16.msra.mxu3 %v7084_v10  ;;  %v10049_v49 = vld [vmem:[%s15566_s1 + $0xa34] sm:$0xf0]  ;;  %v7947_v50 = vld [vmem:[%s15566_s1 + $0xba0] sm:$0xf]  ;;  %v7564_v53 = vor.u32 %v10001_v47, %v7563_v45  ;;  %v9947_v56 = vld [vmem:[%s15566_s1 + $0x704] sm:$0xf0] }
  0x1c   :  { %4709 = vmatpush.bf16.msra.mxu0 %v6484_v16  ;;  %v10097_v51 = vld [vmem:[%s15566_s1 + $0xbb4] sm:$0xf0]  ;;  %v7756_v54 = vor.u32 %v10049_v49, %v7755_v48  ;;  %v7539_v57 = vld [vmem:[%s15566_s1 + $0x870] sm:$0xf]  ;;  %v9995_v59 = vld [vmem:[%s15566_s1 + $0x884] sm:$0xf0]  ;;  %v7348_v0 = vor.u32 %v9947_v56, %v7347_v55 }
  0x1d   :  { %4722 = vmatpush.bf16.msra.mxu1 %v6676_v19  ;;  %v7948_v58 = vor.u32 %v10097_v51, %v7947_v50  ;;  %v7731_v60 = vld [vmem:[%s15566_s1 + $0x9f0] sm:$0xf]  ;;  %v10043_v61 = vld [vmem:[%s15566_s1 + $0xa04] sm:$0xf0]  ;;  %v7323_v1 = vld [vmem:[%s15566_s1 + $0x6c0] sm:$0xf]  ;;  %v7540_v3 = vor.u32 %v9995_v59, %v7539_v57 }
  0x1e   :  { %4735 = vmatpush.bf16.msra.mxu2 %v6868_v20  ;;  %v7923_v62 = vld [vmem:[%s15566_s1 + $0xb70] sm:$0xf]  ;;  %v10091_v63 = vld [vmem:[%s15566_s1 + $0xb84] sm:$0xf0]  ;;  %v20_v2 = vld [vmem:[%s15567_s0] sm:$0xff]  ;;  %v7732_v4 = vor.u32 %v10043_v61, %v7731_v60 }
  0x1f   :  { %4748 = vmatpush.bf16.msra.mxu3 %v7060_v24  ;;  %v9941_v5 = vld [vmem:[%s15566_s1 + $0x6d4] sm:$0xf0]  ;;  %v7515_v6 = vld [vmem:[%s15566_s1 + $0x840] sm:$0xf]  ;;  %28 = vst [vmem:[#allocation1] ss:$4 sm:$0xff] %v20_v2  ;;  %v7924_v7 = vor.u32 %v10091_v63, %v7923_v62 }
  0x20   :  { %4710 = vmatpush.bf16.msra.mxu0 %v6460_v31  ;;  %v9989_v8 = vld [vmem:[%s15566_s1 + $0x854] sm:$0xf0]  ;;  %v7707_v9 = vld [vmem:[%s15566_s1 + $0x9c0] sm:$0xf]  ;;  %v7324_v13 = vor.u32 %v9941_v5, %v7323_v1  ;;  %v7299_v14 = vld [vmem:[%s15566_s1 + $0x690] sm:$0xf] }
  0x21   :  { %4723 = vmatpush.bf16.msra.mxu1 %v6652_v35  ;;  %v10037_v10 = vld [vmem:[%s15566_s1 + $0x9d4] sm:$0xf0]  ;;  %v7899_v11 = vld [vmem:[%s15566_s1 + $0xb40] sm:$0xf]  ;;  %v9935_v15 = vld [vmem:[%s15566_s1 + $0x6a4] sm:$0xf0]  ;;  %v7516_v16 = vor.u32 %v9989_v8, %v7515_v6 }
  0x22   :  { %4736 = vmatpush.bf16.msra.mxu2 %v6844_v36  ;;  %v10085_v12 = vld [vmem:[%s15566_s1 + $0xb54] sm:$0xf0]  ;;  %v7708_v17 = vor.u32 %v10037_v10, %v7707_v9  ;;  %v7491_v18 = vld [vmem:[%s15566_s1 + $0x810] sm:$0xf]  ;;  %v9983_v19 = vld [vmem:[%s15566_s1 + $0x824] sm:$0xf0]  ;;  %v7300_v28 = vor.u32 %v9935_v15, %v7299_v14 }
  0x23   :  { %4749 = vmatpush.bf16.msra.mxu3 %v7036_v39  ;;  %v7683_v20 = vld [vmem:[%s15566_s1 + $0x990] sm:$0xf]  ;;  %v7900_v21 = vor.u32 %v10085_v12, %v7899_v11  ;;  %v10031_v22 = vld [vmem:[%s15566_s1 + $0x9a4] sm:$0xf0]  ;;  %v7275_v25 = vld [vmem:[%s15566_s1 + $0x660] sm:$0xf]  ;;  %v7492_v29 = vor.u32 %v9983_v19, %v7491_v18 }
  0x24   :  { %4755 = vmatpush.bf16.msrb.mxu0 %v7396_v40  ;;  %v7875_v23 = vld [vmem:[%s15566_s1 + $0xb10] sm:$0xf]  ;;  %v10079_v24 = vld [vmem:[%s15566_s1 + $0xb24] sm:$0xf0]  ;;  %v9929_v26 = vld [vmem:[%s15566_s1 + $0x674] sm:$0xf0]  ;;  %v7684_v34 = vor.u32 %v10031_v22, %v7683_v20 }
  0x25   :  { %4768 = vmatpush.bf16.msrb.mxu1 %v7588_v41  ;;  %v22_v27 = vld [vmem:[%s15567_s0 + $0x10] sm:$0xff]  ;;  %v7467_v30 = vld [vmem:[%s15566_s1 + $0x7e0] sm:$0xf]  ;;  %v9977_v31 = vld [vmem:[%s15566_s1 + $0x7f4] sm:$0xf0]  ;;  %v7876_v39 = vor.u32 %v10079_v24, %v7875_v23 }
  0x26   :  { %4781 = vmatpush.bf16.msrb.mxu2 %v7780_v42  ;;  %v33_v32 = vld.sshfl [vmem:[#allocation1 + $0x10] sm:$0xff pattern:$0x73625140]  ;;  %v31_v33 = vld.sshfl [vmem:[#allocation1] sm:$0xff pattern:$0x73625140]  ;;  %v7468_v49 = vor.u32 %v9977_v31, %v7467_v30 }
  0x27   :  { %4794 = vmatpush.bf16.msrb.mxu3 %v7972_v46  ;;  %v10907_v35 = vpack.c.bf16 %v33_v32, %v33_v32  ;;  %v10909_v36 = vpack.c.bf16 %v31_v33, %v31_v33  ;;  %v34_v37 = vld.sshfl [vmem:[#allocation1 + $0x18] sm:$0xff pattern:$0x73625140]  ;;  %v32_v38 = vld.sshfl [vmem:[#allocation1 + $0x8] sm:$0xff pattern:$0x73625140]  ;;  %v7276_v46 = vor.u32 %v9929_v26, %v7275_v25 }
  0x28   :  { %4756 = vmatpush.bf16.msrb.mxu0 %v7372_v52  ;;  %v7659_v40 = vld [vmem:[%s15566_s1 + $0x960] sm:$0xf]  ;;  %v10025_v41 = vld [vmem:[%s15566_s1 + $0x974] sm:$0xf0]  ;;  %v10917_v42 = vpack.c.bf16 %v34_v37, %v34_v37  ;;  %39 = vst [vmem:[#allocation1] ss:$4 sm:$0xff] %v22_v27  ;;  %v10919_v43 = vpack.c.bf16 %v32_v38, %v32_v38 }
  0x29   :  { %4769 = vmatpush.bf16.msrb.mxu1 %v7564_v53  ;;  %v7851_v44 = vld [vmem:[%s15566_s1 + $0xae0] sm:$0xf]  ;;  %v10073_v45 = vld [vmem:[%s15566_s1 + $0xaf4] sm:$0xf0]  ;;  %4737 = vmatmul.bf16.vlgmr.msra.gmra.mxu2 %v10907_v35  ;;  %v7251_v47 = vld [vmem:[%s15566_s1 + $0x630] sm:$0xf]  ;;  %v7660_v50 = vor.u32 %v10025_v41, %v7659_v40 }
  0x2a   :  { %4782 = vmatpush.bf16.msrb.mxu2 %v7756_v54  ;;  %4711 = vmatmul.bf16.vlgmr.msra.gmra.mxu0 %v10909_v36  ;;  %v9923_v48 = vld [vmem:[%s15566_s1 + $0x644] sm:$0xf0]  ;;  %v7443_v51 = vld [vmem:[%s15566_s1 + $0x7b0] sm:$0xf]  ;;  %v7852_v54 = vor.u32 %v10073_v45, %v7851_v44  ;;  %v7227_v59 = vld [vmem:[%s15566_s1 + $0x600] sm:$0xf] }
  0x2b   :  { %4795 = vmatpush.bf16.msrb.mxu3 %v7948_v58  ;;  %v9971_v52 = vld [vmem:[%s15566_s1 + $0x7c4] sm:$0xf0]  ;;  %v7635_v53 = vld [vmem:[%s15566_s1 + $0x930] sm:$0xf]  ;;  %4724 = vmatmul.bf16.vlgmr.msra.gmra.mxu1 %v10919_v43  ;;  %v7252_v60 = vor.u32 %v9923_v48, %v7251_v47  ;;  %v9917_v61 = vld [vmem:[%s15566_s1 + $0x614] sm:$0xf0] }
  0x2c   :  { %4757 = vmatpush.bf16.msrb.mxu0 %v7348_v0  ;;  %4750 = vmatmul.bf16.vlgmr.msra.gmra.mxu3 %v10917_v42  ;;  %v10019_v55 = vld [vmem:[%s15566_s1 + $0x944] sm:$0xf0]  ;;  %v7827_v56 = vld [vmem:[%s15566_s1 + $0xab0] sm:$0xf]  ;;  %v7419_v62 = vld [vmem:[%s15566_s1 + $0x780] sm:$0xf]  ;;  %v7444_v0 = vor.u32 %v9971_v52, %v7443_v51  ;;  %v7228_v12 = vor.u32 %v9917_v61, %v7227_v59 }
  0x2d   :  { %4770 = vmatpush.bf16.msrb.mxu1 %v7540_v3  ;;  %v21_v57 = vld [vmem:[%s15567_s0 + $0x8] sm:$0xff]  ;;  %v9965_v63 = vld [vmem:[%s15566_s1 + $0x794] sm:$0xf0]  ;;  %v7636_v1 = vor.u32 %v10019_v55, %v7635_v53  ;;  %v7611_v2 = vld [vmem:[%s15566_s1 + $0x900] sm:$0xf] }
  0x2e   :  { %4783 = vmatpush.bf16.msrb.mxu2 %v7732_v4  ;;  %v10067_v58 = vld [vmem:[%s15566_s1 + $0xac4] sm:$0xf0]  ;;  %30 = vst [vmem:[#allocation1 + $0x20] ss:$4 sm:$0xff] %v21_v57  ;;  %v10013_v3 = vld [vmem:[%s15566_s1 + $0x914] sm:$0xf0] }
  0x2f   :  { %4796 = vmatpush.bf16.msrb.mxu3 %v7924_v7  ;;  %v7803_v4 = vld [vmem:[%s15566_s1 + $0xa80] sm:$0xf]  ;;  %v7828_v5 = vor.u32 %v10067_v58, %v7827_v56  ;;  %v10061_v6 = vld [vmem:[%s15566_s1 + $0xa94] sm:$0xf0]  ;;  %v8163_v7 = vld [vmem:[%s15566_s1 + $0xd50] sm:$0xf] }
  0x30   :  { %4758 = vmatpush.bf16.msrb.mxu0 %v7324_v13  ;;  %v10151_v8 = vld [vmem:[%s15566_s1 + $0xd64] sm:$0xf0]  ;;  %v8355_v9 = vld [vmem:[%s15566_s1 + $0xed0] sm:$0xf]  ;;  %v8139_v18 = vld [vmem:[%s15566_s1 + $0xd20] sm:$0xf] }
  0x31   :  { %4771 = vmatpush.bf16.msrb.mxu1 %v7516_v16  ;;  %v10199_v10 = vld [vmem:[%s15566_s1 + $0xee4] sm:$0xf0]  ;;  %v8547_v11 = vld [vmem:[%s15566_s1 + $0x1050] sm:$0xf]  ;;  %v7420_v16 = vor.u32 %v9965_v63, %v7419_v62  ;;  %v10145_v19 = vld [vmem:[%s15566_s1 + $0xd34] sm:$0xf0]  ;;  %v8164_v22 = vor.u32 %v10151_v8, %v8163_v7 }
  0x32   :  { %4784 = vmatpush.bf16.msrb.mxu2 %v7708_v17  ;;  %v10247_v13 = vld [vmem:[%s15566_s1 + $0x1064] sm:$0xf0]  ;;  %v8739_v14 = vld [vmem:[%s15566_s1 + $0x11d0] sm:$0xf]  ;;  %v7612_v17 = vor.u32 %v10013_v3, %v7611_v2  ;;  %v23_v20 = vld [vmem:[%s15567_s0 + $0x18] sm:$0xff]  ;;  %v8356_v27 = vor.u32 %v10199_v10, %v8355_v9  ;;  %v8140_v41 = vor.u32 %v10145_v19, %v8139_v18 }
  0x33   :  { %4797 = vmatpush.bf16.msrb.mxu3 %v7900_v21  ;;  %v10295_v15 = vld [vmem:[%s15566_s1 + $0x11e4] sm:$0xf0]  ;;  %v7804_v21 = vor.u32 %v10061_v6, %v7803_v4  ;;  %v8331_v23 = vld [vmem:[%s15566_s1 + $0xea0] sm:$0xf]  ;;  %v10193_v24 = vld [vmem:[%s15566_s1 + $0xeb4] sm:$0xf0] }
  0x34   :  { %4759 = vmatpush.bf16.msrb.mxu0 %v7300_v28  ;;  %v8548_v28 = vor.u32 %v10247_v13, %v8547_v11  ;;  %v8740_v31 = vor.u32 %v10295_v15, %v8739_v14  ;;  %v8523_v32 = vld [vmem:[%s15566_s1 + $0x1020] sm:$0xf]  ;;  %v10241_v33 = vld [vmem:[%s15566_s1 + $0x1034] sm:$0xf0]  ;;  %v8332_v45 = vor.u32 %v10193_v24, %v8331_v23  ;;  %v8115_v47 = vld [vmem:[%s15566_s1 + $0xcf0] sm:$0xf] }
  0x35   :  { %4772 = vmatpush.bf16.msrb.mxu1 %v7492_v29  ;;  %v37_v25 = vld.sshfl [vmem:[#allocation1 + $0x30] sm:$0xff pattern:$0x73625140]  ;;  %v35_v26 = vld.sshfl [vmem:[#allocation1 + $0x20] sm:$0xff pattern:$0x73625140] }
  0x36   :  { %4785 = vmatpush.bf16.msrb.mxu2 %v7684_v34  ;;  %v38_v29 = vld.sshfl [vmem:[#allocation1 + $0x38] sm:$0xff pattern:$0x73625140]  ;;  %v36_v30 = vld.sshfl [vmem:[#allocation1 + $0x28] sm:$0xff pattern:$0x73625140]  ;;  %v11027_v34 = vpack.c.bf16 %v37_v25, %v37_v25 }
  0x37   :  { %4798 = vmatpush.bf16.msrb.mxu3 %v7876_v39  ;;  %40 = vst [vmem:[#allocation1 + $0x20] ss:$4 sm:$0xff] %v23_v20  ;;  %v8715_v37 = vld [vmem:[%s15566_s1 + $0x11a0] sm:$0xf]  ;;  %v10289_v38 = vld [vmem:[%s15566_s1 + $0x11b4] sm:$0xf0]  ;;  %v11035_v39 = vpack.c.bf16 %v35_v26, %v35_v26  ;;  %v11037_v40 = vpack.c.bf16 %v38_v29, %v38_v29  ;;  %v11039_v44 = vpack.c.bf16 %v36_v30, %v36_v30 }
  0x38   :  { %4760 = vmatpush.bf16.msrb.mxu0 %v7276_v46  ;;  %v8524_v46 = vor.u32 %v10241_v33, %v8523_v32  ;;  %v10139_v48 = vld [vmem:[%s15566_s1 + $0xd04] sm:$0xf0]  ;;  %v8499_v52 = vld [vmem:[%s15566_s1 + $0xff0] sm:$0xf]  ;;  %v8091_v59 = vld [vmem:[%s15566_s1 + $0xcc0] sm:$0xf] }
  0x39   :  { %4773 = vmatpush.bf16.msrb.mxu1 %v7468_v49  ;;  %v8307_v49 = vld [vmem:[%s15566_s1 + $0xe70] sm:$0xf]  ;;  %v10187_v51 = vld [vmem:[%s15566_s1 + $0xe84] sm:$0xf0]  ;;  %v8116_v56 = vor.u32 %v10139_v48, %v8115_v47  ;;  %v8283_v61 = vld [vmem:[%s15566_s1 + $0xe40] sm:$0xf] }
  0x3a   :  { %4786 = vmatpush.bf16.msrb.mxu2 %v7660_v50  ;;  %v8716_v50 = vor.u32 %v10289_v38, %v8715_v37  ;;  %v10235_v53 = vld [vmem:[%s15566_s1 + $0x1004] sm:$0xf0]  ;;  %v8308_v57 = vor.u32 %v10187_v51, %v8307_v49  ;;  %v10181_v63 = vld [vmem:[%s15566_s1 + $0xe54] sm:$0xf0]  ;;  %v8667_v2 = vld [vmem:[%s15566_s1 + $0x1140] sm:$0xf] }
  0x3b   :  { %4799 = vmatpush.bf16.msrb.mxu3 %v7852_v54  ;;  %v8691_v54 = vld [vmem:[%s15566_s1 + $0x1170] sm:$0xf]  ;;  %v10283_v55 = vld [vmem:[%s15566_s1 + $0x1184] sm:$0xf0]  ;;  %v8500_v58 = vor.u32 %v10235_v53, %v8499_v52  ;;  %v10277_v3 = vld [vmem:[%s15566_s1 + $0x1154] sm:$0xf0] }
  0x3c   :  { %4761 = vmatpush.bf16.msrb.mxu0 %v7252_v60  ;;  %v10133_v60 = vld [vmem:[%s15566_s1 + $0xcd4] sm:$0xf0]  ;;  %v8692_v62 = vor.u32 %v10283_v55, %v8691_v54  ;;  %v8067_v7 = vld [vmem:[%s15566_s1 + $0xc90] sm:$0xf]  ;;  %v10127_v8 = vld [vmem:[%s15566_s1 + $0xca4] sm:$0xf0]  ;;  %v8668_v10 = vor.u32 %v10277_v3, %v8667_v2 }
  0x3d   :  { %4774 = vmatpush.bf16.msrb.mxu1 %v7444_v0  ;;  %v8475_v0 = vld [vmem:[%s15566_s1 + $0xfc0] sm:$0xf]  ;;  %v8092_v4 = vor.u32 %v10133_v60, %v8091_v59  ;;  %v8259_v9 = vld [vmem:[%s15566_s1 + $0xe10] sm:$0xf]  ;;  %v10175_v11 = vld [vmem:[%s15566_s1 + $0xe24] sm:$0xf0] }
  0x3e   :  { %4787 = vmatpush.bf16.msrb.mxu2 %v7636_v1  ;;  %v10229_v1 = vld [vmem:[%s15566_s1 + $0xfd4] sm:$0xf0]  ;;  %v10223_v13 = vld [vmem:[%s15566_s1 + $0xfa4] sm:$0xf0]  ;;  %v8643_v14 = vld [vmem:[%s15566_s1 + $0x1110] sm:$0xf] }
  0x3f   :  { %4800 = vmatpush.bf16.msrb.mxu3 %v7828_v5  ;;  %v8284_v5 = vor.u32 %v10181_v63, %v8283_v61  ;;  %v8476_v6 = vor.u32 %v10229_v1, %v8475_v0  ;;  %v10271_v15 = vld [vmem:[%s15566_s1 + $0x1124] sm:$0xf0]  ;;  %v8043_v19 = vld [vmem:[%s15566_s1 + $0xc60] sm:$0xf]  ;;  %v10121_v20 = vld [vmem:[%s15566_s1 + $0xc74] sm:$0xf0] }
  0x40   :  { %4762 = vmatpush.bf16.msrb.mxu0 %v7228_v12  ;;  %v8451_v12 = vld [vmem:[%s15566_s1 + $0xf90] sm:$0xf]  ;;  %v10169_v23 = vld [vmem:[%s15566_s1 + $0xdf4] sm:$0xf0]  ;;  %v8427_v24 = vld [vmem:[%s15566_s1 + $0xf60] sm:$0xf] }
  0x41   :  { %4775 = vmatpush.bf16.msrb.mxu1 %v7420_v16  ;;  %v8068_v16 = vor.u32 %v10127_v8, %v8067_v7  ;;  %v8452_v18 = vor.u32 %v10223_v13, %v8451_v12  ;;  %v10217_v25 = vld [vmem:[%s15566_s1 + $0xf74] sm:$0xf0]  ;;  %v8619_v26 = vld [vmem:[%s15566_s1 + $0x10e0] sm:$0xf]  ;;  %v10115_v32 = vld [vmem:[%s15566_s1 + $0xc44] sm:$0xf0] }
  0x42   :  { %4788 = vmatpush.bf16.msrb.mxu2 %v7612_v17  ;;  %v8260_v17 = vor.u32 %v10175_v11, %v8259_v9  ;;  %v8428_v30 = vor.u32 %v10217_v25, %v8427_v24  ;;  %v8211_v33 = vld [vmem:[%s15566_s1 + $0xdb0] sm:$0xf]  ;;  %v10163_v38 = vld [vmem:[%s15566_s1 + $0xdc4] sm:$0xf0]  ;;  %v7995_v48 = vld [vmem:[%s15566_s1 + $0xc00] sm:$0xf] }
  0x43   :  { %4801 = vmatpush.bf16.msrb.mxu3 %v7804_v21  ;;  %4763 = vmatmul.bf16.vlgmr.msrb.gmra.mxu0 %v11035_v39  ;;  %v8235_v21 = vld [vmem:[%s15566_s1 + $0xde0] sm:$0xf]  ;;  %v10259_v47 = vld [vmem:[%s15566_s1 + $0x10c4] sm:$0xf0]  ;;  %v10157_v52 = vld [vmem:[%s15566_s1 + $0xd94] sm:$0xf0]  ;;  %v8212_v53 = vor.u32 %v10163_v38, %v8211_v33 }
  0x44   :  { %4807 = vmatpush.bf16.msra.mxu0 %v8164_v22  ;;  %4776 = vmatmul.bf16.vlgmr.msrb.gmra.mxu1 %v11039_v44  ;;  %v8644_v22 = vor.u32 %v10271_v15, %v8643_v14  ;;  %v8236_v29 = vor.u32 %v10169_v23, %v8235_v21  ;;  %v8187_v51 = vld [vmem:[%s15566_s1 + $0xd80] sm:$0xf]  ;;  %v10253_v59 = vld [vmem:[%s15566_s1 + $0x1094] sm:$0xf0]  ;;  %v8931_v60 = vld [vmem:[%s15566_s1 + $0x1350] sm:$0xf] }
  0x45   :  { %4820 = vmatpush.bf16.msra.mxu1 %v8356_v27  ;;  %4789 = vmatmul.bf16.vlgmr.msrb.gmra.mxu2 %v11027_v34  ;;  %v10265_v27 = vld [vmem:[%s15566_s1 + $0x10f4] sm:$0xf0]  ;;  %v8379_v55 = vld [vmem:[%s15566_s1 + $0xf00] sm:$0xf]  ;;  %v10343_v61 = vld [vmem:[%s15566_s1 + $0x1364] sm:$0xf0] }
  0x46   :  { %4833 = vmatpush.bf16.msra.mxu2 %v8548_v28  ;;  %4802 = vmatmul.bf16.vlgmr.msrb.gmra.mxu3 %v11037_v40  ;;  %v8044_v28 = vor.u32 %v10121_v20, %v8043_v19  ;;  %v8620_v37 = vor.u32 %v10265_v27, %v8619_v26  ;;  %v10391_v63 = vld [vmem:[%s15566_s1 + $0x14e4] sm:$0xf0]  ;;  %v9315_v0 = vld [vmem:[%s15566_s1 + $0x1650] sm:$0xf]  ;;  %v8907_v15 = vld [vmem:[%s15566_s1 + $0x1320] sm:$0xf] }
  0x47   :  { %4846 = vmatpush.bf16.msra.mxu3 %v8740_v31  ;;  %v8019_v31 = vld [vmem:[%s15566_s1 + $0xc30] sm:$0xf]  ;;  %v10439_v2 = vld [vmem:[%s15566_s1 + $0x1664] sm:$0xf0]  ;;  %v10385_v20 = vld [vmem:[%s15566_s1 + $0x14b4] sm:$0xf0] }
  0x48   :  { %4808 = vmatpush.bf16.msra.mxu0 %v8140_v41  ;;  %v8403_v41 = vld [vmem:[%s15566_s1 + $0xf30] sm:$0xf]  ;;  %v8020_v49 = vor.u32 %v10115_v32, %v8019_v31  ;;  %v41_v7 = vld.sshfl [vmem:[#allocation1] sm:$0xff pattern:$0x73625140]  ;;  %v9316_v14 = vor.u32 %v10439_v2, %v9315_v0 }
  0x49   :  { %4821 = vmatpush.bf16.msra.mxu1 %v8332_v45  ;;  %v10211_v45 = vld [vmem:[%s15566_s1 + $0xf44] sm:$0xf0]  ;;  %v9507_v3 = vld [vmem:[%s15566_s1 + $0x17d0] sm:$0xf]  ;;  %v11222_v19 = vpack.c.bf16 %v41_v7, %v41_v7  ;;  %v9291_v21 = vld [vmem:[%s15566_s1 + $0x1620] sm:$0xf] }
  0x4a   :  { %4834 = vmatpush.bf16.msra.mxu2 %v8524_v46  ;;  %v8595_v46 = vld [vmem:[%s15566_s1 + $0x10b0] sm:$0xf]  ;;  %v8404_v54 = vor.u32 %v10211_v45, %v8403_v41  ;;  %v42_v11 = vld.sshfl [vmem:[#allocation1 + $0x8] sm:$0xff pattern:$0x73625140] }
  0x4b   :  { %4847 = vmatpush.bf16.msra.mxu3 %v8716_v50  ;;  %v10109_v50 = vld [vmem:[%s15566_s1 + $0xc14] sm:$0xf0]  ;;  %v43_v8 = vld.sshfl [vmem:[#allocation1 + $0x10] sm:$0xff pattern:$0x73625140]  ;;  %v11235_v24 = vpack.c.bf16 %v42_v11, %v42_v11 }
  0x4c   :  { %4809 = vmatpush.bf16.msra.mxu0 %v8116_v56  ;;  %v10205_v56 = vld [vmem:[%s15566_s1 + $0xf14] sm:$0xf0]  ;;  %v7996_v1 = vor.u32 %v10109_v50, %v7995_v48  ;;  %v11233_v23 = vpack.c.bf16 %v43_v8, %v43_v8  ;;  %v9483_v25 = vld [vmem:[%s15566_s1 + $0x17a0] sm:$0xf]  ;;  %v8883_v31 = vld [vmem:[%s15566_s1 + $0x12f0] sm:$0xf] }
  0x4d   :  { %4822 = vmatpush.bf16.msra.mxu1 %v8308_v57  ;;  %v8571_v57 = vld [vmem:[%s15566_s1 + $0x1080] sm:$0xf]  ;;  %v44_v12 = vld.sshfl [vmem:[#allocation1 + $0x18] sm:$0xff pattern:$0x73625140] }
  0x4e   :  { %4835 = vmatpush.bf16.msra.mxu2 %v8500_v58  ;;  %v8596_v58 = vor.u32 %v10259_v47, %v8595_v46  ;;  %v8572_v9 = vor.u32 %v10253_v59, %v8571_v57  ;;  %v10481_v26 = vld [vmem:[%s15566_s1 + $0x17b4] sm:$0xf0]  ;;  %v11243_v27 = vpack.c.bf16 %v44_v12, %v44_v12  ;;  %v10331_v32 = vld [vmem:[%s15566_s1 + $0x1304] sm:$0xf0]  ;;  %v9075_v33 = vld [vmem:[%s15566_s1 + $0x1470] sm:$0xf] }
  0x4f   :  { %4848 = vmatpush.bf16.msra.mxu3 %v8692_v62  ;;  %v9123_v62 = vld [vmem:[%s15566_s1 + $0x14d0] sm:$0xf]  ;;  %v10379_v38 = vld [vmem:[%s15566_s1 + $0x1484] sm:$0xf0]  ;;  %v8884_v48 = vor.u32 %v10331_v32, %v8883_v31  ;;  %v10421_v57 = vld [vmem:[%s15566_s1 + $0x15d4] sm:$0xf0] }
  0x50   :  { %4810 = vmatpush.bf16.msra.mxu0 %v8092_v4  ;;  %v10487_v4 = vld [vmem:[%s15566_s1 + $0x17e4] sm:$0xf0]  ;;  %v9124_v13 = vor.u32 %v10391_v63, %v9123_v62  ;;  %v9267_v41 = vld [vmem:[%s15566_s1 + $0x15f0] sm:$0xf]  ;;  %v10469_v59 = vld [vmem:[%s15566_s1 + $0x1754] sm:$0xf0] }
  0x51   :  { %4823 = vmatpush.bf16.msra.mxu1 %v8284_v5  ;;  %v8188_v5 = vor.u32 %v10157_v52, %v8187_v51  ;;  %v10427_v45 = vld [vmem:[%s15566_s1 + $0x1604] sm:$0xf0]  ;;  %v9459_v46 = vld [vmem:[%s15566_s1 + $0x1770] sm:$0xf]  ;;  %v8859_v51 = vld [vmem:[%s15566_s1 + $0x12c0] sm:$0xf] }
  0x52   :  { %4836 = vmatpush.bf16.msra.mxu2 %v8476_v6  ;;  %v8380_v6 = vor.u32 %v10205_v56, %v8379_v55  ;;  %v10475_v47 = vld [vmem:[%s15566_s1 + $0x1784] sm:$0xf0]  ;;  %v9268_v50 = vor.u32 %v10427_v45, %v9267_v41  ;;  %v10325_v52 = vld [vmem:[%s15566_s1 + $0x12d4] sm:$0xf0]  ;;  %v9243_v56 = vld [vmem:[%s15566_s1 + $0x15c0] sm:$0xf] }
  0x53   :  { %4849 = vmatpush.bf16.msra.mxu3 %v8668_v10  ;;  %v8932_v10 = vor.u32 %v10343_v61, %v8931_v60  ;;  %v10373_v55 = vld [vmem:[%s15566_s1 + $0x1454] sm:$0xf0]  ;;  %v8860_v60 = vor.u32 %v10325_v52, %v8859_v51  ;;  %v9244_v62 = vor.u32 %v10421_v57, %v9243_v56  ;;  %v8835_v63 = vld [vmem:[%s15566_s1 + $0x1290] sm:$0xf]  ;;  %v10319_v0 = vld [vmem:[%s15566_s1 + $0x12a4] sm:$0xf0] }
  0x54   :  { %4811 = vmatpush.bf16.msra.mxu0 %v8068_v16  ;;  %v10337_v16 = vld [vmem:[%s15566_s1 + $0x1334] sm:$0xf0]  ;;  %v10463_v7 = vld [vmem:[%s15566_s1 + $0x1724] sm:$0xf0]  ;;  %v8836_v8 = vor.u32 %v10319_v0, %v8835_v63  ;;  %v8811_v11 = vld [vmem:[%s15566_s1 + $0x1260] sm:$0xf] }
  0x55   :  { %4824 = vmatpush.bf16.msra.mxu1 %v8260_v17  ;;  %v9099_v17 = vld [vmem:[%s15566_s1 + $0x14a0] sm:$0xf]  ;;  %v10313_v12 = vld [vmem:[%s15566_s1 + $0x1274] sm:$0xf0]  ;;  %v10355_v31 = vld [vmem:[%s15566_s1 + $0x13c4] sm:$0xf0] }
  0x56   :  { %4837 = vmatpush.bf16.msra.mxu2 %v8452_v18  ;;  %v9508_v18 = vor.u32 %v10487_v4, %v9507_v3  ;;  %v10367_v3 = vld [vmem:[%s15566_s1 + $0x1424] sm:$0xf0]  ;;  %v9219_v4 = vld [vmem:[%s15566_s1 + $0x1590] sm:$0xf]  ;;  %v8763_v41 = vld [vmem:[%s15566_s1 + $0x1200] sm:$0xf] }
  0x57   :  { %4850 = vmatpush.bf16.msra.mxu3 %v8644_v22  ;;  %v10433_v22 = vld [vmem:[%s15566_s1 + $0x1634] sm:$0xf0]  ;;  %v9171_v32 = vld [vmem:[%s15566_s1 + $0x1530] sm:$0xf]  ;;  %v9147_v51 = vld [vmem:[%s15566_s1 + $0x1500] sm:$0xf] }
  0x58   :  { %4812 = vmatpush.bf16.msra.mxu0 %v8044_v28  ;;  %v8908_v28 = vor.u32 %v10337_v16, %v8907_v15  ;;  %v10361_v15 = vld [vmem:[%s15566_s1 + $0x13f4] sm:$0xf0]  ;;  %v9195_v16 = vld [vmem:[%s15566_s1 + $0x1560] sm:$0xf]  ;;  %v9764_v56 = vld [vmem:[%s15566_s1 + $0x154] sm:$0xf] }
  0x59   :  { %4825 = vmatpush.bf16.msra.mxu1 %v8236_v29  ;;  %v9100_v29 = vor.u32 %v10385_v20, %v9099_v17  ;;  %v10409_v17 = vld [vmem:[%s15566_s1 + $0x1574] sm:$0xf0]  ;;  %v6629_v57 = vld [vmem:[%s15566_s1 + $0x168] sm:$0xf0]  ;;  %v9908_v63 = vld [vmem:[%s15566_s1 + $0x5d4] sm:$0xf] }
  0x5a   :  { %4838 = vmatpush.bf16.msra.mxu2 %v8428_v30  ;;  %v9292_v30 = vor.u32 %v10433_v22, %v9291_v21  ;;  %v10457_v20 = vld [vmem:[%s15566_s1 + $0x16f4] sm:$0xf0]  ;;  %v8812_v21 = vor.u32 %v10313_v12, %v8811_v11  ;;  %v7205_v0 = vld [vmem:[%s15566_s1 + $0x5e8] sm:$0xf0]  ;;  %v9758_v11 = vld [vmem:[%s15566_s1 + $0x124] sm:$0xf] }
  0x5b   :  { %4851 = vmatpush.bf16.msra.mxu3 %v8620_v37  ;;  %v9484_v37 = vor.u32 %v10481_v26, %v9483_v25  ;;  %v9196_v25 = vor.u32 %v10409_v17, %v9195_v16  ;;  %v8787_v26 = vld [vmem:[%s15566_s1 + $0x1230] sm:$0xf]  ;;  %v10397_v52 = vld [vmem:[%s15566_s1 + $0x1514] sm:$0xf0]  ;;  %v6605_v12 = vld [vmem:[%s15566_s1 + $0x138] sm:$0xf0] }
  0x5c   :  { %4813 = vmatpush.bf16.msra.mxu0 %v8020_v49  ;;  %v9076_v49 = vor.u32 %v10379_v38, %v9075_v33  ;;  %v10403_v33 = vld [vmem:[%s15566_s1 + $0x1544] sm:$0xf0]  ;;  %v6797_v16 = vld [vmem:[%s15566_s1 + $0x2b8] sm:$0xf0]  ;;  %v9854_v17 = vld [vmem:[%s15566_s1 + $0x424] sm:$0xf] }
  0x5d   :  { %4826 = vmatpush.bf16.msra.mxu1 %v8212_v53  ;;  %v9051_v53 = vld [vmem:[%s15566_s1 + $0x1440] sm:$0xf]  ;;  %v10451_v38 = vld [vmem:[%s15566_s1 + $0x16c4] sm:$0xf0] }
  0x5e   :  { %4839 = vmatpush.bf16.msra.mxu2 %v8404_v54  ;;  %v9460_v54 = vor.u32 %v10475_v47, %v9459_v46  ;;  %v9052_v61 = vor.u32 %v10373_v55, %v9051_v53  ;;  %v10301_v46 = vld [vmem:[%s15566_s1 + $0x1214] sm:$0xf0]  ;;  %v8955_v47 = vld [vmem:[%s15566_s1 + $0x1380] sm:$0xf] }
  0x5f   :  { %4852 = vmatpush.bf16.msra.mxu3 %v8596_v58  ;;  %v9435_v58 = vld [vmem:[%s15566_s1 + $0x1740] sm:$0xf]  ;;  %v10445_v55 = vld [vmem:[%s15566_s1 + $0x1694] sm:$0xf0] }
  0x60   :  { %4814 = vmatpush.bf16.msra.mxu0 %v7996_v1  ;;  %v9027_v1 = vld [vmem:[%s15566_s1 + $0x1410] sm:$0xf]  ;;  %v9436_v2 = vor.u32 %v10469_v59, %v9435_v58  ;;  %v9339_v53 = vld [vmem:[%s15566_s1 + $0x1680] sm:$0xf]  ;;  %v9812_v58 = vld [vmem:[%s15566_s1 + $0x2d4] sm:$0xf] }
  0x61   :  { %4827 = vmatpush.bf16.msra.mxu1 %v8188_v5  ;;  %v10415_v5 = vld [vmem:[%s15566_s1 + $0x15a4] sm:$0xf0]  ;;  %v6821_v59 = vld [vmem:[%s15566_s1 + $0x2e8] sm:$0xf0] }
  0x62   :  { %4840 = vmatpush.bf16.msra.mxu2 %v8380_v6  ;;  %v9411_v6 = vld [vmem:[%s15566_s1 + $0x1710] sm:$0xf] }
  0x63   :  { %4853 = vmatpush.bf16.msra.mxu3 %v8572_v9  ;;  %4815 = vmatmul.bf16.vlgmr.msra.gmra.mxu0 %v11222_v19  ;;  %v9028_v9 = vor.u32 %v10367_v3, %v9027_v1  ;;  %v45_v3 = vld.sshfl [vmem:[#allocation1 + $0x20] sm:$0xff pattern:$0x73625140] }
  0x64   :  { %4859 = vmatpush.bf16.msrb.mxu0 %v8932_v10  ;;  %4828 = vmatmul.bf16.vlgmr.msra.gmra.mxu1 %v11235_v24  ;;  %v9220_v10 = vor.u32 %v10415_v5, %v9219_v4  ;;  %v47_v4 = vld.sshfl [vmem:[#allocation1 + $0x30] sm:$0xff pattern:$0x73625140]  ;;  %v9340_v5 = vor.u32 %v10445_v55, %v9339_v53  ;;  %v9794_v53 = vld [vmem:[%s15566_s1 + $0x244] sm:$0xf] }
  0x65   :  { %4872 = vmatpush.bf16.msrb.mxu1 %v9124_v13  ;;  %4841 = vmatmul.bf16.vlgmr.msra.gmra.mxu2 %v11233_v23  ;;  %v9003_v13 = vld [vmem:[%s15566_s1 + $0x13e0] sm:$0xf]  ;;  %v6749_v55 = vld [vmem:[%s15566_s1 + $0x258] sm:$0xf0] }
  0x66   :  { %4885 = vmatpush.bf16.msrb.mxu2 %v9316_v14  ;;  %4854 = vmatmul.bf16.vlgmr.msra.gmra.mxu3 %v11243_v27  ;;  %v9412_v14 = vor.u32 %v10463_v7, %v9411_v6  ;;  %v9004_v22 = vor.u32 %v10361_v15, %v9003_v13  ;;  %v6632_v6 = vor.u32 %v9764_v56, %v6629_v57  ;;  %v46_v7 = vld.sshfl [vmem:[#allocation1 + $0x28] sm:$0xff pattern:$0x73625140]  ;;  %v9806_v13 = vld [vmem:[%s15566_s1 + $0x2a4] sm:$0xf] }
  0x67   :  { %4898 = vmatpush.bf16.msrb.mxu3 %v9508_v18  ;;  %v9387_v18 = vld [vmem:[%s15566_s1 + $0x16e0] sm:$0xf]  ;;  %v11426_v15 = vpack.c.bf16 %v45_v3, %v45_v3  ;;  %v9842_v56 = vld [vmem:[%s15566_s1 + $0x3c4] sm:$0xf]  ;;  %v6941_v57 = vld [vmem:[%s15566_s1 + $0x3d8] sm:$0xf0] }
  0x68   :  { %4860 = vmatpush.bf16.msrb.mxu0 %v8908_v28  ;;  %v10307_v28 = vld [vmem:[%s15566_s1 + $0x1244] sm:$0xf0]  ;;  %v6725_v3 = vld [vmem:[%s15566_s1 + $0x228] sm:$0xf0] }
  0x69   :  { %4873 = vmatpush.bf16.msrb.mxu1 %v9100_v29  ;;  %v8979_v29 = vld [vmem:[%s15566_s1 + $0x13b0] sm:$0xf]  ;;  %v8788_v45 = vor.u32 %v10307_v28, %v8787_v26  ;;  %v6608_v28 = vor.u32 %v9758_v11, %v6605_v12  ;;  %v9734_v11 = vld [vmem:[%s15566_s1 + $0x64] sm:$0xf]  ;;  %v6509_v12 = vld [vmem:[%s15566_s1 + $0x78] sm:$0xf0] }
  0x6a   :  { %4886 = vmatpush.bf16.msrb.mxu2 %v9292_v30  ;;  %v9388_v30 = vor.u32 %v10457_v20, %v9387_v18  ;;  %v6989_v18 = vld [vmem:[%s15566_s1 + $0x438] sm:$0xf0]  ;;  %v11437_v20 = vpack.c.bf16 %v47_v4, %v47_v4  ;;  %v9836_v4 = vld [vmem:[%s15566_s1 + $0x394] sm:$0xf] }
  0x6b   :  { %4899 = vmatpush.bf16.msrb.mxu3 %v9484_v37  ;;  %v9363_v37 = vld [vmem:[%s15566_s1 + $0x16b0] sm:$0xf] }
  0x6c   :  { %4861 = vmatpush.bf16.msrb.mxu0 %v8884_v48  ;;  %v10349_v48 = vld [vmem:[%s15566_s1 + $0x1394] sm:$0xf0] }
  0x6d   :  { %4874 = vmatpush.bf16.msrb.mxu1 %v9076_v49  ;;  %v8980_v49 = vor.u32 %v10355_v31, %v8979_v29  ;;  %v8956_v1 = vor.u32 %v10349_v48, %v8955_v47  ;;  %v6800_v29 = vor.u32 %v9806_v13, %v6797_v16  ;;  %v9752_v31 = vld [vmem:[%s15566_s1 + $0xf4] sm:$0xf]  ;;  %v7157_v47 = vld [vmem:[%s15566_s1 + $0x588] sm:$0xf0]  ;;  %v9782_v13 = vld [vmem:[%s15566_s1 + $0x1e4] sm:$0xf] }
  0x6e   :  { %4887 = vmatpush.bf16.msrb.mxu2 %v9268_v50  ;;  %v9172_v50 = vor.u32 %v10403_v33, %v9171_v32  ;;  %v6581_v32 = vld [vmem:[%s15566_s1 + $0x108] sm:$0xf0]  ;;  %v9800_v33 = vld [vmem:[%s15566_s1 + $0x274] sm:$0xf]  ;;  %v6701_v16 = vld [vmem:[%s15566_s1 + $0x1f8] sm:$0xf0] }
  0x6f   :  { %4900 = vmatpush.bf16.msrb.mxu3 %v9460_v54  ;;  %v9364_v54 = vor.u32 %v10451_v38, %v9363_v37  ;;  %v6773_v38 = vld [vmem:[%s15566_s1 + $0x288] sm:$0xf0]  ;;  %v6584_v48 = vor.u32 %v9752_v31, %v6581_v32  ;;  %v9728_v31 = vld [vmem:[%s15566_s1 + $0x34] sm:$0xf] }
  0x70   :  { %4862 = vmatpush.bf16.msrb.mxu0 %v8860_v60  ;;  %v9860_v60 = vld [vmem:[%s15566_s1 + $0x454] sm:$0xf]  ;;  %v6485_v32 = vld [vmem:[%s15566_s1 + $0x48] sm:$0xf0] }
  0x71   :  { %4875 = vmatpush.bf16.msrb.mxu1 %v9052_v61  ;;  %v8764_v61 = vor.u32 %v10301_v46, %v8763_v41  ;;  %v9848_v41 = vld [vmem:[%s15566_s1 + $0x3f4] sm:$0xf] }
  0x72   :  { %4888 = vmatpush.bf16.msrb.mxu2 %v9244_v62  ;;  %v7013_v62 = vld [vmem:[%s15566_s1 + $0x468] sm:$0xf0]  ;;  %v9896_v46 = vld [vmem:[%s15566_s1 + $0x574] sm:$0xf] }
  0x73   :  { %4901 = vmatpush.bf16.msrb.mxu3 %v9436_v2  ;;  %v9148_v2 = vor.u32 %v10397_v52, %v9147_v51  ;;  %v9746_v51 = vld [vmem:[%s15566_s1 + $0xc4] sm:$0xf]  ;;  %v6557_v52 = vld [vmem:[%s15566_s1 + $0xd8] sm:$0xf0] }
  0x74   :  { %4863 = vmatpush.bf16.msrb.mxu0 %v8836_v8  ;;  %v48_v8 = vld.sshfl [vmem:[#allocation1 + $0x38] sm:$0xff pattern:$0x73625140] }
  0x75   :  { %4876 = vmatpush.bf16.msrb.mxu1 %v9028_v9  ;;  %v6824_v9 = vor.u32 %v9812_v58, %v6821_v59  ;;  %v11447_v26 = vpack.c.bf16 %v48_v8, %v48_v8  ;;  %v9890_v58 = vld [vmem:[%s15566_s1 + $0x544] sm:$0xf]  ;;  %v7133_v59 = vld [vmem:[%s15566_s1 + $0x558] sm:$0xf0] }
  0x76   :  { %4889 = vmatpush.bf16.msrb.mxu2 %v9220_v10  ;;  %v7016_v10 = vor.u32 %v9860_v60, %v7013_v62  ;;  %v6560_v60 = vor.u32 %v9746_v51, %v6557_v52  ;;  %v6944_v62 = vor.u32 %v9842_v56, %v6941_v57  ;;  %v6845_v57 = vld [vmem:[%s15566_s1 + $0x318] sm:$0xf0] }
  0x77   :  { %4902 = vmatpush.bf16.msrb.mxu3 %v9412_v14  ;;  %v7208_v14 = vor.u32 %v9908_v63, %v7205_v0  ;;  %v9740_v63 = vld [vmem:[%s15566_s1 + $0x94] sm:$0xf]  ;;  %v6533_v0 = vld [vmem:[%s15566_s1 + $0xa8] sm:$0xf0] }
  0x78   :  { %4864 = vmatpush.bf16.msrb.mxu0 %v8812_v21  ;;  %v11439_v21 = vpack.c.bf16 %v46_v7, %v46_v7  ;;  %v7109_v7 = vld [vmem:[%s15566_s1 + $0x528] sm:$0xf0]  ;;  %v6536_v8 = vor.u32 %v9740_v63, %v6533_v0 }
  0x79   :  { %4877 = vmatpush.bf16.msrb.mxu1 %v9004_v22  ;;  %v9902_v22 = vld [vmem:[%s15566_s1 + $0x5a4] sm:$0xf]  ;;  %v7589_v0 = vld [vmem:[%s15566_s1 + $0x8e8] sm:$0xf0] }
  0x7a   :  { %4890 = vmatpush.bf16.msrb.mxu2 %v9196_v25  ;;  %v7181_v25 = vld [vmem:[%s15566_s1 + $0x5b8] sm:$0xf0] }
  0x7b   :  { %4903 = vmatpush.bf16.msrb.mxu3 %v9388_v30  ;;  %v6992_v30 = vor.u32 %v9854_v17, %v6989_v18  ;;  %v7184_v37 = vor.u32 %v9902_v22, %v7181_v25  ;;  %v9830_v17 = vld [vmem:[%s15566_s1 + $0x364] sm:$0xf]  ;;  %v6893_v18 = vld [vmem:[%s15566_s1 + $0x378] sm:$0xf0] }
  0x7c   :  { %4865 = vmatpush.bf16.msrb.mxu0 %v8788_v45  ;;  %v6965_v45 = vld [vmem:[%s15566_s1 + $0x408] sm:$0xf0]  ;;  %v9878_v22 = vld [vmem:[%s15566_s1 + $0x4e4] sm:$0xf]  ;;  %v7085_v25 = vld [vmem:[%s15566_s1 + $0x4f8] sm:$0xf0] }
  0x7d   :  { %4878 = vmatpush.bf16.msrb.mxu1 %v8980_v49  ;;  %v6776_v49 = vor.u32 %v9800_v33, %v6773_v38  ;;  %v9776_v33 = vld [vmem:[%s15566_s1 + $0x1b4] sm:$0xf]  ;;  %v6677_v38 = vld [vmem:[%s15566_s1 + $0x1c8] sm:$0xf0] }
  0x7e   :  { %4891 = vmatpush.bf16.msrb.mxu2 %v9172_v50  ;;  %v6968_v50 = vor.u32 %v9848_v41, %v6965_v45  ;;  %v9824_v41 = vld [vmem:[%s15566_s1 + $0x334] sm:$0xf]  ;;  %v6869_v45 = vld [vmem:[%s15566_s1 + $0x348] sm:$0xf0]  ;;  %v6680_v51 = vor.u32 %v9776_v33, %v6677_v38 }
  0x7f   :  { %4904 = vmatpush.bf16.msrb.mxu3 %v9364_v54  ;;  %v7160_v54 = vor.u32 %v9896_v46, %v7157_v47  ;;  %v9872_v46 = vld [vmem:[%s15566_s1 + $0x4b4] sm:$0xf]  ;;  %v7061_v47 = vld [vmem:[%s15566_s1 + $0x4c8] sm:$0xf0]  ;;  %v6872_v52 = vor.u32 %v9824_v41, %v6869_v45 }
  0x80   :  { %4866 = vmatpush.bf16.msrb.mxu0 %v8764_v61  ;;  %v6752_v61 = vor.u32 %v9794_v53, %v6749_v55  ;;  %v9770_v53 = vld [vmem:[%s15566_s1 + $0x184] sm:$0xf]  ;;  %v7064_v56 = vor.u32 %v9872_v46, %v7061_v47  ;;  %v9992_v33 = vld [vmem:[%s15566_s1 + $0x874] sm:$0xf]  ;;  %v7541_v38 = vld [vmem:[%s15566_s1 + $0x888] sm:$0xf0] }
  0x81   :  { %4879 = vmatpush.bf16.msrb.mxu1 %v8956_v1  ;;  %v9788_v1 = vld [vmem:[%s15566_s1 + $0x214] sm:$0xf]  ;;  %v9818_v55 = vld [vmem:[%s15566_s1 + $0x304] sm:$0xf]  ;;  %v7733_v45 = vld [vmem:[%s15566_s1 + $0xa08] sm:$0xf0] }
  0x82   :  { %4892 = vmatpush.bf16.msrb.mxu2 %v9148_v2  ;;  %v7136_v2 = vor.u32 %v9890_v58, %v7133_v59  ;;  %v9866_v58 = vld [vmem:[%s15566_s1 + $0x484] sm:$0xf]  ;;  %v7037_v59 = vld [vmem:[%s15566_s1 + $0x498] sm:$0xf0]  ;;  %v10040_v41 = vld [vmem:[%s15566_s1 + $0x9f4] sm:$0xf] }
  0x83   :  { %4905 = vmatpush.bf16.msrb.mxu3 %v9340_v5  ;;  %4867 = vmatmul.bf16.vlgmr.msrb.gmra.mxu0 %v11426_v15  ;;  %v6917_v5 = vld [vmem:[%s15566_s1 + $0x3a8] sm:$0xf0]  ;;  %v10088_v46 = vld [vmem:[%s15566_s1 + $0xb74] sm:$0xf] }
  0x84   :  { %4911 = vmatpush.bf16.msra.mxu0 %v6632_v6  ;;  %4880 = vmatmul.bf16.vlgmr.msrb.gmra.mxu1 %v11439_v21  ;;  %v9884_v6 = vld [vmem:[%s15566_s1 + $0x514] sm:$0xf]  ;;  %v7925_v47 = vld [vmem:[%s15566_s1 + $0xb88] sm:$0xf0] }
  0x85   :  { %4924 = vmatpush.bf16.msra.mxu1 %v6824_v9  ;;  %4893 = vmatmul.bf16.vlgmr.msrb.gmra.mxu2 %v11437_v20  ;;  %v6728_v9 = vor.u32 %v9788_v1, %v6725_v3  ;;  %v10052_v1 = vld [vmem:[%s15566_s1 + $0xa54] sm:$0xf] }
  0x86   :  { %4937 = vmatpush.bf16.msra.mxu2 %v7016_v10  ;;  %4906 = vmatmul.bf16.vlgmr.msrb.gmra.mxu3 %v11447_v26  ;;  %v6920_v10 = vor.u32 %v9836_v4, %v6917_v5  ;;  %v6848_v4 = vor.u32 %v9818_v55, %v6845_v57  ;;  %v10100_v5 = vld [vmem:[%s15566_s1 + $0xbd4] sm:$0xf]  ;;  %v7517_v55 = vld [vmem:[%s15566_s1 + $0x858] sm:$0xf0] }
  0x87   :  { %4950 = vmatpush.bf16.msra.mxu3 %v7208_v14  ;;  %v7112_v14 = vor.u32 %v9884_v6, %v7109_v7  ;;  %v7973_v6 = vld [vmem:[%s15566_s1 + $0xbe8] sm:$0xf0]  ;;  %v7040_v7 = vor.u32 %v9866_v58, %v7037_v59  ;;  %v7709_v57 = vld [vmem:[%s15566_s1 + $0x9d8] sm:$0xf0]  ;;  %v10082_v58 = vld [vmem:[%s15566_s1 + $0xb44] sm:$0xf] }
  0x88   :  { %4912 = vmatpush.bf16.msra.mxu0 %v6608_v28  ;;  %v6512_v28 = vor.u32 %v9734_v11, %v6509_v12  ;;  %v9950_v11 = vld [vmem:[%s15566_s1 + $0x724] sm:$0xf]  ;;  %v7373_v12 = vld [vmem:[%s15566_s1 + $0x738] sm:$0xf0] }
  0x89   :  { %4925 = vmatpush.bf16.msra.mxu1 %v6800_v29  ;;  %v6704_v29 = vor.u32 %v9782_v13, %v6701_v16  ;;  %v9998_v13 = vld [vmem:[%s15566_s1 + $0x8a4] sm:$0xf]  ;;  %v7565_v16 = vld [vmem:[%s15566_s1 + $0x8b8] sm:$0xf0] }
  0x8a   :  { %4938 = vmatpush.bf16.msra.mxu2 %v6992_v30  ;;  %v6896_v30 = vor.u32 %v9830_v17, %v6893_v18  ;;  %v10046_v17 = vld [vmem:[%s15566_s1 + $0xa24] sm:$0xf]  ;;  %v7757_v18 = vld [vmem:[%s15566_s1 + $0xa38] sm:$0xf0] }
  0x8b   :  { %4951 = vmatpush.bf16.msra.mxu3 %v7184_v37  ;;  %v7088_v37 = vor.u32 %v9878_v22, %v7085_v25  ;;  %v10094_v22 = vld [vmem:[%s15566_s1 + $0xba4] sm:$0xf]  ;;  %v7949_v25 = vld [vmem:[%s15566_s1 + $0xbb8] sm:$0xf0] }
  0x8c   :  { %4913 = vmatpush.bf16.msra.mxu0 %v6584_v48  ;;  %v6488_v48 = vor.u32 %v9728_v31, %v6485_v32  ;;  %v9944_v31 = vld [vmem:[%s15566_s1 + $0x6f4] sm:$0xf]  ;;  %v7349_v32 = vld [vmem:[%s15566_s1 + $0x708] sm:$0xf0]  ;;  %v7901_v59 = vld [vmem:[%s15566_s1 + $0xb58] sm:$0xf0] }
  0x8d   :  { %4926 = vmatpush.bf16.msra.mxu1 %v6776_v49  ;;  %v9722_v49 = vld [vmem:[%s15566_s1 + $0x4] sm:$0xf] }
  0x8e   :  { %4939 = vmatpush.bf16.msra.mxu2 %v6968_v50  ;;  %v6461_v50 = vld [vmem:[%s15566_s1 + $0x18] sm:$0xf0] }
  0x8f   :  { %4952 = vmatpush.bf16.msra.mxu3 %v7160_v54  ;;  %v6653_v54 = vld [vmem:[%s15566_s1 + $0x198] sm:$0xf0]  ;;  %v6464_v63 = vor.u32 %v9722_v49, %v6461_v50  ;;  %v7544_v49 = vor.u32 %v9992_v33, %v7541_v38  ;;  %v7736_v50 = vor.u32 %v10040_v41, %v7733_v45  ;;  %v7253_v33 = vld [vmem:[%s15566_s1 + $0x648] sm:$0xf0] }
  0x90   :  { %4914 = vmatpush.bf16.msra.mxu0 %v6560_v60  ;;  %v9956_v60 = vld [vmem:[%s15566_s1 + $0x754] sm:$0xf]  ;;  %v6656_v3 = vor.u32 %v9770_v53, %v6653_v54  ;;  %v9986_v53 = vld [vmem:[%s15566_s1 + $0x844] sm:$0xf]  ;;  %v7928_v54 = vor.u32 %v10088_v46, %v7925_v47  ;;  %v7445_v45 = vld [vmem:[%s15566_s1 + $0x7c8] sm:$0xf0] }
  0x91   :  { %4927 = vmatpush.bf16.msra.mxu1 %v6752_v61  ;;  %v7397_v61 = vld [vmem:[%s15566_s1 + $0x768] sm:$0xf0]  ;;  %v10016_v46 = vld [vmem:[%s15566_s1 + $0x934] sm:$0xf] }
  0x92   :  { %4940 = vmatpush.bf16.msra.mxu2 %v6944_v62  ;;  %v10004_v62 = vld [vmem:[%s15566_s1 + $0x8d4] sm:$0xf]  ;;  %v7637_v47 = vld [vmem:[%s15566_s1 + $0x948] sm:$0xf0] }
  0x93   :  { %4953 = vmatpush.bf16.msra.mxu3 %v7136_v2  ;;  %v7781_v2 = vld [vmem:[%s15566_s1 + $0xa68] sm:$0xf0] }
  0x94   :  { %4915 = vmatpush.bf16.msra.mxu0 %v6536_v8  ;;  %v7400_v8 = vor.u32 %v9956_v60, %v7397_v61  ;;  %v7520_v61 = vor.u32 %v9986_v53, %v7517_v55  ;;  %v7640_v55 = vor.u32 %v10016_v46, %v7637_v47 }
  0x95   :  { %4928 = vmatpush.bf16.msra.mxu1 %v6728_v9  ;;  %v7592_v9 = vor.u32 %v10004_v62, %v7589_v0  ;;  %v7301_v0 = vld [vmem:[%s15566_s1 + $0x6a8] sm:$0xf0] }
  0x96   :  { %4941 = vmatpush.bf16.msra.mxu2 %v6920_v10  ;;  %v7784_v10 = vor.u32 %v10052_v1, %v7781_v2  ;;  %v9980_v1 = vld [vmem:[%s15566_s1 + $0x814] sm:$0xf]  ;;  %v7904_v2 = vor.u32 %v10082_v58, %v7901_v59  ;;  %v10010_v58 = vld [vmem:[%s15566_s1 + $0x904] sm:$0xf] }
  0x97   :  { %4954 = vmatpush.bf16.msra.mxu3 %v7112_v14  ;;  %v7976_v14 = vor.u32 %v10100_v5, %v7973_v6  ;;  %v7685_v5 = vld [vmem:[%s15566_s1 + $0x9a8] sm:$0xf0]  ;;  %v10076_v6 = vld [vmem:[%s15566_s1 + $0xb14] sm:$0xf] }
  0x98   :  { %4916 = vmatpush.bf16.msra.mxu0 %v6512_v28  ;;  %v7376_v28 = vor.u32 %v9950_v11, %v7373_v12  ;;  %v7277_v12 = vld [vmem:[%s15566_s1 + $0x678] sm:$0xf0] }
  0x99   :  { %4929 = vmatpush.bf16.msra.mxu1 %v6704_v29  ;;  %v7568_v29 = vor.u32 %v9998_v13, %v7565_v16  ;;  %v9974_v13 = vld [vmem:[%s15566_s1 + $0x7e4] sm:$0xf] }
  0x9a   :  { %4942 = vmatpush.bf16.msra.mxu2 %v6896_v30  ;;  %v7760_v30 = vor.u32 %v10046_v17, %v7757_v18  ;;  %v10022_v17 = vld [vmem:[%s15566_s1 + $0x964] sm:$0xf]  ;;  %v7661_v18 = vld [vmem:[%s15566_s1 + $0x978] sm:$0xf0] }
  0x9b   :  { %4955 = vmatpush.bf16.msra.mxu3 %v7088_v37  ;;  %v7952_v37 = vor.u32 %v10094_v22, %v7949_v25  ;;  %v849_v22 = vld [vmem:[%s15568_s2] sm:$0x3f] }
  0x9c   :  { %4917 = vmatpush.bf16.msra.mxu0 %v6488_v48  ;;  %v7352_v48 = vor.u32 %v9944_v31, %v7349_v32  ;;  %v10070_v25 = vld [vmem:[%s15566_s1 + $0xae4] sm:$0xf]  ;;  %v7664_v32 = vor.u32 %v10022_v17, %v7661_v18  ;;  %v851_v38 = vperm.slane %v849_v22, 0 }
  0x9d   :  { %4930 = vmatpush.bf16.msra.mxu1 %v6680_v51  ;;  %v9938_v51 = vld [vmem:[%s15566_s1 + $0x6c4] sm:$0xf] }
  0x9e   :  { %4943 = vmatpush.bf16.msra.mxu2 %v6872_v52  ;;  %v7325_v52 = vld [vmem:[%s15566_s1 + $0x6d8] sm:$0xf0]  ;;  %v10142_v22 = vld [vmem:[%s15566_s1 + $0xd24] sm:$0xf] }
  0x9f   :  { %4956 = vmatpush.bf16.msra.mxu3 %v7064_v56  ;;  %v10034_v56 = vld [vmem:[%s15566_s1 + $0x9c4] sm:$0xf]  ;;  %v7328_v60 = vor.u32 %v9938_v51, %v7325_v52  ;;  %v7229_v52 = vld [vmem:[%s15566_s1 + $0x618] sm:$0xf0] }
  0xa0   :  { %4918 = vmatpush.bf16.msra.mxu0 %v6464_v63  ;;  %v7712_v62 = vor.u32 %v10034_v56, %v7709_v57  ;;  %v9932_v63 = vld [vmem:[%s15566_s1 + $0x694] sm:$0xf]  ;;  %v9914_v51 = vld [vmem:[%s15566_s1 + $0x604] sm:$0xf]  ;;  %v7421_v57 = vld [vmem:[%s15566_s1 + $0x798] sm:$0xf0] }
  0xa1   :  { %4931 = vmatpush.bf16.msra.mxu1 %v6656_v3  ;;  %v7493_v3 = vld [vmem:[%s15566_s1 + $0x828] sm:$0xf0]  ;;  %v9962_v56 = vld [vmem:[%s15566_s1 + $0x784] sm:$0xf] }
  0xa2   :  { %4944 = vmatpush.bf16.msra.mxu2 %v6848_v4  ;;  %v10028_v4 = vld [vmem:[%s15566_s1 + $0x994] sm:$0xf] }
  0xa3   :  { %4957 = vmatpush.bf16.msra.mxu3 %v7040_v7  ;;  %4919 = vmatmul.bf16.vlgmr.msra.gmra.mxu0 %v10909_v36  ;;  %v7877_v7 = vld [vmem:[%s15566_s1 + $0xb28] sm:$0xf0]  ;;  %v7688_v11 = vor.u32 %v10028_v4, %v7685_v5  ;;  %v7232_v4 = vor.u32 %v9914_v51, %v7229_v52  ;;  %v10184_v52 = vld [vmem:[%s15566_s1 + $0xe74] sm:$0xf] }
  0xa4   :  { %4963 = vmatpush.bf16.msrb.mxu0 %v7400_v8  ;;  %4932 = vmatmul.bf16.vlgmr.msra.gmra.mxu1 %v10919_v43  ;;  %v7304_v8 = vor.u32 %v9932_v63, %v7301_v0  ;;  %v7880_v16 = vor.u32 %v10076_v6, %v7877_v7  ;;  %v7805_v63 = vld [vmem:[%s15566_s1 + $0xa98] sm:$0xf0]  ;;  %v10148_v0 = vld [vmem:[%s15566_s1 + $0xd54] sm:$0xf]  ;;  %v8357_v5 = vld [vmem:[%s15566_s1 + $0xee8] sm:$0xf0] }
  0xa5   :  { %4976 = vmatpush.bf16.msrb.mxu1 %v7592_v9  ;;  %4945 = vmatmul.bf16.vlgmr.msra.gmra.mxu2 %v10907_v35  ;;  %v9926_v9 = vld [vmem:[%s15566_s1 + $0x664] sm:$0xf]  ;;  %v10244_v6 = vld [vmem:[%s15566_s1 + $0x1054] sm:$0xf]  ;;  %v8549_v7 = vld [vmem:[%s15566_s1 + $0x1068] sm:$0xf0] }
  0xa6   :  { %4989 = vmatpush.bf16.msrb.mxu2 %v7784_v10  ;;  %4958 = vmatmul.bf16.vlgmr.msra.gmra.mxu3 %v10917_v42  ;;  %v7496_v10 = vor.u32 %v9980_v1, %v7493_v3  ;;  %v8165_v1 = vld [vmem:[%s15566_s1 + $0xd68] sm:$0xf0]  ;;  %v8552_v18 = vor.u32 %v10244_v6, %v8549_v7  ;;  %v10226_v6 = vld [vmem:[%s15566_s1 + $0xfc4] sm:$0xf]  ;;  %v8477_v7 = vld [vmem:[%s15566_s1 + $0xfd8] sm:$0xf0] }
  0xa7   :  { %5002 = vmatpush.bf16.msrb.mxu3 %v7976_v14  ;;  %v7469_v14 = vld [vmem:[%s15566_s1 + $0x7f8] sm:$0xf0]  ;;  %v4712_v53 = vpop.f32.mrf.mxu0  ;;  %v8117_v51 = vld [vmem:[%s15566_s1 + $0xd08] sm:$0xf0] }
  0xa8   :  { %4964 = vmatpush.bf16.msrb.mxu0 %v7376_v28  ;;  %v7853_v28 = vld [vmem:[%s15566_s1 + $0xaf8] sm:$0xf0]  ;;  %v7472_v31 = vor.u32 %v9974_v13, %v7469_v14  ;;  %v4713_v59 = vadd.f32 %v4712_v53, %v851_v38  ;;  %v4725_v3 = vpop.f32.mrf.mxu1  ;;  %v8168_v14 = vor.u32 %v10148_v0, %v8165_v1  ;;  %v10130_v0 = vld [vmem:[%s15566_s1 + $0xcc4] sm:$0xf] }
  0xa9   :  { %4977 = vmatpush.bf16.msrb.mxu1 %v7568_v29  ;;  %v7280_v29 = vor.u32 %v9926_v9, %v7277_v12  ;;  %v7856_v41 = vor.u32 %v10070_v25, %v7853_v28  ;;  %v7424_v9 = vor.u32 %v9962_v56, %v7421_v57  ;;  %v8741_v12 = vld [vmem:[%s15566_s1 + $0x11e8] sm:$0xf0]  ;;  %v8141_v25 = vld [vmem:[%s15566_s1 + $0xd38] sm:$0xf0]  ;;  %v10190_v28 = vld [vmem:[%s15566_s1 + $0xea4] sm:$0xf] }
  0xaa   :  { %4990 = vmatpush.bf16.msrb.mxu2 %v7760_v30  ;;  %v9920_v30 = vld [vmem:[%s15566_s1 + $0x634] sm:$0xf]  ;;  %v8144_v47 = vor.u32 %v10142_v22, %v8141_v25  ;;  %v8501_v57 = vld [vmem:[%s15566_s1 + $0x1008] sm:$0xf0]  ;;  %v8093_v1 = vld [vmem:[%s15566_s1 + $0xcd8] sm:$0xf0] }
  0xab   :  { %5003 = vmatpush.bf16.msrb.mxu3 %v7952_v37  ;;  %v9968_v37 = vld [vmem:[%s15566_s1 + $0x7b4] sm:$0xf] }
  0xac   :  { %4965 = vmatpush.bf16.msrb.mxu0 %v7352_v48  ;;  %v10064_v48 = vld [vmem:[%s15566_s1 + $0xab4] sm:$0xf] }
  0xad   :  { %4978 = vmatpush.bf16.msrb.mxu1 %v7544_v49  ;;  %v7829_v49 = vld [vmem:[%s15566_s1 + $0xac8] sm:$0xf0]  ;;  %v10232_v56 = vld [vmem:[%s15566_s1 + $0xff4] sm:$0xf] }
  0xae   :  { %4991 = vmatpush.bf16.msrb.mxu2 %v7736_v50  ;;  %v7256_v50 = vor.u32 %v9920_v30, %v7253_v33  ;;  %v10238_v33 = vld [vmem:[%s15566_s1 + $0x1024] sm:$0xf] }
  0xaf   :  { %5004 = vmatpush.bf16.msrb.mxu3 %v7928_v54  ;;  %v7448_v54 = vor.u32 %v9968_v37, %v7445_v45  ;;  %v4751_v30 = vpop.f32.mrf.mxu3  ;;  %v8525_v37 = vld [vmem:[%s15566_s1 + $0x1038] sm:$0xf0]  ;;  %v4714_v38 = vpop.f32.mrf.mxu0 }
  0xb0   :  { %4966 = vmatpush.bf16.msrb.mxu0 %v7328_v60  ;;  %v7832_v60 = vor.u32 %v10064_v48, %v7829_v49  ;;  %v8717_v45 = vld [vmem:[%s15566_s1 + $0x11b8] sm:$0xf0]  ;;  %v8528_v49 = vor.u32 %v10238_v33, %v8525_v37  ;;  %v4727_v53 = vpop.f32.mrf.mxu1 }
  0xb1   :  { %4979 = vmatpush.bf16.msrb.mxu1 %v7520_v61  ;;  %v7613_v61 = vld [vmem:[%s15566_s1 + $0x918] sm:$0xf0] }
  0xb2   :  { %4992 = vmatpush.bf16.msrb.mxu2 %v7712_v62  ;;  %v10058_v62 = vld [vmem:[%s15566_s1 + $0xa84] sm:$0xf] }
  0xb3   :  { %5005 = vmatpush.bf16.msrb.mxu3 %v7904_v2  ;;  %v10196_v2 = vld [vmem:[%s15566_s1 + $0xed4] sm:$0xf]  ;;  %v7808_v13 = vor.u32 %v10058_v62, %v7805_v63  ;;  %v8504_v63 = vor.u32 %v10232_v56, %v8501_v57  ;;  %v8621_v56 = vld [vmem:[%s15566_s1 + $0x10f8] sm:$0xf0] }
  0xb4   :  { %4967 = vmatpush.bf16.msrb.mxu0 %v7304_v8  ;;  %v4726_v8 = vadd.f32 %v4725_v3, %v4713_v59  ;;  %v8360_v17 = vor.u32 %v10196_v2, %v8357_v5  ;;  %v8693_v59 = vld [vmem:[%s15566_s1 + $0x1188] sm:$0xf0]  ;;  %v10178_v2 = vld [vmem:[%s15566_s1 + $0xe44] sm:$0xf]  ;;  %v8285_v5 = vld [vmem:[%s15566_s1 + $0xe58] sm:$0xf0] }
  0xb5   :  { %4980 = vmatpush.bf16.msrb.mxu1 %v7496_v10  ;;  %v7616_v10 = vor.u32 %v10010_v58, %v7613_v61  ;;  %v10280_v58 = vld [vmem:[%s15566_s1 + $0x1174] sm:$0xf] }
  0xb6   :  { %4993 = vmatpush.bf16.msrb.mxu2 %v7688_v11  ;;  %v10292_v11 = vld [vmem:[%s15566_s1 + $0x11d4] sm:$0xf] }
  0xb7   :  { %5006 = vmatpush.bf16.msrb.mxu3 %v7880_v16  ;;  %v4738_v16 = vpop.f32.mrf.mxu2  ;;  %v4753_v3 = vpop.f32.mrf.mxu3 }
  0xb8   :  { %4968 = vmatpush.bf16.msrb.mxu0 %v7280_v29  ;;  %v4739_v29 = vadd.f32 %v4738_v16, %v4726_v8  ;;  %v10274_v8 = vld [vmem:[%s15566_s1 + $0x1144] sm:$0xf]  ;;  %v8069_v16 = vld [vmem:[%s15566_s1 + $0xca8] sm:$0xf0] }
  0xb9   :  { %4981 = vmatpush.bf16.msrb.mxu1 %v7472_v31  ;;  %v8744_v31 = vor.u32 %v10292_v11, %v8741_v12  ;;  %v8288_v12 = vor.u32 %v10178_v2, %v8285_v5  ;;  %v8213_v3 = vld [vmem:[%s15566_s1 + $0xdc8] sm:$0xf0] }
  0xba   :  { %4994 = vmatpush.bf16.msrb.mxu2 %v7664_v32  ;;  %v8333_v32 = vld [vmem:[%s15566_s1 + $0xeb8] sm:$0xf0]  ;;  %v4752_v46 = vadd.f32 %v4751_v30, %v4739_v29  ;;  %v10220_v29 = vld [vmem:[%s15566_s1 + $0xf94] sm:$0xf]  ;;  %v8453_v30 = vld [vmem:[%s15566_s1 + $0xfa8] sm:$0xf0] }
  0xbb   :  { %5007 = vmatpush.bf16.msrb.mxu3 %v7856_v41  ;;  %v10286_v41 = vld [vmem:[%s15566_s1 + $0x11a4] sm:$0xf]  ;;  %v8336_v48 = vor.u32 %v10190_v28, %v8333_v32  ;;  %v8261_v28 = vld [vmem:[%s15566_s1 + $0xe28] sm:$0xf0] }
  0xbc   :  { %4969 = vmatpush.bf16.msrb.mxu0 %v7256_v50  ;;  %v10136_v50 = vld [vmem:[%s15566_s1 + $0xcf4] sm:$0xf]  ;;  %v8645_v32 = vld [vmem:[%s15566_s1 + $0x1128] sm:$0xf0] }
  0xbd   :  { %4982 = vmatpush.bf16.msrb.mxu1 %v7448_v54  ;;  %v8720_v54 = vor.u32 %v10286_v41, %v8717_v45  ;;  %v8456_v41 = vor.u32 %v10220_v29, %v8453_v30  ;;  %v10118_v45 = vld [vmem:[%s15566_s1 + $0xc64] sm:$0xf]  ;;  %v8405_v5 = vld [vmem:[%s15566_s1 + $0xf48] sm:$0xf0]  ;;  %v10340_v30 = vld [vmem:[%s15566_s1 + $0x1354] sm:$0xf] }
  0xbe   :  { %4995 = vmatpush.bf16.msrb.mxu2 %v7640_v55  ;;  %v8309_v55 = vld [vmem:[%s15566_s1 + $0xe88] sm:$0xf0] }
  0xbf   :  { %5008 = vmatpush.bf16.msrb.mxu3 %v7832_v60  ;;  %v8120_v60 = vor.u32 %v10136_v50, %v8117_v51  ;;  %v4740_v61 = vpop.f32.mrf.mxu2  ;;  %v8312_v62 = vor.u32 %v10184_v52, %v8309_v55  ;;  %v8237_v50 = vld [vmem:[%s15566_s1 + $0xdf8] sm:$0xf0]  ;;  %v10214_v51 = vld [vmem:[%s15566_s1 + $0xf64] sm:$0xf] }
  0xc0   :  { %4970 = vmatpush.bf16.msrb.mxu0 %v7232_v4  ;;  %v8696_v4 = vor.u32 %v10280_v58, %v8693_v59  ;;  %v4764_v11 = vpop.f32.mrf.mxu0  ;;  %v8429_v52 = vld [vmem:[%s15566_s1 + $0xf78] sm:$0xf0]  ;;  %v10262_v55 = vld [vmem:[%s15566_s1 + $0x10e4] sm:$0xf] }
  0xc1   :  { %4983 = vmatpush.bf16.msrb.mxu1 %v7424_v9  ;;  %v8669_v9 = vld [vmem:[%s15566_s1 + $0x1158] sm:$0xf0]  ;;  %v4777_v22 = vpop.f32.mrf.mxu1  ;;  %v8432_v61 = vor.u32 %v10214_v51, %v8429_v52  ;;  %v8624_v2 = vor.u32 %v10262_v55, %v8621_v56  ;;  %v10382_v55 = vld [vmem:[%s15566_s1 + $0x14a4] sm:$0xf] }
  0xc2   :  { %4996 = vmatpush.bf16.msrb.mxu2 %v7616_v10  ;;  %v8096_v10 = vor.u32 %v10130_v0, %v8093_v1  ;;  %v8672_v25 = vor.u32 %v10274_v8, %v8669_v9  ;;  %v10160_v0 = vld [vmem:[%s15566_s1 + $0xdb4] sm:$0xf]  ;;  %v10106_v9 = vld [vmem:[%s15566_s1 + $0xc04] sm:$0xf] }
  0xc3   :  { %5009 = vmatpush.bf16.msrb.mxu3 %v7808_v13  ;;  %4971 = vmatmul.bf16.vlgmr.msrb.gmra.mxu0 %v11035_v39  ;;  %v8480_v13 = vor.u32 %v10226_v6, %v8477_v7  ;;  %v10256_v6 = vld [vmem:[%s15566_s1 + $0x10b4] sm:$0xf]  ;;  %v8597_v7 = vld [vmem:[%s15566_s1 + $0x10c8] sm:$0xf0] }
  0xc4   :  { %5015 = vmatpush.bf16.msra.mxu0 %v8168_v14  ;;  %4984 = vmatmul.bf16.vlgmr.msrb.gmra.mxu1 %v11039_v44  ;;  %v10124_v14 = vld [vmem:[%s15566_s1 + $0xc94] sm:$0xf] }
  0xc5   :  { %5028 = vmatpush.bf16.msra.mxu1 %v8360_v17  ;;  %4997 = vmatmul.bf16.vlgmr.msrb.gmra.mxu2 %v11027_v34  ;;  %v10172_v17 = vld [vmem:[%s15566_s1 + $0xe14] sm:$0xf]  ;;  %v8072_v37 = vor.u32 %v10124_v14, %v8069_v16  ;;  %v8189_v14 = vld [vmem:[%s15566_s1 + $0xd98] sm:$0xf0]  ;;  %v10202_v16 = vld [vmem:[%s15566_s1 + $0xf04] sm:$0xf] }
  0xc6   :  { %5041 = vmatpush.bf16.msra.mxu2 %v8552_v18  ;;  %5010 = vmatmul.bf16.vlgmr.msrb.gmra.mxu3 %v11037_v40  ;;  %v4765_v18 = vadd.f32 %v4764_v11, %v4752_v46  ;;  %v8264_v38 = vor.u32 %v10172_v17, %v8261_v28  ;;  %v8045_v46 = vld [vmem:[%s15566_s1 + $0xc78] sm:$0xf0]  ;;  %v8216_v11 = vor.u32 %v10160_v0, %v8213_v3  ;;  %v8885_v3 = vld [vmem:[%s15566_s1 + $0x1308] sm:$0xf0] }
  0xc7   :  { %5054 = vmatpush.bf16.msra.mxu3 %v8744_v31  ;;  %v10268_v31 = vld [vmem:[%s15566_s1 + $0x1114] sm:$0xf]  ;;  %v8048_v57 = vor.u32 %v10118_v45, %v8045_v46  ;;  %v8573_v28 = vld [vmem:[%s15566_s1 + $0x1098] sm:$0xf0] }
  0xc8   :  { %5016 = vmatpush.bf16.msra.mxu0 %v8144_v47  ;;  %v4778_v33 = vadd.f32 %v4777_v22, %v4765_v18  ;;  %v10166_v47 = vld [vmem:[%s15566_s1 + $0xde4] sm:$0xf]  ;;  %v4766_v59 = vpop.f32.mrf.mxu0  ;;  %v8600_v18 = vor.u32 %v10256_v6, %v8597_v7  ;;  %v8381_v22 = vld [vmem:[%s15566_s1 + $0xf18] sm:$0xf0]  ;;  %v9077_v6 = vld [vmem:[%s15566_s1 + $0x1488] sm:$0xf0] }
  0xc9   :  { %5029 = vmatpush.bf16.msra.mxu1 %v8336_v48  ;;  %v4790_v48 = vpop.f32.mrf.mxu2  ;;  %v4779_v1 = vpop.f32.mrf.mxu1  ;;  %v8384_v46 = vor.u32 %v10202_v16, %v8381_v22  ;;  %v10430_v59 = vld [vmem:[%s15566_s1 + $0x1624] sm:$0xf]  ;;  %v10424_v7 = vld [vmem:[%s15566_s1 + $0x15f4] sm:$0xf]  ;;  %v8861_v16 = vld [vmem:[%s15566_s1 + $0x12d8] sm:$0xf0] }
  0xca   :  { %5042 = vmatpush.bf16.msra.mxu2 %v8528_v49  ;;  %v8648_v49 = vor.u32 %v10268_v31, %v8645_v32  ;;  %v4791_v53 = vadd.f32 %v4790_v48, %v4778_v33  ;;  %v8933_v31 = vld [vmem:[%s15566_s1 + $0x1368] sm:$0xf0]  ;;  %v10388_v32 = vld [vmem:[%s15566_s1 + $0x14d4] sm:$0xf]  ;;  %v9053_v22 = vld [vmem:[%s15566_s1 + $0x1458] sm:$0xf0] }
  0xcb   :  { %5055 = vmatpush.bf16.msra.mxu3 %v8720_v54  ;;  %v4803_v54 = vpop.f32.mrf.mxu3  ;;  %v9509_v48 = vld [vmem:[%s15566_s1 + $0x17e8] sm:$0xf0] }
  0xcc   :  { %5017 = vmatpush.bf16.msra.mxu0 %v8120_v60  ;;  %v11944_v58 = vadd.f32 %v4803_v54, %v4791_v53  ;;  %v8240_v60 = vor.u32 %v10166_v47, %v8237_v50  ;;  %v10484_v47 = vld [vmem:[%s15566_s1 + $0x17d4] sm:$0xf]  ;;  %v8936_v50 = vor.u32 %v10340_v30, %v8933_v31  ;;  %v10334_v53 = vld [vmem:[%s15566_s1 + $0x1324] sm:$0xf]  ;;  %v8909_v54 = vld [vmem:[%s15566_s1 + $0x1338] sm:$0xf0] }
  0xcd   :  { %5030 = vmatpush.bf16.msra.mxu1 %v8312_v62  ;;  %v10112_v62 = vld [vmem:[%s15566_s1 + $0xc34] sm:$0xf]  ;;  %v9512_v56 = vor.u32 %v10484_v47, %v9509_v48  ;;  %v10466_v30 = vld [vmem:[%s15566_s1 + $0x1744] sm:$0xf]  ;;  %v9437_v31 = vld [vmem:[%s15566_s1 + $0x1758] sm:$0xf0] }
  0xce   :  { %5043 = vmatpush.bf16.msra.mxu2 %v8504_v63  ;;  %v8021_v63 = vld [vmem:[%s15566_s1 + $0xc48] sm:$0xf0]  ;;  %v10364_v47 = vld [vmem:[%s15566_s1 + $0x1414] sm:$0xf] }
  0xcf   :  { %5056 = vmatpush.bf16.msra.mxu3 %v8696_v4  ;;  %v10208_v4 = vld [vmem:[%s15566_s1 + $0xf34] sm:$0xf]  ;;  %v8024_v8 = vor.u32 %v10112_v62, %v8021_v63  ;;  %v9485_v62 = vld [vmem:[%s15566_s1 + $0x17b8] sm:$0xf0]  ;;  %v8912_v63 = vor.u32 %v10334_v53, %v8909_v54  ;;  %v9413_v53 = vld [vmem:[%s15566_s1 + $0x1728] sm:$0xf0] }
  0xd0   :  { %5018 = vmatpush.bf16.msra.mxu0 %v8096_v10  ;;  %v7997_v10 = vld [vmem:[%s15566_s1 + $0xc18] sm:$0xf0] }
  0xd1   :  { %5031 = vmatpush.bf16.msra.mxu1 %v8288_v12  ;;  %v8408_v12 = vor.u32 %v10208_v4, %v8405_v5  ;;  %v4792_v17 = vpop.f32.mrf.mxu2  ;;  %v8000_v33 = vor.u32 %v10106_v9, %v7997_v10  ;;  %v10376_v4 = vld [vmem:[%s15566_s1 + $0x1474] sm:$0xf]  ;;  %v9461_v10 = vld [vmem:[%s15566_s1 + $0x1788] sm:$0xf0] }
  0xd2   :  { %5044 = vmatpush.bf16.msra.mxu2 %v8480_v13  ;;  %v10154_v13 = vld [vmem:[%s15566_s1 + $0xd84] sm:$0xf]  ;;  %v10472_v9 = vld [vmem:[%s15566_s1 + $0x1774] sm:$0xf] }
  0xd3   :  { %5057 = vmatpush.bf16.msra.mxu3 %v8672_v25  ;;  %v10250_v25 = vld [vmem:[%s15566_s1 + $0x1084] sm:$0xf]  ;;  %v4805_v29 = vpop.f32.mrf.mxu3  ;;  %v8192_v45 = vor.u32 %v10154_v13, %v8189_v14 }
  0xd4   :  { %5019 = vmatpush.bf16.msra.mxu0 %v8072_v37  ;;  %v9125_v37 = vld [vmem:[%s15566_s1 + $0x14e8] sm:$0xf0]  ;;  %v10322_v14 = vld [vmem:[%s15566_s1 + $0x12c4] sm:$0xf] }
  0xd5   :  { %5032 = vmatpush.bf16.msra.mxu1 %v8264_v38  ;;  %v10436_v38 = vld [vmem:[%s15566_s1 + $0x1654] sm:$0xf]  ;;  %v9128_v51 = vor.u32 %v10388_v32, %v9125_v37  ;;  %v10370_v17 = vld [vmem:[%s15566_s1 + $0x1444] sm:$0xf] }
  0xd6   :  { %5045 = vmatpush.bf16.msra.mxu2 %v8456_v41  ;;  %v9317_v41 = vld [vmem:[%s15566_s1 + $0x1668] sm:$0xf0] }
  0xd7   :  { %5058 = vmatpush.bf16.msra.mxu3 %v8648_v49  ;;  %v8576_v49 = vor.u32 %v10250_v25, %v8573_v28  ;;  %v9320_v52 = vor.u32 %v10436_v38, %v9317_v41  ;;  %v10418_v25 = vld [vmem:[%s15566_s1 + $0x15c4] sm:$0xf]  ;;  %v9245_v28 = vld [vmem:[%s15566_s1 + $0x15d8] sm:$0xf0]  ;;  %v9056_v38 = vor.u32 %v10370_v17, %v9053_v22  ;;  %v8981_v17 = vld [vmem:[%s15566_s1 + $0x13c8] sm:$0xf0] }
  0xd8   :  { %5020 = vmatpush.bf16.msra.mxu0 %v8048_v57  ;;  %v9101_v57 = vld [vmem:[%s15566_s1 + $0x14b8] sm:$0xf0]  ;;  %v9248_v41 = vor.u32 %v10418_v25, %v9245_v28  ;;  %v9173_v22 = vld [vmem:[%s15566_s1 + $0x1548] sm:$0xf0]  ;;  %v10448_v25 = vld [vmem:[%s15566_s1 + $0x16b4] sm:$0xf] }
  0xd9   :  { %5033 = vmatpush.bf16.msra.mxu1 %v8240_v60  ;;  %v9293_v60 = vld [vmem:[%s15566_s1 + $0x1638] sm:$0xf0]  ;;  %v9104_v0 = vor.u32 %v10382_v55, %v9101_v57  ;;  %v10310_v57 = vld [vmem:[%s15566_s1 + $0x1264] sm:$0xf]  ;;  %v9365_v28 = vld [vmem:[%s15566_s1 + $0x16c8] sm:$0xf0] }
  0xda   :  { %5046 = vmatpush.bf16.msra.mxu2 %v8432_v61  ;;  %v10478_v61 = vld [vmem:[%s15566_s1 + $0x17a4] sm:$0xf]  ;;  %v9296_v1 = vor.u32 %v10430_v59, %v9293_v60  ;;  %v8813_v59 = vld [vmem:[%s15566_s1 + $0x1278] sm:$0xf0] }
  0xdb   :  { %5059 = vmatpush.bf16.msra.mxu3 %v8624_v2  ;;  %v10328_v2 = vld [vmem:[%s15566_s1 + $0x12f4] sm:$0xf]  ;;  %v9488_v5 = vor.u32 %v10478_v61, %v9485_v62  ;;  %v10358_v60 = vld [vmem:[%s15566_s1 + $0x13e4] sm:$0xf] }
  0xdc   :  { %5021 = vmatpush.bf16.msra.mxu0 %v8024_v8  ;;  %v9269_v8 = vld [vmem:[%s15566_s1 + $0x1608] sm:$0xf0] }
  0xdd   :  { %5034 = vmatpush.bf16.msra.mxu1 %v8216_v11  ;;  %v8888_v11 = vor.u32 %v10328_v2, %v8885_v3  ;;  %v9272_v13 = vor.u32 %v10424_v7, %v9269_v8  ;;  %v8816_v7 = vor.u32 %v10310_v57, %v8813_v59 }
  0xde   :  { %5047 = vmatpush.bf16.msra.mxu2 %v8408_v12  ;;  %v9080_v12 = vor.u32 %v10376_v4, %v9077_v6  ;;  %v10454_v4 = vld [vmem:[%s15566_s1 + $0x16e4] sm:$0xf] }
  0xdf   :  { %5060 = vmatpush.bf16.msra.mxu3 %v8600_v18  ;;  %v9464_v18 = vor.u32 %v10472_v9, %v9461_v10 }
  0xe0   :  { %5022 = vmatpush.bf16.msra.mxu0 %v8000_v33  ;;  %v4816_v29 = vpop.f32.mrf.mxu0  ;;  %v8864_v33 = vor.u32 %v10322_v14, %v8861_v16  ;;  %v10352_v14 = vld [vmem:[%s15566_s1 + $0x13b4] sm:$0xf] }
  0xe1   :  { %5035 = vmatpush.bf16.msra.mxu1 %v8192_v45  ;;  %v4817_v32 = vadd.f32 %v4816_v29, %v11944_v58  ;;  %v4829_v37 = vpop.f32.mrf.mxu1  ;;  %v10316_v45 = vld [vmem:[%s15566_s1 + $0x1294] sm:$0xf]  ;;  %v9440_v58 = vor.u32 %v10466_v30, %v9437_v31  ;;  %v10298_v30 = vld [vmem:[%s15566_s1 + $0x1204] sm:$0xf]  ;;  %v8765_v31 = vld [vmem:[%s15566_s1 + $0x1218] sm:$0xf0] }
  0xe2   :  { %5048 = vmatpush.bf16.msra.mxu2 %v8384_v46  ;;  %v8837_v46 = vld [vmem:[%s15566_s1 + $0x12a8] sm:$0xf0] }
  0xe3   :  { %5061 = vmatpush.bf16.msra.mxu3 %v8576_v49  ;;  %5023 = vmatmul.bf16.vlgmr.msra.gmra.mxu0 %v11222_v19  ;;  %v4830_v48 = vadd.f32 %v4829_v37, %v4817_v32  ;;  %v9029_v49 = vld [vmem:[%s15566_s1 + $0x1428] sm:$0xf0]  ;;  %v8840_v54 = vor.u32 %v10316_v45, %v8837_v46  ;;  %v8984_v32 = vor.u32 %v10352_v14, %v8981_v17  ;;  %v10346_v37 = vld [vmem:[%s15566_s1 + $0x1384] sm:$0xf]  ;;  %v9149_v46 = vld [vmem:[%s15566_s1 + $0x1518] sm:$0xf0] }
  0xe4   :  { %5067 = vmatpush.bf16.msrb.mxu0 %v8936_v50  ;;  %5036 = vmatmul.bf16.vlgmr.msra.gmra.mxu1 %v11235_v24  ;;  %v10412_v50 = vld [vmem:[%s15566_s1 + $0x1594] sm:$0xf]  ;;  %v9032_v55 = vor.u32 %v10364_v47, %v9029_v49  ;;  %v9368_v45 = vor.u32 %v10448_v25, %v9365_v28  ;;  %v10442_v47 = vld [vmem:[%s15566_s1 + $0x1684] sm:$0xf]  ;;  %v6635_v49 = vld [vmem:[%s15566_s1 + $0x158] sm:$0xf] }
  0xe5   :  { %5080 = vmatpush.bf16.msrb.mxu1 %v9128_v51  ;;  %5049 = vmatmul.bf16.vlgmr.msra.gmra.mxu2 %v11233_v23  ;;  %v9221_v51 = vld [vmem:[%s15566_s1 + $0x15a8] sm:$0xf0]  ;;  %v9756_v17 = vld [vmem:[%s15566_s1 + $0x10c] sm:$0xf0]  ;;  %v6971_v28 = vld [vmem:[%s15566_s1 + $0x3f8] sm:$0xf] }
  0xe6   :  { %5093 = vmatpush.bf16.msrb.mxu2 %v9320_v52  ;;  %5062 = vmatmul.bf16.vlgmr.msra.gmra.mxu3 %v11243_v27  ;;  %v10460_v52 = vld [vmem:[%s15566_s1 + $0x1714] sm:$0xf]  ;;  %v9804_v25 = vld [vmem:[%s15566_s1 + $0x28c] sm:$0xf0] }
  0xe7   :  { %5106 = vmatpush.bf16.msrb.mxu3 %v9512_v56  ;;  %v9224_v56 = vor.u32 %v10412_v50, %v9221_v51  ;;  %v9416_v61 = vor.u32 %v10460_v52, %v9413_v53  ;;  %v9768_v50 = vld [vmem:[%s15566_s1 + $0x16c] sm:$0xf0]  ;;  %v6827_v51 = vld [vmem:[%s15566_s1 + $0x2d8] sm:$0xf]  ;;  %v8768_v53 = vor.u32 %v10298_v30, %v8765_v31 }
  0xe8   :  { %5068 = vmatpush.bf16.msrb.mxu0 %v8912_v63  ;;  %v4842_v62 = vpop.f32.mrf.mxu2  ;;  %v9005_v63 = vld [vmem:[%s15566_s1 + $0x13f8] sm:$0xf0]  ;;  %v4818_v6 = vpop.f32.mrf.mxu0  ;;  %v7163_v30 = vld [vmem:[%s15566_s1 + $0x578] sm:$0xf]  ;;  %v9900_v31 = vld [vmem:[%s15566_s1 + $0x58c] sm:$0xf0] }
  0xe9   :  { %5081 = vmatpush.bf16.msrb.mxu1 %v9104_v0  ;;  %v10406_v0 = vld [vmem:[%s15566_s1 + $0x1564] sm:$0xf]  ;;  %v4843_v2 = vadd.f32 %v4842_v62, %v4830_v48  ;;  %v4855_v3 = vpop.f32.mrf.mxu3  ;;  %v4831_v8 = vpop.f32.mrf.mxu1  ;;  %v9008_v10 = vor.u32 %v10358_v60, %v9005_v63  ;;  %v7211_v60 = vld [vmem:[%s15566_s1 + $0x5d8] sm:$0xf]  ;;  %v6636_v63 = vor.u32 %v9768_v50, %v6635_v49  ;;  %v9810_v6 = vld [vmem:[%s15566_s1 + $0x2bc] sm:$0xf0] }
  0xea   :  { %5094 = vmatpush.bf16.msrb.mxu2 %v9296_v1  ;;  %v9197_v1 = vld [vmem:[%s15566_s1 + $0x1578] sm:$0xf0]  ;;  %v9858_v8 = vld [vmem:[%s15566_s1 + $0x43c] sm:$0xf0]  ;;  %v7139_v50 = vld [vmem:[%s15566_s1 + $0x548] sm:$0xf] }
  0xeb   :  { %5107 = vmatpush.bf16.msrb.mxu3 %v9488_v5  ;;  %v9389_v5 = vld [vmem:[%s15566_s1 + $0x16f8] sm:$0xf0]  ;;  %v12143_v9 = vadd.f32 %v4855_v3, %v4843_v2  ;;  %v6611_v2 = vld [vmem:[%s15566_s1 + $0x128] sm:$0xf]  ;;  %v9762_v3 = vld [vmem:[%s15566_s1 + $0x13c] sm:$0xf0] }
  0xec   :  { %5069 = vmatpush.bf16.msrb.mxu0 %v8888_v11  ;;  %v9200_v11 = vor.u32 %v10406_v0, %v9197_v1  ;;  %v9392_v16 = vor.u32 %v10454_v4, %v9389_v5  ;;  %v6803_v4 = vld [vmem:[%s15566_s1 + $0x2a8] sm:$0xf] }
  0xed   :  { %5082 = vmatpush.bf16.msrb.mxu1 %v9080_v12  ;;  %v10304_v12 = vld [vmem:[%s15566_s1 + $0x1234] sm:$0xf] }
  0xee   :  { %5095 = vmatpush.bf16.msrb.mxu2 %v9272_v13  ;;  %v8789_v13 = vld [vmem:[%s15566_s1 + $0x1248] sm:$0xf0] }
  0xef   :  { %5108 = vmatpush.bf16.msrb.mxu3 %v9464_v18  ;;  %v10400_v18 = vld [vmem:[%s15566_s1 + $0x1534] sm:$0xf]  ;;  %v8792_v29 = vor.u32 %v10304_v12, %v8789_v13  ;;  %v6612_v12 = vor.u32 %v9762_v3, %v6611_v2  ;;  %v6804_v13 = vor.u32 %v9810_v6, %v6803_v4  ;;  %v9888_v2 = vld [vmem:[%s15566_s1 + $0x52c] sm:$0xf0]  ;;  %v6515_v6 = vld [vmem:[%s15566_s1 + $0x68] sm:$0xf] }
  0xf0   :  { %5070 = vmatpush.bf16.msrb.mxu0 %v8864_v33  ;;  %v9176_v33 = vor.u32 %v10400_v18, %v9173_v22  ;;  %v4844_v48 = vpop.f32.mrf.mxu2  ;;  %v6779_v18 = vld [vmem:[%s15566_s1 + $0x278] sm:$0xf] }
  0xf1   :  { %5083 = vmatpush.bf16.msrb.mxu1 %v9056_v38  ;;  %v8957_v38 = vld [vmem:[%s15566_s1 + $0x1398] sm:$0xf0]  ;;  %v4857_v52 = vpop.f32.mrf.mxu3  ;;  %v9846_v48 = vld [vmem:[%s15566_s1 + $0x3dc] sm:$0xf0] }
  0xf2   :  { %5096 = vmatpush.bf16.msrb.mxu2 %v9248_v41  ;;  %v10394_v41 = vld [vmem:[%s15566_s1 + $0x1504] sm:$0xf]  ;;  %v8960_v57 = vor.u32 %v10346_v37, %v8957_v38  ;;  %v6563_v38 = vld [vmem:[%s15566_s1 + $0xc8] sm:$0xf] }
  0xf3   :  { %5109 = vmatpush.bf16.msrb.mxu3 %v9440_v58  ;;  %v9341_v58 = vld [vmem:[%s15566_s1 + $0x1698] sm:$0xf0]  ;;  %v9152_v59 = vor.u32 %v10394_v41, %v9149_v46  ;;  %v9750_v41 = vld [vmem:[%s15566_s1 + $0xdc] sm:$0xf0]  ;;  %v7164_v46 = vor.u32 %v9900_v31, %v7163_v30 }
  0xf4   :  { %5071 = vmatpush.bf16.msrb.mxu0 %v8840_v54  ;;  %v9816_v54 = vld [vmem:[%s15566_s1 + $0x2ec] sm:$0xf0]  ;;  %v9344_v62 = vor.u32 %v10442_v47, %v9341_v58  ;;  %v9798_v47 = vld [vmem:[%s15566_s1 + $0x25c] sm:$0xf0]  ;;  %v6947_v58 = vld [vmem:[%s15566_s1 + $0x3c8] sm:$0xf] }
  0xf5   :  { %5084 = vmatpush.bf16.msrb.mxu1 %v9032_v55  ;;  %v7019_v55 = vld [vmem:[%s15566_s1 + $0x458] sm:$0xf]  ;;  %v6828_v0 = vor.u32 %v9816_v54, %v6827_v51  ;;  %v9894_v51 = vld [vmem:[%s15566_s1 + $0x55c] sm:$0xf0] }
  0xf6   :  { %5097 = vmatpush.bf16.msrb.mxu2 %v9224_v56  ;;  %v9864_v56 = vld [vmem:[%s15566_s1 + $0x46c] sm:$0xf0] }
  0xf7   :  { %5110 = vmatpush.bf16.msrb.mxu3 %v9416_v61  ;;  %v9912_v61 = vld [vmem:[%s15566_s1 + $0x5ec] sm:$0xf0]  ;;  %v7020_v1 = vor.u32 %v9864_v56, %v7019_v55  ;;  %v6948_v56 = vor.u32 %v9846_v48, %v6947_v58  ;;  %v7067_v58 = vld [vmem:[%s15566_s1 + $0x4b8] sm:$0xf] }
  0xf8   :  { %5072 = vmatpush.bf16.msrb.mxu0 %v8816_v7  ;;  %v7212_v5 = vor.u32 %v9912_v61, %v7211_v60  ;;  %v6995_v7 = vld [vmem:[%s15566_s1 + $0x428] sm:$0xf]  ;;  %v6731_v60 = vld [vmem:[%s15566_s1 + $0x218] sm:$0xf]  ;;  %v9876_v48 = vld [vmem:[%s15566_s1 + $0x4cc] sm:$0xf0] }
  0xf9   :  { %5085 = vmatpush.bf16.msrb.mxu1 %v9008_v10  ;;  %v7187_v10 = vld [vmem:[%s15566_s1 + $0x5a8] sm:$0xf]  ;;  %v6996_v14 = vor.u32 %v9858_v8, %v6995_v7  ;;  %v9738_v7 = vld [vmem:[%s15566_s1 + $0x7c] sm:$0xf0] }
  0xfa   :  { %5098 = vmatpush.bf16.msrb.mxu2 %v9200_v11  ;;  %v9906_v11 = vld [vmem:[%s15566_s1 + $0x5bc] sm:$0xf0]  ;;  %v6707_v8 = vld [vmem:[%s15566_s1 + $0x1e8] sm:$0xf] }
  0xfb   :  { %5111 = vmatpush.bf16.msrb.mxu3 %v9392_v16  ;;  %v6587_v16 = vld [vmem:[%s15566_s1 + $0xf8] sm:$0xf]  ;;  %v7188_v22 = vor.u32 %v9906_v11, %v7187_v10 }
  0xfc   :  { %5073 = vmatpush.bf16.msrb.mxu0 %v8792_v29  ;;  %v9852_v29 = vld [vmem:[%s15566_s1 + $0x40c] sm:$0xf0] }
  0xfd   :  { %5086 = vmatpush.bf16.msrb.mxu1 %v8984_v32  ;;  %v6588_v32 = vor.u32 %v9756_v17, %v6587_v16  ;;  %v6972_v37 = vor.u32 %v9852_v29, %v6971_v28  ;;  %v6516_v28 = vor.u32 %v9738_v7, %v6515_v6 }
  0xfe   :  { %5099 = vmatpush.bf16.msrb.mxu2 %v9176_v33  ;;  %v6780_v33 = vor.u32 %v9804_v25, %v6779_v18  ;;  %v7091_v18 = vld [vmem:[%s15566_s1 + $0x4e8] sm:$0xf] }
  0xff   :  { %5112 = vmatpush.bf16.msrb.mxu3 %v9368_v45  ;;  %v6755_v45 = vld [vmem:[%s15566_s1 + $0x248] sm:$0xf] }
 0x100   :  { %5074 = vmatpush.bf16.msrb.mxu0 %v8768_v53  ;;  %v4868_v49 = vpop.f32.mrf.mxu0  ;;  %v6564_v53 = vor.u32 %v9750_v41, %v6563_v38  ;;  %v6756_v55 = vor.u32 %v9798_v47, %v6755_v45  ;;  %v6683_v38 = vld [vmem:[%s15566_s1 + $0x1b8] sm:$0xf]  ;;  %v9780_v45 = vld [vmem:[%s15566_s1 + $0x1cc] sm:$0xf0] }
 0x101   :  { %5087 = vmatpush.bf16.msrb.mxu1 %v8960_v57  ;;  %v4869_v52 = vadd.f32 %v4868_v49, %v12143_v9  ;;  %v4881_v54 = vpop.f32.mrf.mxu1  ;;  %v6539_v57 = vld [vmem:[%s15566_s1 + $0x98] sm:$0xf]  ;;  %v7140_v9 = vor.u32 %v9894_v51, %v7139_v50  ;;  %v9828_v47 = vld [vmem:[%s15566_s1 + $0x34c] sm:$0xf0]  ;;  %v6467_v50 = vld [vmem:[%s15566_s1 + $0x8] sm:$0xf] }
 0x102   :  { %5100 = vmatpush.bf16.msrb.mxu2 %v9152_v59  ;;  %v9744_v59 = vld [vmem:[%s15566_s1 + $0xac] sm:$0xf0]  ;;  %v9726_v51 = vld [vmem:[%s15566_s1 + $0x1c] sm:$0xf0] }
 0x103   :  { %5113 = vmatpush.bf16.msrb.mxu3 %v9344_v62  ;;  %5075 = vmatmul.bf16.vlgmr.msrb.gmra.mxu0 %v11426_v15  ;;  %v4882_v61 = vadd.f32 %v4881_v54, %v4869_v52  ;;  %v9792_v62 = vld [vmem:[%s15566_s1 + $0x22c] sm:$0xf0]  ;;  %v6540_v3 = vor.u32 %v9744_v59, %v6539_v57  ;;  %v6684_v52 = vor.u32 %v9780_v45, %v6683_v38  ;;  %v6659_v54 = vld [vmem:[%s15566_s1 + $0x188] sm:$0xf]  ;;  %v9822_v59 = vld [vmem:[%s15566_s1 + $0x31c] sm:$0xf0] }
 0x104   :  { %5119 = vmatpush.bf16.msra.mxu0 %v6636_v63  ;;  %5088 = vmatmul.bf16.vlgmr.msrb.gmra.mxu1 %v11439_v21  ;;  %v6923_v63 = vld [vmem:[%s15566_s1 + $0x398] sm:$0xf]  ;;  %v6732_v4 = vor.u32 %v9792_v62, %v6731_v60  ;;  %v7068_v57 = vor.u32 %v9876_v48, %v7067_v58  ;;  %v7043_v60 = vld [vmem:[%s15566_s1 + $0x488] sm:$0xf]  ;;  %v9948_v45 = vld [vmem:[%s15566_s1 + $0x70c] sm:$0xf0] }
 0x105   :  { %5132 = vmatpush.bf16.msra.mxu1 %v6828_v0  ;;  %5101 = vmatmul.bf16.vlgmr.msrb.gmra.mxu2 %v11437_v20  ;;  %v9840_v0 = vld [vmem:[%s15566_s1 + $0x3ac] sm:$0xf0]  ;;  %v7403_v62 = vld [vmem:[%s15566_s1 + $0x758] sm:$0xf] }
 0x106   :  { %5145 = vmatpush.bf16.msra.mxu2 %v7020_v1  ;;  %5114 = vmatmul.bf16.vlgmr.msrb.gmra.mxu3 %v11447_v26  ;;  %v7115_v1 = vld [vmem:[%s15566_s1 + $0x518] sm:$0xf]  ;;  %v9996_v58 = vld [vmem:[%s15566_s1 + $0x88c] sm:$0xf0] }
 0x107   :  { %5158 = vmatpush.bf16.msra.mxu3 %v7212_v5  ;;  %v6924_v5 = vor.u32 %v9840_v0, %v6923_v63  ;;  %v7116_v10 = vor.u32 %v9888_v2, %v7115_v1  ;;  %v9960_v63 = vld [vmem:[%s15566_s1 + $0x76c] sm:$0xf0]  ;;  %v7595_v0 = vld [vmem:[%s15566_s1 + $0x8d8] sm:$0xf]  ;;  %v6468_v2 = vor.u32 %v9726_v51, %v6467_v50 }
 0x108   :  { %5120 = vmatpush.bf16.msra.mxu0 %v6612_v12  ;;  %v4894_v11 = vpop.f32.mrf.mxu2  ;;  %v9786_v12 = vld [vmem:[%s15566_s1 + $0x1fc] sm:$0xf0]  ;;  %v4870_v25 = vpop.f32.mrf.mxu0  ;;  %v7739_v48 = vld [vmem:[%s15566_s1 + $0x9f8] sm:$0xf]  ;;  %v10092_v51 = vld [vmem:[%s15566_s1 + $0xb8c] sm:$0xf0] }
 0x109   :  { %5133 = vmatpush.bf16.msra.mxu1 %v6804_v13  ;;  %v6899_v13 = vld [vmem:[%s15566_s1 + $0x368] sm:$0xf]  ;;  %v4895_v16 = vadd.f32 %v4894_v11, %v4882_v61  ;;  %v4907_v17 = vpop.f32.mrf.mxu3  ;;  %v4883_v29 = vpop.f32.mrf.mxu1  ;;  %v6708_v31 = vor.u32 %v9786_v12, %v6707_v8  ;;  %v7979_v8 = vld [vmem:[%s15566_s1 + $0xbd8] sm:$0xf]  ;;  %v7404_v12 = vor.u32 %v9960_v63, %v7403_v62  ;;  %v10002_v25 = vld [vmem:[%s15566_s1 + $0x8bc] sm:$0xf0] }
 0x10a   :  { %5146 = vmatpush.bf16.msra.mxu2 %v6996_v14  ;;  %v9834_v14 = vld [vmem:[%s15566_s1 + $0x37c] sm:$0xf0]  ;;  %v7931_v50 = vld [vmem:[%s15566_s1 + $0xb78] sm:$0xf]  ;;  %v7715_v62 = vld [vmem:[%s15566_s1 + $0x9c8] sm:$0xf] }
 0x10b   :  { %5159 = vmatpush.bf16.msra.mxu3 %v7188_v22  ;;  %v9882_v22 = vld [vmem:[%s15566_s1 + $0x4fc] sm:$0xf0]  ;;  %v12342_v30 = vadd.f32 %v4907_v17, %v4895_v16  ;;  %v7379_v16 = vld [vmem:[%s15566_s1 + $0x728] sm:$0xf] }
 0x10c   :  { %5121 = vmatpush.bf16.msra.mxu0 %v6588_v32  ;;  %v6900_v32 = vor.u32 %v9834_v14, %v6899_v13  ;;  %v7092_v41 = vor.u32 %v9882_v22, %v7091_v18  ;;  %v9954_v17 = vld [vmem:[%s15566_s1 + $0x73c] sm:$0xf0]  ;;  %v7571_v18 = vld [vmem:[%s15566_s1 + $0x8a8] sm:$0xf] }
 0x10d   :  { %5134 = vmatpush.bf16.msra.mxu1 %v6780_v33  ;;  %v6491_v33 = vld [vmem:[%s15566_s1 + $0x38] sm:$0xf]  ;;  %v10050_v29 = vld [vmem:[%s15566_s1 + $0xa3c] sm:$0xf0] }
 0x10e   :  { %5147 = vmatpush.bf16.msra.mxu2 %v6972_v37  ;;  %v9732_v37 = vld [vmem:[%s15566_s1 + $0x4c] sm:$0xf0]  ;;  %v10038_v63 = vld [vmem:[%s15566_s1 + $0x9dc] sm:$0xf0] }
 0x10f   :  { %5160 = vmatpush.bf16.msra.mxu3 %v7164_v46  ;;  %v6875_v46 = vld [vmem:[%s15566_s1 + $0x338] sm:$0xf]  ;;  %v6492_v49 = vor.u32 %v9732_v37, %v6491_v33  ;;  %v7380_v33 = vor.u32 %v9954_v17, %v7379_v16  ;;  %v7572_v37 = vor.u32 %v10002_v25, %v7571_v18  ;;  %v10032_v16 = vld [vmem:[%s15566_s1 + $0x9ac] sm:$0xf0] }
 0x110   :  { %5122 = vmatpush.bf16.msra.mxu0 %v6564_v53  ;;  %v6876_v53 = vor.u32 %v9828_v47, %v6875_v46  ;;  %v4896_v61 = vpop.f32.mrf.mxu2  ;;  %v7547_v46 = vld [vmem:[%s15566_s1 + $0x878] sm:$0xf]  ;;  %v10080_v18 = vld [vmem:[%s15566_s1 + $0xb2c] sm:$0xf0] }
 0x111   :  { %5135 = vmatpush.bf16.msra.mxu1 %v6756_v55  ;;  %v9774_v55 = vld [vmem:[%s15566_s1 + $0x19c] sm:$0xf0]  ;;  %v4909_v1 = vpop.f32.mrf.mxu3  ;;  %v7883_v17 = vld [vmem:[%s15566_s1 + $0xb18] sm:$0xf] }
 0x112   :  { %5148 = vmatpush.bf16.msra.mxu2 %v6948_v56  ;;  %v6851_v56 = vld [vmem:[%s15566_s1 + $0x308] sm:$0xf]  ;;  %v6660_v6 = vor.u32 %v9774_v55, %v6659_v54  ;;  %v7548_v54 = vor.u32 %v9996_v58, %v7547_v46  ;;  %v9990_v61 = vld [vmem:[%s15566_s1 + $0x85c] sm:$0xf0] }
 0x113   :  { %5161 = vmatpush.bf16.msra.mxu3 %v7140_v9  ;;  %v9870_v9 = vld [vmem:[%s15566_s1 + $0x49c] sm:$0xf0]  ;;  %v6852_v7 = vor.u32 %v9822_v59, %v6851_v56 }
 0x114   :  { %5123 = vmatpush.bf16.msra.mxu0 %v6540_v3  ;;  %v10008_v3 = vld [vmem:[%s15566_s1 + $0x8ec] sm:$0xf0]  ;;  %v7044_v11 = vor.u32 %v9870_v9, %v7043_v60  ;;  %v9942_v56 = vld [vmem:[%s15566_s1 + $0x6dc] sm:$0xf0]  ;;  %v7932_v9 = vor.u32 %v10092_v51, %v7931_v50 }
 0x115   :  { %5136 = vmatpush.bf16.msra.mxu1 %v6732_v4  ;;  %v7787_v4 = vld [vmem:[%s15566_s1 + $0xa58] sm:$0xf]  ;;  %v7596_v13 = vor.u32 %v10008_v3, %v7595_v0  ;;  %v10543_v59 = vld [vmem:[%s15568_s2] sm:$0x3f]  ;;  %v7907_v0 = vld [vmem:[%s15566_s1 + $0xb48] sm:$0xf] }
 0x116   :  { %5149 = vmatpush.bf16.msra.mxu2 %v6924_v5  ;;  %v10056_v5 = vld [vmem:[%s15566_s1 + $0xa6c] sm:$0xf0]  ;;  %v852_v60 = vperm.slane %v10543_v59, 1  ;;  %v10086_v1 = vld [vmem:[%s15566_s1 + $0xb5c] sm:$0xf0] }
 0x117   :  { %5162 = vmatpush.bf16.msra.mxu3 %v7116_v10  ;;  %v10104_v10 = vld [vmem:[%s15566_s1 + $0xbec] sm:$0xf0]  ;;  %v7788_v14 = vor.u32 %v10056_v5, %v7787_v4  ;;  %v7716_v5 = vor.u32 %v10038_v63, %v7715_v62  ;;  %v10026_v46 = vld [vmem:[%s15566_s1 + $0x97c] sm:$0xf0]  ;;  %v7835_v63 = vld [vmem:[%s15566_s1 + $0xab8] sm:$0xf] }
 0x118   :  { %5124 = vmatpush.bf16.msra.mxu0 %v6516_v28  ;;  %v7980_v22 = vor.u32 %v10104_v10, %v7979_v8  ;;  %v7763_v28 = vld [vmem:[%s15566_s1 + $0xa28] sm:$0xf]  ;;  %v7499_v8 = vld [vmem:[%s15566_s1 + $0x818] sm:$0xf]  ;;  %v10020_v62 = vld [vmem:[%s15566_s1 + $0x94c] sm:$0xf0] }
 0x119   :  { %5137 = vmatpush.bf16.msra.mxu1 %v6708_v31  ;;  %v7955_v31 = vld [vmem:[%s15566_s1 + $0xba8] sm:$0xf]  ;;  %v7764_v38 = vor.u32 %v10050_v29, %v7763_v28 }
 0x11a   :  { %5150 = vmatpush.bf16.msra.mxu2 %v6900_v32  ;;  %v10098_v32 = vld [vmem:[%s15566_s1 + $0xbbc] sm:$0xf0] }
 0x11b   :  { %5163 = vmatpush.bf16.msra.mxu3 %v7092_v41  ;;  %v7355_v41 = vld [vmem:[%s15566_s1 + $0x6f8] sm:$0xf]  ;;  %v7956_v47 = vor.u32 %v10098_v32, %v7955_v31  ;;  %v7283_v31 = vld [vmem:[%s15566_s1 + $0x668] sm:$0xf]  ;;  %v9930_v32 = vld [vmem:[%s15566_s1 + $0x67c] sm:$0xf0] }
 0x11c   :  { %5125 = vmatpush.bf16.msra.mxu0 %v6492_v49  ;;  %v10044_v49 = vld [vmem:[%s15566_s1 + $0xa0c] sm:$0xf0]  ;;  %v7284_v50 = vor.u32 %v9930_v32, %v7283_v31 }
 0x11d   :  { %5138 = vmatpush.bf16.msra.mxu1 %v6684_v52  ;;  %v7356_v52 = vor.u32 %v9948_v45, %v7355_v41  ;;  %v7740_v55 = vor.u32 %v10044_v49, %v7739_v48  ;;  %v9978_v41 = vld [vmem:[%s15566_s1 + $0x7fc] sm:$0xf0]  ;;  %v7667_v45 = vld [vmem:[%s15566_s1 + $0x968] sm:$0xf]  ;;  %v10248_v31 = vld [vmem:[%s15566_s1 + $0x106c] sm:$0xf0] }
 0x11e   :  { %5151 = vmatpush.bf16.msra.mxu2 %v6876_v53  ;;  %v7331_v53 = vld [vmem:[%s15566_s1 + $0x6c8] sm:$0xf]  ;;  %v10074_v49 = vld [vmem:[%s15566_s1 + $0xafc] sm:$0xf0] }
 0x11f   :  { %5164 = vmatpush.bf16.msra.mxu3 %v7068_v57  ;;  %v7523_v57 = vld [vmem:[%s15566_s1 + $0x848] sm:$0xf] }
 0x120   :  { %5126 = vmatpush.bf16.msra.mxu0 %v6468_v2  ;;  %v7332_v2 = vor.u32 %v9942_v56, %v7331_v53  ;;  %v4920_v3 = vpop.f32.mrf.mxu0  ;;  %v7524_v4 = vor.u32 %v9990_v61, %v7523_v57  ;;  %v7859_v48 = vld [vmem:[%s15566_s1 + $0xae8] sm:$0xf]  ;;  %v9924_v56 = vld [vmem:[%s15566_s1 + $0x64c] sm:$0xf0]  ;;  %v7451_v57 = vld [vmem:[%s15566_s1 + $0x7b8] sm:$0xf] }
 0x121   :  { %5139 = vmatpush.bf16.msra.mxu1 %v6660_v6  ;;  %v7307_v6 = vld [vmem:[%s15566_s1 + $0x698] sm:$0xf]  ;;  %v4921_v10 = vadd.f32 %v4920_v3, %v852_v60  ;;  %v7860_v60 = vor.u32 %v10074_v49, %v7859_v48  ;;  %v9918_v3 = vld [vmem:[%s15566_s1 + $0x61c] sm:$0xf0]  ;;  %v8339_v49 = vld [vmem:[%s15566_s1 + $0xea8] sm:$0xf] }
 0x122   :  { %5152 = vmatpush.bf16.msra.mxu2 %v6852_v7  ;;  %v9936_v7 = vld [vmem:[%s15566_s1 + $0x6ac] sm:$0xf0]  ;;  %v7643_v61 = vld [vmem:[%s15566_s1 + $0x938] sm:$0xf]  ;;  %v10146_v48 = vld [vmem:[%s15566_s1 + $0xd3c] sm:$0xf0] }
 0x123   :  { %5165 = vmatpush.bf16.msra.mxu3 %v7044_v11  ;;  %5127 = vmatmul.bf16.vlgmr.msra.gmra.mxu0 %v10909_v36  ;;  %v4933_v11 = vpop.f32.mrf.mxu1  ;;  %v7308_v25 = vor.u32 %v9936_v7, %v7307_v6  ;;  %v7427_v6 = vld [vmem:[%s15566_s1 + $0x788] sm:$0xf]  ;;  %v9966_v7 = vld [vmem:[%s15566_s1 + $0x79c] sm:$0xf0] }
 0x124   :  { %5171 = vmatpush.bf16.msrb.mxu0 %v7404_v12  ;;  %5140 = vmatmul.bf16.vlgmr.msra.gmra.mxu1 %v10919_v43  ;;  %v7908_v12 = vor.u32 %v10086_v1, %v7907_v0  ;;  %v10068_v0 = vld [vmem:[%s15566_s1 + $0xacc] sm:$0xf0]  ;;  %v7428_v32 = vor.u32 %v9966_v7, %v7427_v6 }
 0x125   :  { %5184 = vmatpush.bf16.msrb.mxu1 %v7596_v13  ;;  %5153 = vmatmul.bf16.vlgmr.msra.gmra.mxu2 %v10907_v35  ;;  %v9984_v13 = vld [vmem:[%s15566_s1 + $0x82c] sm:$0xf0] }
 0x126   :  { %5197 = vmatpush.bf16.msrb.mxu2 %v7788_v14  ;;  %5166 = vmatmul.bf16.vlgmr.msra.gmra.mxu3 %v10917_v42  ;;  %v7691_v14 = vld [vmem:[%s15566_s1 + $0x998] sm:$0xf]  ;;  %v7500_v28 = vor.u32 %v9984_v13, %v7499_v8  ;;  %v7619_v8 = vld [vmem:[%s15566_s1 + $0x908] sm:$0xf] }
 0x127   :  { %5210 = vmatpush.bf16.msrb.mxu3 %v7980_v22  ;;  %v4934_v22 = vadd.f32 %v4933_v11, %v4921_v10  ;;  %v7692_v29 = vor.u32 %v10032_v16, %v7691_v14  ;;  %v7836_v11 = vor.u32 %v10068_v0, %v7835_v63  ;;  %v7811_v13 = vld [vmem:[%s15566_s1 + $0xa88] sm:$0xf]  ;;  %v10062_v14 = vld [vmem:[%s15566_s1 + $0xa9c] sm:$0xf0]  ;;  %v10188_v0 = vld [vmem:[%s15566_s1 + $0xe8c] sm:$0xf0] }
 0x128   :  { %5172 = vmatpush.bf16.msrb.mxu0 %v7380_v33  ;;  %v7475_v33 = vld [vmem:[%s15566_s1 + $0x7e8] sm:$0xf] }
 0x129   :  { %5185 = vmatpush.bf16.msrb.mxu1 %v7572_v37  ;;  %v4946_v37 = vpop.f32.mrf.mxu2  ;;  %v4959_v58 = vpop.f32.mrf.mxu3  ;;  %v7476_v53 = vor.u32 %v9978_v41, %v7475_v33  ;;  %v7812_v41 = vor.u32 %v10062_v14, %v7811_v13  ;;  %v10182_v13 = vld [vmem:[%s15566_s1 + $0xe5c] sm:$0xf0]  ;;  %v8483_v14 = vld [vmem:[%s15566_s1 + $0xfc8] sm:$0xf] }
 0x12a   :  { %5198 = vmatpush.bf16.msrb.mxu2 %v7764_v38  ;;  %v7884_v38 = vor.u32 %v10080_v18, %v7883_v17  ;;  %v8171_v17 = vld [vmem:[%s15566_s1 + $0xd58] sm:$0xf]  ;;  %v10152_v18 = vld [vmem:[%s15566_s1 + $0xd6c] sm:$0xf0] }
 0x12b   :  { %5211 = vmatpush.bf16.msrb.mxu3 %v7956_v47  ;;  %v4947_v47 = vadd.f32 %v4946_v37, %v4934_v22  ;;  %v4935_v59 = vpop.f32.mrf.mxu1  ;;  %v8363_v22 = vld [vmem:[%s15566_s1 + $0xed8] sm:$0xf] }
 0x12c   :  { %5173 = vmatpush.bf16.msrb.mxu0 %v7356_v52  ;;  %v4922_v52 = vpop.f32.mrf.mxu0  ;;  %v8747_v37 = vld [vmem:[%s15566_s1 + $0x11d8] sm:$0xf] }
 0x12d   :  { %5186 = vmatpush.bf16.msrb.mxu1 %v7548_v54  ;;  %v12543_v51 = vadd.f32 %v4959_v58, %v4947_v47  ;;  %v7668_v54 = vor.u32 %v10026_v46, %v7667_v45  ;;  %v8172_v45 = vor.u32 %v10152_v18, %v8171_v17  ;;  %v8147_v58 = vld [vmem:[%s15566_s1 + $0xd28] sm:$0xf]  ;;  %v10194_v52 = vld [vmem:[%s15566_s1 + $0xebc] sm:$0xf0] }
 0x12e   :  { %5199 = vmatpush.bf16.msrb.mxu2 %v7740_v55  ;;  %v7259_v55 = vld [vmem:[%s15566_s1 + $0x638] sm:$0xf]  ;;  %v8340_v59 = vor.u32 %v10194_v52, %v8339_v49  ;;  %v8675_v17 = vld [vmem:[%s15566_s1 + $0x1148] sm:$0xf]  ;;  %v10278_v18 = vld [vmem:[%s15566_s1 + $0x115c] sm:$0xf0] }
 0x12f   :  { %5212 = vmatpush.bf16.msrb.mxu3 %v7932_v9  ;;  %v9972_v9 = vld [vmem:[%s15566_s1 + $0x7cc] sm:$0xf0]  ;;  %v7260_v1 = vor.u32 %v9924_v56, %v7259_v55  ;;  %v8723_v55 = vld [vmem:[%s15566_s1 + $0x11a8] sm:$0xf]  ;;  %v10290_v56 = vld [vmem:[%s15566_s1 + $0x11bc] sm:$0xf0] }
 0x130   :  { %5174 = vmatpush.bf16.msrb.mxu0 %v7332_v2  ;;  %v7235_v2 = vld [vmem:[%s15566_s1 + $0x608] sm:$0xf]  ;;  %v8724_v63 = vor.u32 %v10290_v56, %v8723_v55 }
 0x131   :  { %5187 = vmatpush.bf16.msrb.mxu1 %v7524_v4  ;;  %v7452_v4 = vor.u32 %v9972_v9, %v7451_v57  ;;  %v4948_v10 = vpop.f32.mrf.mxu2  ;;  %v4961_v16 = vpop.f32.mrf.mxu3  ;;  %v8148_v57 = vor.u32 %v10146_v48, %v8147_v58  ;;  %v8123_v9 = vld [vmem:[%s15566_s1 + $0xcf8] sm:$0xf]  ;;  %v8243_v55 = vld [vmem:[%s15566_s1 + $0xde8] sm:$0xf] }
 0x132   :  { %5200 = vmatpush.bf16.msrb.mxu2 %v7716_v5  ;;  %v7644_v5 = vor.u32 %v10020_v62, %v7643_v61  ;;  %v10140_v61 = vld [vmem:[%s15566_s1 + $0xd0c] sm:$0xf0]  ;;  %v8315_v62 = vld [vmem:[%s15566_s1 + $0xe78] sm:$0xf]  ;;  %v10134_v10 = vld [vmem:[%s15566_s1 + $0xcdc] sm:$0xf0] }
 0x133   :  { %5213 = vmatpush.bf16.msrb.mxu3 %v7908_v12  ;;  %v10014_v12 = vld [vmem:[%s15566_s1 + $0x91c] sm:$0xf0]  ;;  %v8316_v6 = vor.u32 %v10188_v0, %v8315_v62  ;;  %v8651_v58 = vld [vmem:[%s15566_s1 + $0x1118] sm:$0xf] }
 0x134   :  { %5175 = vmatpush.bf16.msrb.mxu0 %v7308_v25  ;;  %v7236_v25 = vor.u32 %v9918_v3, %v7235_v2  ;;  %v7620_v33 = vor.u32 %v10014_v12, %v7619_v8  ;;  %v10236_v2 = vld [vmem:[%s15566_s1 + $0x100c] sm:$0xf0]  ;;  %v8699_v3 = vld [vmem:[%s15566_s1 + $0x1178] sm:$0xf]  ;;  %v8099_v8 = vld [vmem:[%s15566_s1 + $0xcc8] sm:$0xf] }
 0x135   :  { %5188 = vmatpush.bf16.msrb.mxu1 %v7500_v28  ;;  %v10200_v28 = vld [vmem:[%s15566_s1 + $0xeec] sm:$0xf0]  ;;  %v10230_v16 = vld [vmem:[%s15566_s1 + $0xfdc] sm:$0xf0] }
 0x136   :  { %5201 = vmatpush.bf16.msrb.mxu2 %v7692_v29  ;;  %v8555_v29 = vld [vmem:[%s15566_s1 + $0x1058] sm:$0xf]  ;;  %v8364_v46 = vor.u32 %v10200_v28, %v8363_v22  ;;  %v8100_v22 = vor.u32 %v10134_v10, %v8099_v8  ;;  %v10266_v0 = vld [vmem:[%s15566_s1 + $0x10fc] sm:$0xf0] }
 0x137   :  { %5214 = vmatpush.bf16.msrb.mxu3 %v7884_v38  ;;  %v10296_v38 = vld [vmem:[%s15566_s1 + $0x11ec] sm:$0xf0]  ;;  %v8556_v47 = vor.u32 %v10248_v31, %v8555_v29  ;;  %v8484_v29 = vor.u32 %v10230_v16, %v8483_v14  ;;  %v8075_v31 = vld [vmem:[%s15566_s1 + $0xc98] sm:$0xf] }
 0x138   :  { %5176 = vmatpush.bf16.msrb.mxu0 %v7284_v50  ;;  %v8748_v50 = vor.u32 %v10296_v38, %v8747_v37  ;;  %v8219_v8 = vld [vmem:[%s15566_s1 + $0xdb8] sm:$0xf]  ;;  %v10212_v14 = vld [vmem:[%s15566_s1 + $0xf4c] sm:$0xf0] }
 0x139   :  { %5189 = vmatpush.bf16.msrb.mxu1 %v7476_v53  ;;  %v8531_v53 = vld [vmem:[%s15566_s1 + $0x1028] sm:$0xf]  ;;  %v8603_v16 = vld [vmem:[%s15566_s1 + $0x10b8] sm:$0xf] }
 0x13a   :  { %5202 = vmatpush.bf16.msrb.mxu2 %v7668_v54  ;;  %v10242_v54 = vld [vmem:[%s15566_s1 + $0x103c] sm:$0xf0] }
 0x13b   :  { %5215 = vmatpush.bf16.msrb.mxu3 %v7860_v60  ;;  %v8532_v60 = vor.u32 %v10242_v54, %v8531_v53  ;;  %v8051_v53 = vld [vmem:[%s15566_s1 + $0xc68] sm:$0xf]  ;;  %v10122_v54 = vld [vmem:[%s15566_s1 + $0xc7c] sm:$0xf0] }
 0x13c   :  { %5177 = vmatpush.bf16.msrb.mxu0 %v7260_v1  ;;  %v8507_v1 = vld [vmem:[%s15566_s1 + $0xff8] sm:$0xf] }
 0x13d   :  { %5190 = vmatpush.bf16.msrb.mxu1 %v7452_v4  ;;  %v10284_v4 = vld [vmem:[%s15566_s1 + $0x118c] sm:$0xf0]  ;;  %v8508_v7 = vor.u32 %v10236_v2, %v8507_v1  ;;  %v8052_v1 = vor.u32 %v10122_v54, %v8051_v53 }
 0x13e   :  { %5203 = vmatpush.bf16.msrb.mxu2 %v7644_v5  ;;  %v8124_v5 = vor.u32 %v10140_v61, %v8123_v9  ;;  %v8700_v12 = vor.u32 %v10284_v4, %v8699_v3  ;;  %v10218_v9 = vld [vmem:[%s15566_s1 + $0xf7c] sm:$0xf0]  ;;  %v10440_v53 = vld [vmem:[%s15566_s1 + $0x166c] sm:$0xf0] }
 0x13f   :  { %5216 = vmatpush.bf16.msrb.mxu3 %v7836_v11  ;;  %v8291_v11 = vld [vmem:[%s15566_s1 + $0xe48] sm:$0xf] }
 0x140   :  { %5178 = vmatpush.bf16.msrb.mxu0 %v7236_v25  ;;  %v4972_v25 = vpop.f32.mrf.mxu0  ;;  %v8292_v28 = vor.u32 %v10182_v13, %v8291_v11  ;;  %v8411_v13 = vld [vmem:[%s15566_s1 + $0xf38] sm:$0xf] }
 0x141   :  { %5191 = vmatpush.bf16.msrb.mxu1 %v7428_v32  ;;  %v10128_v32 = vld [vmem:[%s15566_s1 + $0xcac] sm:$0xf0]  ;;  %v4973_v37 = vadd.f32 %v4972_v25, %v12543_v51  ;;  %v4985_v38 = vpop.f32.mrf.mxu1  ;;  %v10110_v25 = vld [vmem:[%s15566_s1 + $0xc1c] sm:$0xf0] }
 0x142   :  { %5204 = vmatpush.bf16.msrb.mxu2 %v7620_v33  ;;  %v8267_v33 = vld [vmem:[%s15566_s1 + $0xe18] sm:$0xf]  ;;  %v10272_v51 = vld [vmem:[%s15566_s1 + $0x112c] sm:$0xf0]  ;;  %v8076_v49 = vor.u32 %v10128_v32, %v8075_v31  ;;  %v8195_v31 = vld [vmem:[%s15566_s1 + $0xd88] sm:$0xf] }
 0x143   :  { %5217 = vmatpush.bf16.msrb.mxu3 %v7812_v41  ;;  %5179 = vmatmul.bf16.vlgmr.msrb.gmra.mxu0 %v11035_v39  ;;  %v8676_v41 = vor.u32 %v10278_v18, %v8675_v17  ;;  %v4986_v48 = vadd.f32 %v4985_v38, %v4973_v37  ;;  %v10260_v17 = vld [vmem:[%s15566_s1 + $0x10cc] sm:$0xf0]  ;;  %v10158_v32 = vld [vmem:[%s15566_s1 + $0xd9c] sm:$0xf0] }
 0x144   :  { %5223 = vmatpush.bf16.msra.mxu0 %v8172_v45  ;;  %5192 = vmatmul.bf16.vlgmr.msrb.gmra.mxu1 %v11039_v44  ;;  %v10176_v45 = vld [vmem:[%s15566_s1 + $0xe2c] sm:$0xf0]  ;;  %v8604_v38 = vor.u32 %v10260_v17, %v8603_v16  ;;  %v8196_v54 = vor.u32 %v10158_v32, %v8195_v31 }
 0x145   :  { %5236 = vmatpush.bf16.msra.mxu1 %v8364_v46  ;;  %5205 = vmatmul.bf16.vlgmr.msrb.gmra.mxu2 %v11027_v34  ;;  %v8459_v46 = vld [vmem:[%s15566_s1 + $0xf98] sm:$0xf]  ;;  %v10380_v17 = vld [vmem:[%s15566_s1 + $0x148c] sm:$0xf0] }
 0x146   :  { %5249 = vmatpush.bf16.msra.mxu2 %v8556_v47  ;;  %5218 = vmatmul.bf16.vlgmr.msrb.gmra.mxu3 %v11037_v40  ;;  %v10224_v47 = vld [vmem:[%s15566_s1 + $0xfac] sm:$0xf0] }
 0x147   :  { %5262 = vmatpush.bf16.msra.mxu3 %v8748_v50  ;;  %v8268_v50 = vor.u32 %v10176_v45, %v8267_v33  ;;  %v8460_v52 = vor.u32 %v10224_v47, %v8459_v46  ;;  %v8387_v33 = vld [vmem:[%s15566_s1 + $0xf08] sm:$0xf]  ;;  %v10254_v46 = vld [vmem:[%s15566_s1 + $0x109c] sm:$0xf0] }
 0x148   :  { %5224 = vmatpush.bf16.msra.mxu0 %v8148_v57  ;;  %v4998_v56 = vpop.f32.mrf.mxu2  ;;  %v8652_v57 = vor.u32 %v10272_v51, %v8651_v58  ;;  %v4974_v3 = vpop.f32.mrf.mxu0  ;;  %v8579_v45 = vld [vmem:[%s15566_s1 + $0x1088] sm:$0xf]  ;;  %v8939_v58 = vld [vmem:[%s15566_s1 + $0x1358] sm:$0xf]  ;;  %v10344_v51 = vld [vmem:[%s15566_s1 + $0x136c] sm:$0xf0] }
 0x149   :  { %5237 = vmatpush.bf16.msra.mxu1 %v8340_v59  ;;  %v10170_v59 = vld [vmem:[%s15566_s1 + $0xdfc] sm:$0xf0]  ;;  %v4999_v61 = vadd.f32 %v4998_v56, %v4986_v48  ;;  %v5011_v62 = vpop.f32.mrf.mxu3  ;;  %v4987_v10 = vpop.f32.mrf.mxu1  ;;  %v9131_v48 = vld [vmem:[%s15566_s1 + $0x14d8] sm:$0xf] }
 0x14a   :  { %5250 = vmatpush.bf16.msra.mxu2 %v8532_v60  ;;  %v8435_v60 = vld [vmem:[%s15566_s1 + $0xf68] sm:$0xf]  ;;  %v8244_v4 = vor.u32 %v10170_v59, %v8243_v55  ;;  %v9515_v56 = vld [vmem:[%s15566_s1 + $0x17d8] sm:$0xf]  ;;  %v8580_v59 = vor.u32 %v10254_v46, %v8579_v45  ;;  %v10386_v3 = vld [vmem:[%s15566_s1 + $0x14bc] sm:$0xf0] }
 0x14b   :  { %5263 = vmatpush.bf16.msra.mxu3 %v8724_v63  ;;  %v8627_v63 = vld [vmem:[%s15566_s1 + $0x10e8] sm:$0xf]  ;;  %v12742_v2 = vadd.f32 %v5011_v62, %v4999_v61  ;;  %v10374_v45 = vld [vmem:[%s15566_s1 + $0x145c] sm:$0xf0] }
 0x14c   :  { %5225 = vmatpush.bf16.msra.mxu0 %v8124_v5  ;;  %v8436_v5 = vor.u32 %v10218_v9, %v8435_v60  ;;  %v8628_v11 = vor.u32 %v10266_v0, %v8627_v63  ;;  %v8940_v60 = vor.u32 %v10344_v51, %v8939_v58  ;;  %v8915_v62 = vld [vmem:[%s15566_s1 + $0x1328] sm:$0xf]  ;;  %v10338_v63 = vld [vmem:[%s15566_s1 + $0x133c] sm:$0xf0] }
 0x14d   :  { %5238 = vmatpush.bf16.msra.mxu1 %v8316_v6  ;;  %v8027_v6 = vld [vmem:[%s15566_s1 + $0xc38] sm:$0xf]  ;;  %v9107_v0 = vld [vmem:[%s15566_s1 + $0x14a8] sm:$0xf] }
 0x14e   :  { %5251 = vmatpush.bf16.msra.mxu2 %v8508_v7  ;;  %v10116_v7 = vld [vmem:[%s15566_s1 + $0xc4c] sm:$0xf0]  ;;  %v9108_v10 = vor.u32 %v10386_v3, %v9107_v0  ;;  %v9251_v46 = vld [vmem:[%s15566_s1 + $0x15c8] sm:$0xf] }
 0x14f   :  { %5264 = vmatpush.bf16.msra.mxu3 %v8700_v12  ;;  %v10164_v12 = vld [vmem:[%s15566_s1 + $0xdcc] sm:$0xf0]  ;;  %v8028_v18 = vor.u32 %v10116_v7, %v8027_v6  ;;  %v9491_v6 = vld [vmem:[%s15566_s1 + $0x17a8] sm:$0xf]  ;;  %v10482_v7 = vld [vmem:[%s15566_s1 + $0x17bc] sm:$0xf0] }
 0x150   :  { %5226 = vmatpush.bf16.msra.mxu0 %v8100_v22  ;;  %v8003_v22 = vld [vmem:[%s15566_s1 + $0xc08] sm:$0xf]  ;;  %v5000_v37 = vpop.f32.mrf.mxu2  ;;  %v9492_v16 = vor.u32 %v10482_v7, %v9491_v6 }
 0x151   :  { %5239 = vmatpush.bf16.msra.mxu1 %v8292_v28  ;;  %v8220_v28 = vor.u32 %v10164_v12, %v8219_v8  ;;  %v5013_v47 = vpop.f32.mrf.mxu3  ;;  %v8916_v8 = vor.u32 %v10338_v63, %v8915_v62  ;;  %v8891_v12 = vld [vmem:[%s15566_s1 + $0x12f8] sm:$0xf]  ;;  %v10326_v37 = vld [vmem:[%s15566_s1 + $0x12dc] sm:$0xf0]  ;;  %v9443_v51 = vld [vmem:[%s15566_s1 + $0x1748] sm:$0xf] }
 0x152   :  { %5252 = vmatpush.bf16.msra.mxu2 %v8484_v29  ;;  %v8412_v29 = vor.u32 %v10212_v14, %v8411_v13  ;;  %v10332_v13 = vld [vmem:[%s15566_s1 + $0x130c] sm:$0xf0]  ;;  %v9083_v14 = vld [vmem:[%s15566_s1 + $0x1478] sm:$0xf]  ;;  %v10422_v47 = vld [vmem:[%s15566_s1 + $0x15dc] sm:$0xf0] }
 0x153   :  { %5265 = vmatpush.bf16.msra.mxu3 %v8676_v41  ;;  %v10206_v41 = vld [vmem:[%s15566_s1 + $0xf1c] sm:$0xf0]  ;;  %v9084_v31 = vor.u32 %v10380_v17, %v9083_v14  ;;  %v9419_v62 = vld [vmem:[%s15566_s1 + $0x1718] sm:$0xf]  ;;  %v10464_v63 = vld [vmem:[%s15566_s1 + $0x172c] sm:$0xf0] }
 0x154   :  { %5227 = vmatpush.bf16.msra.mxu0 %v8076_v49  ;;  %v8004_v49 = vor.u32 %v10110_v25, %v8003_v22  ;;  %v8388_v55 = vor.u32 %v10206_v41, %v8387_v33  ;;  %v10428_v22 = vld [vmem:[%s15566_s1 + $0x160c] sm:$0xf0]  ;;  %v9467_v25 = vld [vmem:[%s15566_s1 + $0x1778] sm:$0xf]  ;;  %v8867_v33 = vld [vmem:[%s15566_s1 + $0x12c8] sm:$0xf]  ;;  %v9420_v7 = vor.u32 %v10464_v63, %v9419_v62 }
 0x155   :  { %5240 = vmatpush.bf16.msra.mxu1 %v8268_v50  ;;  %v10392_v50 = vld [vmem:[%s15566_s1 + $0x14ec] sm:$0xf0]  ;;  %v9011_v6 = vld [vmem:[%s15566_s1 + $0x13e8] sm:$0xf]  ;;  %v10458_v17 = vld [vmem:[%s15566_s1 + $0x16fc] sm:$0xf0] }
 0x156   :  { %5253 = vmatpush.bf16.msra.mxu2 %v8460_v52  ;;  %v9323_v52 = vld [vmem:[%s15566_s1 + $0x1658] sm:$0xf]  ;;  %v9132_v9 = vor.u32 %v10392_v50, %v9131_v48  ;;  %v10470_v48 = vld [vmem:[%s15566_s1 + $0x175c] sm:$0xf0]  ;;  %v8868_v50 = vor.u32 %v10326_v37, %v8867_v33  ;;  %v10308_v33 = vld [vmem:[%s15566_s1 + $0x124c] sm:$0xf0] }
 0x157   :  { %5266 = vmatpush.bf16.msra.mxu3 %v8652_v57  ;;  %v10488_v57 = vld [vmem:[%s15566_s1 + $0x17ec] sm:$0xf0]  ;;  %v9324_v61 = vor.u32 %v10440_v53, %v9323_v52  ;;  %v8987_v37 = vld [vmem:[%s15566_s1 + $0x13b8] sm:$0xf]  ;;  %v9813_v62 = vld [vmem:[%s15566_s1 + $0x2dc] sm:$0xf] }
 0x158   :  { %5228 = vmatpush.bf16.msra.mxu0 %v8052_v1  ;;  %v9516_v1 = vor.u32 %v10488_v57, %v9515_v56  ;;  %v10320_v56 = vld [vmem:[%s15566_s1 + $0x12ac] sm:$0xf0]  ;;  %v9035_v57 = vld [vmem:[%s15566_s1 + $0x1418] sm:$0xf] }
 0x159   :  { %5241 = vmatpush.bf16.msra.mxu1 %v8244_v4  ;;  %v9299_v4 = vld [vmem:[%s15566_s1 + $0x1628] sm:$0xf] }
 0x15a   :  { %5254 = vmatpush.bf16.msra.mxu2 %v8436_v5  ;;  %v10434_v5 = vld [vmem:[%s15566_s1 + $0x163c] sm:$0xf0] }
 0x15b   :  { %5267 = vmatpush.bf16.msra.mxu3 %v8628_v11  ;;  %v9300_v11 = vor.u32 %v10434_v5, %v9299_v4  ;;  %v8819_v4 = vld [vmem:[%s15566_s1 + $0x1268] sm:$0xf]  ;;  %v10314_v5 = vld [vmem:[%s15566_s1 + $0x127c] sm:$0xf0] }
 0x15c   :  { %5229 = vmatpush.bf16.msra.mxu0 %v8028_v18  ;;  %v9275_v18 = vld [vmem:[%s15566_s1 + $0x15f8] sm:$0xf] }
 0x15d   :  { %5242 = vmatpush.bf16.msra.mxu1 %v8220_v28  ;;  %v10476_v28 = vld [vmem:[%s15566_s1 + $0x178c] sm:$0xf0]  ;;  %v9276_v32 = vor.u32 %v10428_v22, %v9275_v18  ;;  %v8820_v22 = vor.u32 %v10314_v5, %v8819_v4  ;;  %v7021_v4 = vld [vmem:[%s15566_s1 + $0x470] sm:$0xf0] }
 0x15e   :  { %5255 = vmatpush.bf16.msra.mxu2 %v8412_v29  ;;  %v8892_v29 = vor.u32 %v10332_v13, %v8891_v12  ;;  %v9468_v41 = vor.u32 %v10476_v28, %v9467_v25  ;;  %v10410_v12 = vld [vmem:[%s15566_s1 + $0x157c] sm:$0xf0] }
 0x15f   :  { %5268 = vmatpush.bf16.msra.mxu3 %v8604_v38  ;;  %v9059_v38 = vld [vmem:[%s15566_s1 + $0x1448] sm:$0xf] }
 0x160   :  { %5230 = vmatpush.bf16.msra.mxu0 %v8004_v49  ;;  %v5024_v58 = vpop.f32.mrf.mxu0  ;;  %v9060_v53 = vor.u32 %v10374_v45, %v9059_v38  ;;  %v9179_v45 = vld [vmem:[%s15566_s1 + $0x1538] sm:$0xf] }
 0x161   :  { %5243 = vmatpush.bf16.msra.mxu1 %v8196_v54  ;;  %v5025_v49 = vadd.f32 %v5024_v58, %v12742_v2  ;;  %v5037_v52 = vpop.f32.mrf.mxu1  ;;  %v9252_v54 = vor.u32 %v10422_v47, %v9251_v46  ;;  %v9444_v2 = vor.u32 %v10470_v48, %v9443_v51  ;;  %v10404_v46 = vld [vmem:[%s15566_s1 + $0x154c] sm:$0xf0]  ;;  %v9371_v47 = vld [vmem:[%s15566_s1 + $0x16b8] sm:$0xf]  ;;  %v8771_v48 = vld [vmem:[%s15566_s1 + $0x1208] sm:$0xf] }
 0x162   :  { %5256 = vmatpush.bf16.msra.mxu2 %v8388_v55  ;;  %v8843_v55 = vld [vmem:[%s15566_s1 + $0x1298] sm:$0xf]  ;;  %v10452_v58 = vld [vmem:[%s15566_s1 + $0x16cc] sm:$0xf0] }
 0x163   :  { %5269 = vmatpush.bf16.msra.mxu3 %v8580_v59  ;;  %5231 = vmatmul.bf16.vlgmr.msra.gmra.mxu0 %v11222_v19  ;;  %v5038_v59 = vadd.f32 %v5037_v52, %v5025_v49  ;;  %v8844_v0 = vor.u32 %v10320_v56, %v8843_v55  ;;  %v10302_v49 = vld [vmem:[%s15566_s1 + $0x121c] sm:$0xf0]  ;;  %v9180_v52 = vor.u32 %v10404_v46, %v9179_v45  ;;  %v9155_v55 = vld [vmem:[%s15566_s1 + $0x1508] sm:$0xf]  ;;  %v6589_v45 = vld [vmem:[%s15566_s1 + $0x110] sm:$0xf0] }
 0x164   :  { %5275 = vmatpush.bf16.msrb.mxu0 %v8940_v60  ;;  %5244 = vmatmul.bf16.vlgmr.msra.gmra.mxu1 %v11235_v24  ;;  %v10368_v60 = vld [vmem:[%s15566_s1 + $0x142c] sm:$0xf0]  ;;  %v9372_v56 = vor.u32 %v10452_v58, %v9371_v47  ;;  %v9801_v46 = vld [vmem:[%s15566_s1 + $0x27c] sm:$0xf]  ;;  %v6781_v58 = vld [vmem:[%s15566_s1 + $0x290] sm:$0xf0] }
 0x165   :  { %5288 = vmatpush.bf16.msrb.mxu1 %v9132_v9  ;;  %5257 = vmatmul.bf16.vlgmr.msra.gmra.mxu2 %v11233_v23  ;;  %v9227_v9 = vld [vmem:[%s15566_s1 + $0x1598] sm:$0xf] }
 0x166   :  { %5301 = vmatpush.bf16.msrb.mxu2 %v9324_v61  ;;  %5270 = vmatmul.bf16.vlgmr.msra.gmra.mxu3 %v11243_v27  ;;  %v10416_v61 = vld [vmem:[%s15566_s1 + $0x15ac] sm:$0xf0] }
 0x167   :  { %5314 = vmatpush.bf16.msrb.mxu3 %v9516_v1  ;;  %v9036_v1 = vor.u32 %v10368_v60, %v9035_v57  ;;  %v9228_v3 = vor.u32 %v10416_v61, %v9227_v9  ;;  %v10398_v57 = vld [vmem:[%s15566_s1 + $0x151c] sm:$0xf0]  ;;  %v9765_v9 = vld [vmem:[%s15566_s1 + $0x15c] sm:$0xf]  ;;  %v6637_v61 = vld [vmem:[%s15566_s1 + $0x170] sm:$0xf0] }
 0x168   :  { %5276 = vmatpush.bf16.msrb.mxu0 %v8916_v8  ;;  %v5050_v8 = vpop.f32.mrf.mxu2  ;;  %v5026_v18 = vpop.f32.mrf.mxu0 }
 0x169   :  { %5289 = vmatpush.bf16.msrb.mxu1 %v9108_v10  ;;  %v10362_v10 = vld [vmem:[%s15566_s1 + $0x13fc] sm:$0xf0]  ;;  %v5051_v13 = vadd.f32 %v5050_v8, %v5038_v59  ;;  %v5063_v14 = vpop.f32.mrf.mxu3  ;;  %v5039_v25 = vpop.f32.mrf.mxu1  ;;  %v7213_v8 = vld [vmem:[%s15566_s1 + $0x5f0] sm:$0xf0] }
 0x16a   :  { %5302 = vmatpush.bf16.msrb.mxu2 %v9300_v11  ;;  %v9203_v11 = vld [vmem:[%s15566_s1 + $0x1568] sm:$0xf]  ;;  %v10446_v59 = vld [vmem:[%s15566_s1 + $0x169c] sm:$0xf0]  ;;  %v9855_v25 = vld [vmem:[%s15566_s1 + $0x42c] sm:$0xf] }
 0x16b   :  { %5315 = vmatpush.bf16.msrb.mxu3 %v9492_v16  ;;  %v9395_v16 = vld [vmem:[%s15566_s1 + $0x16e8] sm:$0xf]  ;;  %v12941_v28 = vadd.f32 %v5063_v14, %v5051_v13  ;;  %v9759_v14 = vld [vmem:[%s15566_s1 + $0x12c] sm:$0xf] }
 0x16c   :  { %5277 = vmatpush.bf16.msrb.mxu0 %v8892_v29  ;;  %v9012_v29 = vor.u32 %v10362_v10, %v9011_v6  ;;  %v9396_v38 = vor.u32 %v10458_v17, %v9395_v16  ;;  %v9156_v6 = vor.u32 %v10398_v57, %v9155_v55  ;;  %v6613_v16 = vld [vmem:[%s15566_s1 + $0x140] sm:$0xf0]  ;;  %v9807_v17 = vld [vmem:[%s15566_s1 + $0x2ac] sm:$0xf] }
 0x16d   :  { %5290 = vmatpush.bf16.msrb.mxu1 %v9084_v31  ;;  %v9204_v31 = vor.u32 %v10410_v12, %v9203_v11  ;;  %v6640_v11 = vor.u32 %v9765_v9, %v6637_v61  ;;  %v9747_v55 = vld [vmem:[%s15566_s1 + $0xcc] sm:$0xf]  ;;  %v6949_v9 = vld [vmem:[%s15566_s1 + $0x3e0] sm:$0xf0] }
 0x16e   :  { %5303 = vmatpush.bf16.msrb.mxu2 %v9276_v32  ;;  %v8795_v32 = vld [vmem:[%s15566_s1 + $0x1238] sm:$0xf]  ;;  %v9795_v57 = vld [vmem:[%s15566_s1 + $0x24c] sm:$0xf] }
 0x16f   :  { %5316 = vmatpush.bf16.msrb.mxu3 %v9468_v41  ;;  %v10356_v41 = vld [vmem:[%s15566_s1 + $0x13cc] sm:$0xf0]  ;;  %v8796_v51 = vor.u32 %v10308_v33, %v8795_v32  ;;  %v7189_v32 = vld [vmem:[%s15566_s1 + $0x5c0] sm:$0xf0]  ;;  %v6616_v33 = vor.u32 %v9759_v14, %v6613_v16  ;;  %v9885_v14 = vld [vmem:[%s15566_s1 + $0x51c] sm:$0xf] }
 0x170   :  { %5278 = vmatpush.bf16.msrb.mxu0 %v8868_v50  ;;  %v8988_v50 = vor.u32 %v10356_v41, %v8987_v37  ;;  %v5052_v60 = vpop.f32.mrf.mxu2  ;;  %v9753_v41 = vld [vmem:[%s15566_s1 + $0xfc] sm:$0xf]  ;;  %v7117_v16 = vld [vmem:[%s15566_s1 + $0x530] sm:$0xf0] }
 0x171   :  { %5291 = vmatpush.bf16.msrb.mxu1 %v9060_v53  ;;  %v8963_v53 = vld [vmem:[%s15566_s1 + $0x1388] sm:$0xf]  ;;  %v5065_v63 = vpop.f32.mrf.mxu3  ;;  %v9843_v60 = vld [vmem:[%s15566_s1 + $0x3cc] sm:$0xf] }
 0x172   :  { %5304 = vmatpush.bf16.msrb.mxu2 %v9252_v54  ;;  %v10350_v54 = vld [vmem:[%s15566_s1 + $0x139c] sm:$0xf0]  ;;  %v7141_v63 = vld [vmem:[%s15566_s1 + $0x560] sm:$0xf0] }
 0x173   :  { %5317 = vmatpush.bf16.msrb.mxu3 %v9444_v2  ;;  %v9347_v2 = vld [vmem:[%s15566_s1 + $0x1688] sm:$0xf]  ;;  %v8964_v5 = vor.u32 %v10350_v54, %v8963_v53  ;;  %v6784_v53 = vor.u32 %v9801_v46, %v6781_v58  ;;  %v7093_v58 = vld [vmem:[%s15566_s1 + $0x500] sm:$0xf0] }
 0x174   :  { %5279 = vmatpush.bf16.msrb.mxu0 %v8844_v0  ;;  %v8772_v0 = vor.u32 %v10302_v49, %v8771_v48  ;;  %v9348_v10 = vor.u32 %v10446_v59, %v9347_v2  ;;  %v6973_v48 = vld [vmem:[%s15566_s1 + $0x410] sm:$0xf0]  ;;  %v9897_v49 = vld [vmem:[%s15566_s1 + $0x57c] sm:$0xf]  ;;  %v6757_v59 = vld [vmem:[%s15566_s1 + $0x260] sm:$0xf0] }
 0x175   :  { %5292 = vmatpush.bf16.msrb.mxu1 %v9036_v1  ;;  %v6829_v1 = vld [vmem:[%s15566_s1 + $0x2f0] sm:$0xf0] }
 0x176   :  { %5305 = vmatpush.bf16.msrb.mxu2 %v9228_v3  ;;  %v9861_v3 = vld [vmem:[%s15566_s1 + $0x45c] sm:$0xf]  ;;  %v6832_v12 = vor.u32 %v9813_v62, %v6829_v1  ;;  %v9891_v62 = vld [vmem:[%s15566_s1 + $0x54c] sm:$0xf] }
 0x177   :  { %5318 = vmatpush.bf16.msrb.mxu3 %v9420_v7  ;;  %v9909_v7 = vld [vmem:[%s15566_s1 + $0x5dc] sm:$0xf]  ;;  %v7024_v13 = vor.u32 %v9861_v3, %v7021_v4  ;;  %v6760_v4 = vor.u32 %v9795_v57, %v6757_v59 }
 0x178   :  { %5280 = vmatpush.bf16.msrb.mxu0 %v8820_v22  ;;  %v7216_v18 = vor.u32 %v9909_v7, %v7213_v8  ;;  %v6805_v22 = vld [vmem:[%s15566_s1 + $0x2c0] sm:$0xf0]  ;;  %v6541_v7 = vld [vmem:[%s15566_s1 + $0xb0] sm:$0xf0]  ;;  %v9789_v8 = vld [vmem:[%s15566_s1 + $0x21c] sm:$0xf] }
 0x179   :  { %5293 = vmatpush.bf16.msrb.mxu1 %v9012_v29  ;;  %v6997_v29 = vld [vmem:[%s15566_s1 + $0x440] sm:$0xf0]  ;;  %v6808_v37 = vor.u32 %v9807_v17, %v6805_v22  ;;  %v9825_v59 = vld [vmem:[%s15566_s1 + $0x33c] sm:$0xf] }
 0x17a   :  { %5306 = vmatpush.bf16.msrb.mxu2 %v9204_v31  ;;  %v9903_v31 = vld [vmem:[%s15566_s1 + $0x5ac] sm:$0xf] }
 0x17b   :  { %5319 = vmatpush.bf16.msrb.mxu3 %v9396_v38  ;;  %v7000_v38 = vor.u32 %v9855_v25, %v6997_v29  ;;  %v7192_v47 = vor.u32 %v9903_v31, %v7189_v32  ;;  %v9735_v25 = vld [vmem:[%s15566_s1 + $0x6c] sm:$0xf]  ;;  %v6517_v29 = vld [vmem:[%s15566_s1 + $0x80] sm:$0xf0]  ;;  %v7120_v32 = vor.u32 %v9885_v14, %v7117_v16  ;;  %v10005_v14 = vld [vmem:[%s15566_s1 + $0x8dc] sm:$0xf] }
 0x17c   :  { %5281 = vmatpush.bf16.msrb.mxu0 %v8796_v51  ;;  %v9849_v51 = vld [vmem:[%s15566_s1 + $0x3fc] sm:$0xf]  ;;  %v9783_v31 = vld [vmem:[%s15566_s1 + $0x1ec] sm:$0xf] }
 0x17d   :  { %5294 = vmatpush.bf16.msrb.mxu1 %v8988_v50  ;;  %v7165_v50 = vld [vmem:[%s15566_s1 + $0x590] sm:$0xf0]  ;;  %v6976_v54 = vor.u32 %v9849_v51, %v6973_v48  ;;  %v6520_v48 = vor.u32 %v9735_v25, %v6517_v29 }
 0x17e   :  { %5307 = vmatpush.bf16.msrb.mxu2 %v9180_v52  ;;  %v6592_v52 = vor.u32 %v9753_v41, %v6589_v45  ;;  %v7168_v2 = vor.u32 %v9897_v49, %v7165_v50  ;;  %v6901_v41 = vld [vmem:[%s15566_s1 + $0x380] sm:$0xf0]  ;;  %v7789_v25 = vld [vmem:[%s15566_s1 + $0xa70] sm:$0xf0] }
 0x17f   :  { %5320 = vmatpush.bf16.msrb.mxu3 %v9372_v56  ;;  %v6565_v56 = vld [vmem:[%s15566_s1 + $0xe0] sm:$0xf0] }
 0x180   :  { %5282 = vmatpush.bf16.msrb.mxu0 %v8772_v0  ;;  %v5076_v61 = vpop.f32.mrf.mxu0  ;;  %v6568_v1 = vor.u32 %v9747_v55, %v6565_v56  ;;  %v6493_v55 = vld [vmem:[%s15566_s1 + $0x50] sm:$0xf0]  ;;  %v9777_v56 = vld [vmem:[%s15566_s1 + $0x1bc] sm:$0xf] }
 0x181   :  { %5295 = vmatpush.bf16.msrb.mxu1 %v8964_v5  ;;  %v5077_v0 = vadd.f32 %v5076_v61, %v12941_v28  ;;  %v5089_v3 = vpop.f32.mrf.mxu1  ;;  %v6952_v5 = vor.u32 %v9843_v60, %v6949_v9  ;;  %v7144_v28 = vor.u32 %v9891_v62, %v7141_v63  ;;  %v6877_v60 = vld [vmem:[%s15566_s1 + $0x350] sm:$0xf0]  ;;  %v9873_v9 = vld [vmem:[%s15566_s1 + $0x4bc] sm:$0xf]  ;;  %v9723_v63 = vld [vmem:[%s15566_s1 + $0xc] sm:$0xf] }
 0x182   :  { %5308 = vmatpush.bf16.msrb.mxu2 %v9156_v6  ;;  %v9741_v6 = vld [vmem:[%s15566_s1 + $0x9c] sm:$0xf]  ;;  %v7069_v61 = vld [vmem:[%s15566_s1 + $0x4d0] sm:$0xf0] }
 0x183   :  { %5321 = vmatpush.bf16.msrb.mxu3 %v9348_v10  ;;  %5283 = vmatmul.bf16.vlgmr.msrb.gmra.mxu0 %v11426_v15  ;;  %v5090_v10 = vadd.f32 %v5089_v3, %v5077_v0  ;;  %v6544_v17 = vor.u32 %v9741_v6, %v6541_v7  ;;  %v6469_v0 = vld [vmem:[%s15566_s1 + $0x20] sm:$0xf0]  ;;  %v6880_v3 = vor.u32 %v9825_v59, %v6877_v60  ;;  %v9819_v6 = vld [vmem:[%s15566_s1 + $0x30c] sm:$0xf]  ;;  %v7357_v59 = vld [vmem:[%s15566_s1 + $0x710] sm:$0xf0] }
 0x184   :  { %5327 = vmatpush.bf16.msra.mxu0 %v6640_v11  ;;  %5296 = vmatmul.bf16.vlgmr.msrb.gmra.mxu1 %v11439_v21  ;;  %v6733_v11 = vld [vmem:[%s15566_s1 + $0x230] sm:$0xf0]  ;;  %v7072_v7 = vor.u32 %v9873_v9, %v7069_v61  ;;  %v9993_v60 = vld [vmem:[%s15566_s1 + $0x87c] sm:$0xf] }
 0x185   :  { %5340 = vmatpush.bf16.msra.mxu1 %v6832_v12  ;;  %5309 = vmatmul.bf16.vlgmr.msrb.gmra.mxu2 %v11437_v20  ;;  %v9837_v12 = vld [vmem:[%s15566_s1 + $0x39c] sm:$0xf]  ;;  %v7549_v61 = vld [vmem:[%s15566_s1 + $0x890] sm:$0xf0] }
 0x186   :  { %5353 = vmatpush.bf16.msra.mxu2 %v7024_v13  ;;  %5322 = vmatmul.bf16.vlgmr.msrb.gmra.mxu3 %v11447_v26  ;;  %v6925_v13 = vld [vmem:[%s15566_s1 + $0x3b0] sm:$0xf0] }
 0x187   :  { %5366 = vmatpush.bf16.msra.mxu3 %v7216_v18  ;;  %v6736_v18 = vor.u32 %v9789_v8, %v6733_v11  ;;  %v6928_v22 = vor.u32 %v9837_v12, %v6925_v13  ;;  %v6853_v8 = vld [vmem:[%s15566_s1 + $0x320] sm:$0xf0]  ;;  %v9957_v12 = vld [vmem:[%s15566_s1 + $0x75c] sm:$0xf]  ;;  %v7405_v13 = vld [vmem:[%s15566_s1 + $0x770] sm:$0xf0] }
 0x188   :  { %5328 = vmatpush.bf16.msra.mxu0 %v6616_v33  ;;  %v5102_v33 = vpop.f32.mrf.mxu2  ;;  %v5078_v51 = vpop.f32.mrf.mxu0 }
 0x189   :  { %5341 = vmatpush.bf16.msra.mxu1 %v6808_v37  ;;  %v6709_v37 = vld [vmem:[%s15566_s1 + $0x200] sm:$0xf0]  ;;  %v5103_v45 = vadd.f32 %v5102_v33, %v5090_v10  ;;  %v5115_v46 = vpop.f32.mrf.mxu3  ;;  %v5091_v49 = vpop.f32.mrf.mxu1  ;;  %v7981_v33 = vld [vmem:[%s15566_s1 + $0xbf0] sm:$0xf0] }
 0x18a   :  { %5354 = vmatpush.bf16.msra.mxu2 %v7000_v38  ;;  %v9831_v38 = vld [vmem:[%s15566_s1 + $0x36c] sm:$0xf]  ;;  %v7045_v10 = vld [vmem:[%s15566_s1 + $0x4a0] sm:$0xf0] }
 0x18b   :  { %5367 = vmatpush.bf16.msra.mxu3 %v7192_v47  ;;  %v9879_v47 = vld [vmem:[%s15566_s1 + $0x4ec] sm:$0xf]  ;;  %v13140_v50 = vadd.f32 %v5115_v46, %v5103_v45 }
 0x18c   :  { %5329 = vmatpush.bf16.msra.mxu0 %v6592_v52  ;;  %v6712_v52 = vor.u32 %v9783_v31, %v6709_v37  ;;  %v7096_v57 = vor.u32 %v9879_v47, %v7093_v58  ;;  %v6856_v31 = vor.u32 %v9819_v6, %v6853_v8  ;;  %v9951_v46 = vld [vmem:[%s15566_s1 + $0x72c] sm:$0xf]  ;;  %v7381_v47 = vld [vmem:[%s15566_s1 + $0x740] sm:$0xf0] }
 0x18d   :  { %5342 = vmatpush.bf16.msra.mxu1 %v6784_v53  ;;  %v6904_v53 = vor.u32 %v9831_v38, %v6901_v41  ;;  %v7408_v38 = vor.u32 %v9957_v12, %v7405_v13  ;;  %v9999_v58 = vld [vmem:[%s15566_s1 + $0x8ac] sm:$0xf]  ;;  %v7525_v12 = vld [vmem:[%s15566_s1 + $0x860] sm:$0xf0] }
 0x18e   :  { %5355 = vmatpush.bf16.msra.mxu2 %v6976_v54  ;;  %v9729_v54 = vld [vmem:[%s15566_s1 + $0x3c] sm:$0xf]  ;;  %v10047_v49 = vld [vmem:[%s15566_s1 + $0xa2c] sm:$0xf] }
 0x18f   :  { %5368 = vmatpush.bf16.msra.mxu3 %v7168_v2  ;;  %v6685_v2 = vld [vmem:[%s15566_s1 + $0x1d0] sm:$0xf0]  ;;  %v6496_v62 = vor.u32 %v9729_v54, %v6493_v55  ;;  %v7957_v54 = vld [vmem:[%s15566_s1 + $0xbc0] sm:$0xf0]  ;;  %v7384_v55 = vor.u32 %v9951_v46, %v7381_v47  ;;  %v9987_v8 = vld [vmem:[%s15566_s1 + $0x84c] sm:$0xf] }
 0x190   :  { %5330 = vmatpush.bf16.msra.mxu0 %v6568_v1  ;;  %v6688_v1 = vor.u32 %v9777_v56, %v6685_v2  ;;  %v5104_v11 = vpop.f32.mrf.mxu2  ;;  %v9945_v2 = vld [vmem:[%s15566_s1 + $0x6fc] sm:$0xf]  ;;  %v10035_v13 = vld [vmem:[%s15566_s1 + $0x9cc] sm:$0xf]  ;;  %v7693_v47 = vld [vmem:[%s15566_s1 + $0x9b0] sm:$0xf0] }
 0x191   :  { %5343 = vmatpush.bf16.msra.mxu1 %v6760_v4  ;;  %v9771_v4 = vld [vmem:[%s15566_s1 + $0x18c] sm:$0xf]  ;;  %v5117_v16 = vpop.f32.mrf.mxu3  ;;  %v10029_v46 = vld [vmem:[%s15566_s1 + $0x99c] sm:$0xf] }
 0x192   :  { %5356 = vmatpush.bf16.msra.mxu2 %v6952_v5  ;;  %v6661_v5 = vld [vmem:[%s15566_s1 + $0x1a0] sm:$0xf0]  ;;  %v10083_v16 = vld [vmem:[%s15566_s1 + $0xb4c] sm:$0xf] }
 0x193   :  { %5369 = vmatpush.bf16.msra.mxu3 %v7144_v28  ;;  %v9867_v28 = vld [vmem:[%s15566_s1 + $0x48c] sm:$0xf]  ;;  %v6664_v29 = vor.u32 %v9771_v4, %v6661_v5  ;;  %v7552_v5 = vor.u32 %v9993_v60, %v7549_v61 }
 0x194   :  { %5331 = vmatpush.bf16.msra.mxu0 %v6544_v17  ;;  %v6472_v17 = vor.u32 %v9723_v63, %v6469_v0  ;;  %v7048_v37 = vor.u32 %v9867_v28, %v7045_v10  ;;  %v7741_v63 = vld [vmem:[%s15566_s1 + $0xa10] sm:$0xf0]  ;;  %v10089_v0 = vld [vmem:[%s15566_s1 + $0xb7c] sm:$0xf]  ;;  %v9939_v4 = vld [vmem:[%s15566_s1 + $0x6cc] sm:$0xf] }
 0x195   :  { %5344 = vmatpush.bf16.msra.mxu1 %v6736_v18  ;;  %v7597_v18 = vld [vmem:[%s15566_s1 + $0x8f0] sm:$0xf0]  ;;  %v10544_v28 = vld [vmem:[%s15568_s2] sm:$0x3f]  ;;  %v10023_v60 = vld [vmem:[%s15566_s1 + $0x96c] sm:$0xf] }
 0x196   :  { %5357 = vmatpush.bf16.msra.mxu2 %v6928_v22  ;;  %v10053_v22 = vld [vmem:[%s15566_s1 + $0xa5c] sm:$0xf]  ;;  %v7600_v41 = vor.u32 %v10005_v14, %v7597_v18  ;;  %v853_v10 = vperm.slane %v10544_v28, 2  ;;  %v7717_v14 = vld [vmem:[%s15566_s1 + $0x9e0] sm:$0xf0] }
 0x197   :  { %5370 = vmatpush.bf16.msra.mxu3 %v7120_v32  ;;  %v10101_v32 = vld [vmem:[%s15566_s1 + $0xbdc] sm:$0xf]  ;;  %v7792_v45 = vor.u32 %v10053_v22, %v7789_v25  ;;  %v7528_v25 = vor.u32 %v9987_v8, %v7525_v12  ;;  %v7261_v8 = vld [vmem:[%s15566_s1 + $0x650] sm:$0xf0] }
 0x198   :  { %5332 = vmatpush.bf16.msra.mxu0 %v6520_v48  ;;  %v7984_v51 = vor.u32 %v10101_v32, %v7981_v33  ;;  %v7573_v48 = vld [vmem:[%s15566_s1 + $0x8c0] sm:$0xf0]  ;;  %v7309_v32 = vld [vmem:[%s15566_s1 + $0x6b0] sm:$0xf0]  ;;  %v9981_v33 = vld [vmem:[%s15566_s1 + $0x81c] sm:$0xf] }
 0x199   :  { %5345 = vmatpush.bf16.msra.mxu1 %v6712_v52  ;;  %v7765_v52 = vld [vmem:[%s15566_s1 + $0xa40] sm:$0xf0]  ;;  %v7576_v56 = vor.u32 %v9999_v58, %v7573_v48  ;;  %v10077_v58 = vld [vmem:[%s15566_s1 + $0xb1c] sm:$0xf]  ;;  %v7453_v12 = vld [vmem:[%s15566_s1 + $0x7d0] sm:$0xf0] }
 0x19a   :  { %5358 = vmatpush.bf16.msra.mxu2 %v6904_v53  ;;  %v10095_v53 = vld [vmem:[%s15566_s1 + $0xbac] sm:$0xf]  ;;  %v9969_v28 = vld [vmem:[%s15566_s1 + $0x7bc] sm:$0xf] }
 0x19b   :  { %5371 = vmatpush.bf16.msra.mxu3 %v7096_v57  ;;  %v7768_v57 = vor.u32 %v10047_v49, %v7765_v52  ;;  %v7960_v9 = vor.u32 %v10095_v53, %v7957_v54  ;;  %v7696_v53 = vor.u32 %v10029_v46, %v7693_v47  ;;  %v9927_v54 = vld [vmem:[%s15566_s1 + $0x66c] sm:$0xf]  ;;  %v7813_v47 = vld [vmem:[%s15566_s1 + $0xaa0] sm:$0xf0] }
 0x19c   :  { %5333 = vmatpush.bf16.msra.mxu0 %v6496_v62  ;;  %v10041_v62 = vld [vmem:[%s15566_s1 + $0x9fc] sm:$0xf]  ;;  %v10059_v46 = vld [vmem:[%s15566_s1 + $0xa8c] sm:$0xf] }
 0x19d   :  { %5346 = vmatpush.bf16.msra.mxu1 %v6688_v1  ;;  %v7933_v1 = vld [vmem:[%s15566_s1 + $0xb90] sm:$0xf0]  ;;  %v7744_v6 = vor.u32 %v10041_v62, %v7741_v63  ;;  %v10071_v63 = vld [vmem:[%s15566_s1 + $0xaec] sm:$0xf] }
 0x19e   :  { %5359 = vmatpush.bf16.msra.mxu2 %v6880_v3  ;;  %v7360_v3 = vor.u32 %v9945_v2, %v7357_v59  ;;  %v7936_v11 = vor.u32 %v10089_v0, %v7933_v1  ;;  %v7477_v59 = vld [vmem:[%s15566_s1 + $0x800] sm:$0xf0] }
 0x19f   :  { %5372 = vmatpush.bf16.msra.mxu3 %v7072_v7  ;;  %v7333_v7 = vld [vmem:[%s15566_s1 + $0x6e0] sm:$0xf0] }
 0x1a0   :  { %5334 = vmatpush.bf16.msra.mxu0 %v6472_v17  ;;  %v7909_v17 = vld [vmem:[%s15566_s1 + $0xb60] sm:$0xf0]  ;;  %v7336_v18 = vor.u32 %v9939_v4, %v7333_v7  ;;  %v5128_v22 = vpop.f32.mrf.mxu0  ;;  %v9921_v7 = vld [vmem:[%s15566_s1 + $0x63c] sm:$0xf] }
 0x1a1   :  { %5347 = vmatpush.bf16.msra.mxu1 %v6664_v29  ;;  %v7720_v29 = vor.u32 %v10035_v13, %v7717_v14  ;;  %v7861_v0 = vld [vmem:[%s15566_s1 + $0xb00] sm:$0xf0]  ;;  %v10017_v13 = vld [vmem:[%s15566_s1 + $0x93c] sm:$0xf]  ;;  %v7645_v14 = vld [vmem:[%s15566_s1 + $0x950] sm:$0xf0] }
 0x1a2   :  { %5360 = vmatpush.bf16.msra.mxu2 %v6856_v31  ;;  %v9933_v31 = vld [vmem:[%s15566_s1 + $0x69c] sm:$0xf] }
 0x1a3   :  { %5373 = vmatpush.bf16.msra.mxu3 %v7048_v37  ;;  %5335 = vmatmul.bf16.vlgmr.msra.gmra.mxu0 %v10909_v36  ;;  %v5129_v37 = vadd.f32 %v5128_v22, %v853_v10  ;;  %v7312_v49 = vor.u32 %v9933_v31, %v7309_v32  ;;  %v9915_v22 = vld [vmem:[%s15566_s1 + $0x60c] sm:$0xf]  ;;  %v7648_v31 = vor.u32 %v10017_v13, %v7645_v14  ;;  %v10137_v13 = vld [vmem:[%s15566_s1 + $0xcfc] sm:$0xf]  ;;  %v8125_v14 = vld [vmem:[%s15566_s1 + $0xd10] sm:$0xf0] }
 0x1a4   :  { %5379 = vmatpush.bf16.msrb.mxu0 %v7408_v38  ;;  %5348 = vmatmul.bf16.vlgmr.msra.gmra.mxu1 %v10919_v43  ;;  %v5141_v38 = vpop.f32.mrf.mxu1  ;;  %v9963_v32 = vld [vmem:[%s15566_s1 + $0x78c] sm:$0xf] }
 0x1a5   :  { %5392 = vmatpush.bf16.msrb.mxu1 %v7600_v41  ;;  %5361 = vmatmul.bf16.vlgmr.msra.gmra.mxu2 %v10907_v35  ;;  %v7912_v41 = vor.u32 %v10083_v16, %v7909_v17  ;;  %v5142_v48 = vadd.f32 %v5141_v38, %v5129_v37  ;;  %v10065_v16 = vld [vmem:[%s15566_s1 + $0xabc] sm:$0xf]  ;;  %v7837_v17 = vld [vmem:[%s15566_s1 + $0xad0] sm:$0xf0]  ;;  %v10011_v37 = vld [vmem:[%s15566_s1 + $0x90c] sm:$0xf] }
 0x1a6   :  { %5405 = vmatpush.bf16.msrb.mxu2 %v7792_v45  ;;  %5374 = vmatmul.bf16.vlgmr.msra.gmra.mxu3 %v10917_v42  ;;  %v7501_v45 = vld [vmem:[%s15566_s1 + $0x830] sm:$0xf0] }
 0x1a7   :  { %5418 = vmatpush.bf16.msrb.mxu3 %v7984_v51  ;;  %v7885_v51 = vld [vmem:[%s15566_s1 + $0xb30] sm:$0xf0]  ;;  %v7504_v52 = vor.u32 %v9981_v33, %v7501_v45  ;;  %v7429_v33 = vld [vmem:[%s15566_s1 + $0x7a0] sm:$0xf0] }
 0x1a8   :  { %5380 = vmatpush.bf16.msrb.mxu0 %v7384_v55  ;;  %v7285_v55 = vld [vmem:[%s15566_s1 + $0x680] sm:$0xf0]  ;;  %v7888_v2 = vor.u32 %v10077_v58, %v7885_v51  ;;  %v5130_v4 = vpop.f32.mrf.mxu0  ;;  %v10149_v51 = vld [vmem:[%s15566_s1 + $0xd5c] sm:$0xf] }
 0x1a9   :  { %5393 = vmatpush.bf16.msrb.mxu1 %v7576_v56  ;;  %v9975_v56 = vld [vmem:[%s15566_s1 + $0x7ec] sm:$0xf]  ;;  %v5167_v62 = vpop.f32.mrf.mxu3  ;;  %v7288_v1 = vor.u32 %v9927_v54, %v7285_v55  ;;  %v7621_v45 = vld [vmem:[%s15566_s1 + $0x920] sm:$0xf0]  ;;  %v10245_v54 = vld [vmem:[%s15566_s1 + $0x105c] sm:$0xf] }
 0x1aa   :  { %5406 = vmatpush.bf16.msrb.mxu2 %v7768_v57  ;;  %v5154_v57 = vpop.f32.mrf.mxu2  ;;  %v8557_v55 = vld [vmem:[%s15566_s1 + $0x1070] sm:$0xf0] }
 0x1ab   :  { %5419 = vmatpush.bf16.msrb.mxu3 %v7960_v9  ;;  %v7669_v9 = vld [vmem:[%s15566_s1 + $0x980] sm:$0xf0]  ;;  %v5155_v61 = vadd.f32 %v5154_v57, %v5142_v48  ;;  %v8173_v48 = vld [vmem:[%s15566_s1 + $0xd70] sm:$0xf0]  ;;  %v7624_v57 = vor.u32 %v10011_v37, %v7621_v45  ;;  %v10179_v45 = vld [vmem:[%s15566_s1 + $0xe4c] sm:$0xf] }
 0x1ac   :  { %5381 = vmatpush.bf16.msrb.mxu0 %v7360_v3  ;;  %v5143_v10 = vpop.f32.mrf.mxu1 }
 0x1ad   :  { %5394 = vmatpush.bf16.msrb.mxu1 %v7552_v5  ;;  %v13341_v3 = vadd.f32 %v5167_v62, %v5155_v61  ;;  %v7480_v5 = vor.u32 %v9975_v56, %v7477_v59  ;;  %v7432_v56 = vor.u32 %v9963_v32, %v7429_v33  ;;  %v8749_v59 = vld [vmem:[%s15566_s1 + $0x11f0] sm:$0xf0]  ;;  %v8560_v62 = vor.u32 %v10245_v54, %v8557_v55 }
 0x1ae   :  { %5407 = vmatpush.bf16.msrb.mxu2 %v7744_v6  ;;  %v7672_v6 = vor.u32 %v10023_v60, %v7669_v9  ;;  %v7816_v60 = vor.u32 %v10059_v46, %v7813_v47  ;;  %v8176_v9 = vor.u32 %v10149_v51, %v8173_v48  ;;  %v8128_v32 = vor.u32 %v10137_v13, %v8125_v14  ;;  %v8293_v47 = vld [vmem:[%s15566_s1 + $0xe60] sm:$0xf0]  ;;  %v10275_v48 = vld [vmem:[%s15566_s1 + $0x114c] sm:$0xf] }
 0x1af   :  { %5420 = vmatpush.bf16.msrb.mxu3 %v7936_v11  ;;  %v7864_v11 = vor.u32 %v10071_v63, %v7861_v0  ;;  %v10143_v63 = vld [vmem:[%s15566_s1 + $0xd2c] sm:$0xf]  ;;  %v8149_v0 = vld [vmem:[%s15566_s1 + $0xd40] sm:$0xf0]  ;;  %v8296_v54 = vor.u32 %v10179_v45, %v8293_v47  ;;  %v8221_v47 = vld [vmem:[%s15566_s1 + $0xdd0] sm:$0xf0] }
 0x1b0   :  { %5382 = vmatpush.bf16.msrb.mxu0 %v7336_v18  ;;  %v7264_v18 = vor.u32 %v9921_v7, %v7261_v8  ;;  %v8533_v7 = vld [vmem:[%s15566_s1 + $0x1040] sm:$0xf0]  ;;  %v10287_v8 = vld [vmem:[%s15566_s1 + $0x11ac] sm:$0xf]  ;;  %v8152_v10 = vor.u32 %v10143_v63, %v8149_v0  ;;  %v8461_v63 = vld [vmem:[%s15566_s1 + $0xfb0] sm:$0xf0] }
 0x1b1   :  { %5395 = vmatpush.bf16.msrb.mxu1 %v7528_v25  ;;  %v7237_v25 = vld [vmem:[%s15566_s1 + $0x620] sm:$0xf0]  ;;  %v5169_v58 = vpop.f32.mrf.mxu3  ;;  %v10269_v0 = vld [vmem:[%s15566_s1 + $0x111c] sm:$0xf]  ;;  %v10215_v13 = vld [vmem:[%s15566_s1 + $0xf6c] sm:$0xf] }
 0x1b2   :  { %5408 = vmatpush.bf16.msrb.mxu2 %v7720_v29  ;;  %v7456_v29 = vor.u32 %v9969_v28, %v7453_v12  ;;  %v5156_v38 = vpop.f32.mrf.mxu2  ;;  %v8725_v28 = vld [vmem:[%s15566_s1 + $0x11c0] sm:$0xf0]  ;;  %v10227_v58 = vld [vmem:[%s15566_s1 + $0xfcc] sm:$0xf] }
 0x1b3   :  { %5421 = vmatpush.bf16.msrb.mxu3 %v7912_v41  ;;  %v7840_v41 = vor.u32 %v10065_v16, %v7837_v17  ;;  %v10185_v16 = vld [vmem:[%s15566_s1 + $0xe7c] sm:$0xf]  ;;  %v8728_v17 = vor.u32 %v10287_v8, %v8725_v28  ;;  %v10131_v38 = vld [vmem:[%s15566_s1 + $0xccc] sm:$0xf]  ;;  %v8485_v51 = vld [vmem:[%s15566_s1 + $0xfe0] sm:$0xf0] }
 0x1b4   :  { %5383 = vmatpush.bf16.msrb.mxu0 %v7312_v49  ;;  %v10197_v49 = vld [vmem:[%s15566_s1 + $0xedc] sm:$0xf]  ;;  %v8488_v55 = vor.u32 %v10227_v58, %v8485_v51  ;;  %v8053_v8 = vld [vmem:[%s15566_s1 + $0xc80] sm:$0xf0]  ;;  %v10167_v28 = vld [vmem:[%s15566_s1 + $0xdec] sm:$0xf] }
 0x1b5   :  { %5396 = vmatpush.bf16.msrb.mxu1 %v7504_v52  ;;  %v7240_v52 = vor.u32 %v9915_v22, %v7237_v25  ;;  %v10233_v22 = vld [vmem:[%s15566_s1 + $0xffc] sm:$0xf]  ;;  %v8509_v25 = vld [vmem:[%s15566_s1 + $0x1010] sm:$0xf0]  ;;  %v8437_v14 = vld [vmem:[%s15566_s1 + $0xf80] sm:$0xf0] }
 0x1b6   :  { %5409 = vmatpush.bf16.msrb.mxu2 %v7696_v53  ;;  %v8365_v53 = vld [vmem:[%s15566_s1 + $0xef0] sm:$0xf0]  ;;  %v8512_v37 = vor.u32 %v10233_v22, %v8509_v25  ;;  %v8629_v22 = vld [vmem:[%s15566_s1 + $0x1100] sm:$0xf0]  ;;  %v10209_v58 = vld [vmem:[%s15566_s1 + $0xf3c] sm:$0xf] }
 0x1b7   :  { %5422 = vmatpush.bf16.msrb.mxu3 %v7888_v2  ;;  %v10293_v2 = vld [vmem:[%s15566_s1 + $0x11dc] sm:$0xf]  ;;  %v8368_v61 = vor.u32 %v10197_v49, %v8365_v53  ;;  %v8677_v49 = vld [vmem:[%s15566_s1 + $0x1160] sm:$0xf0]  ;;  %v8413_v51 = vld [vmem:[%s15566_s1 + $0xf50] sm:$0xf0] }
 0x1b8   :  { %5384 = vmatpush.bf16.msrb.mxu0 %v7288_v1  ;;  %v10191_v1 = vld [vmem:[%s15566_s1 + $0xeac] sm:$0xf]  ;;  %v8752_v4 = vor.u32 %v10293_v2, %v8749_v59  ;;  %v10173_v2 = vld [vmem:[%s15566_s1 + $0xe1c] sm:$0xf] }
 0x1b9   :  { %5397 = vmatpush.bf16.msrb.mxu1 %v7480_v5  ;;  %v8341_v5 = vld [vmem:[%s15566_s1 + $0xec0] sm:$0xf0] }
 0x1ba   :  { %5410 = vmatpush.bf16.msrb.mxu2 %v7672_v6  ;;  %v10239_v6 = vld [vmem:[%s15566_s1 + $0x102c] sm:$0xf] }
 0x1bb   :  { %5423 = vmatpush.bf16.msrb.mxu3 %v7864_v11  ;;  %v8344_v11 = vor.u32 %v10191_v1, %v8341_v5  ;;  %v8536_v12 = vor.u32 %v10239_v6, %v8533_v7  ;;  %v10119_v7 = vld [vmem:[%s15566_s1 + $0xc6c] sm:$0xf] }
 0x1bc   :  { %5385 = vmatpush.bf16.msrb.mxu0 %v7264_v18  ;;  %v8317_v18 = vld [vmem:[%s15566_s1 + $0xe90] sm:$0xf0]  ;;  %v8056_v25 = vor.u32 %v10119_v7, %v8053_v8  ;;  %v10437_v7 = vld [vmem:[%s15566_s1 + $0x165c] sm:$0xf] }
 0x1bd   :  { %5398 = vmatpush.bf16.msrb.mxu1 %v7456_v29  ;;  %v10281_v29 = vld [vmem:[%s15566_s1 + $0x117c] sm:$0xf]  ;;  %v8320_v33 = vor.u32 %v10185_v16, %v8317_v18  ;;  %v10263_v18 = vld [vmem:[%s15566_s1 + $0x10ec] sm:$0xf]  ;;  %v9325_v8 = vld [vmem:[%s15566_s1 + $0x1670] sm:$0xf0] }
 0x1be   :  { %5411 = vmatpush.bf16.msrb.mxu2 %v7648_v31  ;;  %v8701_v31 = vld [vmem:[%s15566_s1 + $0x1190] sm:$0xf0] }
 0x1bf   :  { %5424 = vmatpush.bf16.msrb.mxu3 %v7840_v41  ;;  %v8101_v41 = vld [vmem:[%s15566_s1 + $0xce0] sm:$0xf0]  ;;  %v8704_v46 = vor.u32 %v10281_v29, %v8701_v31 }
 0x1c0   :  { %5386 = vmatpush.bf16.msrb.mxu0 %v7240_v52  ;;  %v8104_v52 = vor.u32 %v10131_v38, %v8101_v41  ;;  %v5180_v53 = vpop.f32.mrf.mxu0  ;;  %v8029_v38 = vld [vmem:[%s15566_s1 + $0xc50] sm:$0xf0]  ;;  %v10161_v41 = vld [vmem:[%s15566_s1 + $0xdbc] sm:$0xf] }
 0x1c1   :  { %5399 = vmatpush.bf16.msrb.mxu1 %v7432_v56  ;;  %v10125_v56 = vld [vmem:[%s15566_s1 + $0xc9c] sm:$0xf]  ;;  %v5181_v59 = vadd.f32 %v5180_v53, %v13341_v3  ;;  %v8653_v3 = vld [vmem:[%s15566_s1 + $0x1130] sm:$0xf0]  ;;  %v10107_v53 = vld [vmem:[%s15566_s1 + $0xc0c] sm:$0xf] }
 0x1c2   :  { %5412 = vmatpush.bf16.msrb.mxu2 %v7624_v57  ;;  %v8077_v57 = vld [vmem:[%s15566_s1 + $0xcb0] sm:$0xf0] }
 0x1c3   :  { %5425 = vmatpush.bf16.msrb.mxu3 %v7816_v60  ;;  %5387 = vmatmul.bf16.vlgmr.msrb.gmra.mxu0 %v11035_v39  ;;  %v5193_v60 = vpop.f32.mrf.mxu1 }
 0x1c4   :  { %5431 = vmatpush.bf16.msra.mxu0 %v8176_v9  ;;  %5400 = vmatmul.bf16.vlgmr.msrb.gmra.mxu1 %v11039_v44  ;;  %v8680_v9 = vor.u32 %v10275_v48, %v8677_v49  ;;  %v5194_v1 = vadd.f32 %v5193_v60, %v5181_v59  ;;  %v10257_v48 = vld [vmem:[%s15566_s1 + $0x10bc] sm:$0xf]  ;;  %v8605_v49 = vld [vmem:[%s15566_s1 + $0x10d0] sm:$0xf0]  ;;  %v10203_v59 = vld [vmem:[%s15566_s1 + $0xf0c] sm:$0xf] }
 0x1c5   :  { %5444 = vmatpush.bf16.msra.mxu1 %v8368_v61  ;;  %5413 = vmatmul.bf16.vlgmr.msrb.gmra.mxu2 %v11027_v34  ;;  %v8269_v61 = vld [vmem:[%s15566_s1 + $0xe30] sm:$0xf0] }
 0x1c6   :  { %5457 = vmatpush.bf16.msra.mxu2 %v8560_v62  ;;  %5426 = vmatmul.bf16.vlgmr.msrb.gmra.mxu3 %v11037_v40  ;;  %v10221_v62 = vld [vmem:[%s15566_s1 + $0xf9c] sm:$0xf]  ;;  %v8272_v5 = vor.u32 %v10173_v2, %v8269_v61  ;;  %v8197_v2 = vld [vmem:[%s15566_s1 + $0xda0] sm:$0xf0] }
 0x1c7   :  { %5470 = vmatpush.bf16.msra.mxu3 %v8752_v4  ;;  %v8080_v4 = vor.u32 %v10125_v56, %v8077_v57  ;;  %v8464_v6 = vor.u32 %v10221_v62, %v8461_v63  ;;  %v8416_v56 = vor.u32 %v10209_v58, %v8413_v51  ;;  %v10155_v57 = vld [vmem:[%s15566_s1 + $0xd8c] sm:$0xf]  ;;  %v8389_v61 = vld [vmem:[%s15566_s1 + $0xf20] sm:$0xf0]  ;;  %v10329_v58 = vld [vmem:[%s15566_s1 + $0x12fc] sm:$0xf] }
 0x1c8   :  { %5432 = vmatpush.bf16.msra.mxu0 %v8152_v10  ;;  %v5206_v10 = vpop.f32.mrf.mxu2  ;;  %v5182_v31 = vpop.f32.mrf.mxu0  ;;  %v10251_v62 = vld [vmem:[%s15566_s1 + $0x108c] sm:$0xf]  ;;  %v8581_v63 = vld [vmem:[%s15566_s1 + $0x10a0] sm:$0xf0]  ;;  %v8893_v51 = vld [vmem:[%s15566_s1 + $0x1310] sm:$0xf0] }
 0x1c9   :  { %5445 = vmatpush.bf16.msra.mxu1 %v8344_v11  ;;  %v8656_v11 = vor.u32 %v10269_v0, %v8653_v3  ;;  %v5207_v16 = vadd.f32 %v5206_v10, %v5194_v1  ;;  %v10341_v3 = vld [vmem:[%s15566_s1 + $0x135c] sm:$0xf]  ;;  %v8941_v1 = vld [vmem:[%s15566_s1 + $0x1370] sm:$0xf0]  ;;  %v8392_v10 = vor.u32 %v10203_v59, %v8389_v61  ;;  %v10371_v61 = vld [vmem:[%s15566_s1 + $0x144c] sm:$0xf] }
 0x1ca   :  { %5458 = vmatpush.bf16.msra.mxu2 %v8536_v12  ;;  %v8245_v12 = vld [vmem:[%s15566_s1 + $0xe00] sm:$0xf0] }
 0x1cb   :  { %5471 = vmatpush.bf16.msra.mxu3 %v8728_v17  ;;  %v5219_v17 = vpop.f32.mrf.mxu3  ;;  %v5195_v45 = vpop.f32.mrf.mxu1 }
 0x1cc   :  { %5433 = vmatpush.bf16.msra.mxu0 %v8128_v32  ;;  %v13540_v29 = vadd.f32 %v5219_v17, %v5207_v16  ;;  %v8248_v32 = vor.u32 %v10167_v28, %v8245_v12  ;;  %v8200_v28 = vor.u32 %v10155_v57, %v8197_v2  ;;  %v9517_v12 = vld [vmem:[%s15566_s1 + $0x17f0] sm:$0xf0]  ;;  %v9328_v17 = vor.u32 %v10437_v7, %v9325_v8 }
 0x1cd   :  { %5446 = vmatpush.bf16.msra.mxu1 %v8320_v33  ;;  %v8440_v33 = vor.u32 %v10215_v13, %v8437_v14  ;;  %v8584_v13 = vor.u32 %v10251_v62, %v8581_v63  ;;  %v8944_v14 = vor.u32 %v10341_v3, %v8941_v1  ;;  %v8896_v57 = vor.u32 %v10329_v58, %v8893_v51  ;;  %v9061_v63 = vld [vmem:[%s15566_s1 + $0x1460] sm:$0xf0]  ;;  %v10407_v58 = vld [vmem:[%s15566_s1 + $0x156c] sm:$0xf] }
 0x1ce   :  { %5459 = vmatpush.bf16.msra.mxu2 %v8512_v37  ;;  %v10113_v37 = vld [vmem:[%s15566_s1 + $0xc3c] sm:$0xf]  ;;  %v9253_v3 = vld [vmem:[%s15566_s1 + $0x15e0] sm:$0xf0] }
 0x1cf   :  { %5472 = vmatpush.bf16.msra.mxu3 %v8704_v46  ;;  %v8632_v46 = vor.u32 %v10263_v18, %v8629_v22  ;;  %v10335_v18 = vld [vmem:[%s15566_s1 + $0x132c] sm:$0xf]  ;;  %v8917_v22 = vld [vmem:[%s15566_s1 + $0x1340] sm:$0xf0] }
 0x1d0   :  { %5434 = vmatpush.bf16.msra.mxu0 %v8104_v52  ;;  %v8032_v52 = vor.u32 %v10113_v37, %v8029_v38  ;;  %v5208_v60 = vpop.f32.mrf.mxu2  ;;  %v9301_v37 = vld [vmem:[%s15566_s1 + $0x1640] sm:$0xf0]  ;;  %v10479_v38 = vld [vmem:[%s15566_s1 + $0x17ac] sm:$0xf]  ;;  %v8920_v45 = vor.u32 %v10335_v18, %v8917_v22  ;;  %v9229_v18 = vld [vmem:[%s15566_s1 + $0x15b0] sm:$0xf0] }
 0x1d1   :  { %5447 = vmatpush.bf16.msra.mxu1 %v8296_v54  ;;  %v8005_v54 = vld [vmem:[%s15566_s1 + $0xc20] sm:$0xf0]  ;;  %v10323_v60 = vld [vmem:[%s15566_s1 + $0x12cc] sm:$0xf]  ;;  %v10461_v22 = vld [vmem:[%s15566_s1 + $0x171c] sm:$0xf] }
 0x1d2   :  { %5460 = vmatpush.bf16.msra.mxu2 %v8488_v55  ;;  %v8224_v55 = vor.u32 %v10161_v41, %v8221_v47  ;;  %v9493_v41 = vld [vmem:[%s15566_s1 + $0x17c0] sm:$0xf0] }
 0x1d3   :  { %5473 = vmatpush.bf16.msra.mxu3 %v8680_v9  ;;  %v8608_v9 = vor.u32 %v10257_v48, %v8605_v49  ;;  %v5221_v0 = vpop.f32.mrf.mxu3  ;;  %v10377_v48 = vld [vmem:[%s15566_s1 + $0x147c] sm:$0xf]  ;;  %v9496_v49 = vor.u32 %v10479_v38, %v9493_v41  ;;  %v8821_v38 = vld [vmem:[%s15566_s1 + $0x1280] sm:$0xf0]  ;;  %v10359_v41 = vld [vmem:[%s15566_s1 + $0x13ec] sm:$0xf] }
 0x1d4   :  { %5435 = vmatpush.bf16.msra.mxu0 %v8080_v4  ;;  %v10389_v4 = vld [vmem:[%s15566_s1 + $0x14dc] sm:$0xf]  ;;  %v10419_v0 = vld [vmem:[%s15566_s1 + $0x15cc] sm:$0xf]  ;;  %v9205_v51 = vld [vmem:[%s15566_s1 + $0x1580] sm:$0xf0] }
 0x1d5   :  { %5448 = vmatpush.bf16.msra.mxu1 %v8272_v5  ;;  %v8008_v5 = vor.u32 %v10107_v53, %v8005_v54  ;;  %v10425_v53 = vld [vmem:[%s15566_s1 + $0x15fc] sm:$0xf]  ;;  %v9277_v54 = vld [vmem:[%s15566_s1 + $0x1610] sm:$0xf0] }
 0x1d6   :  { %5461 = vmatpush.bf16.msra.mxu2 %v8464_v6  ;;  %v9133_v6 = vld [vmem:[%s15566_s1 + $0x14f0] sm:$0xf0]  ;;  %v9280_v59 = vor.u32 %v10425_v53, %v9277_v54  ;;  %v9397_v53 = vld [vmem:[%s15566_s1 + $0x1700] sm:$0xf0] }
 0x1d7   :  { %5474 = vmatpush.bf16.msra.mxu3 %v8656_v11  ;;  %v10485_v11 = vld [vmem:[%s15566_s1 + $0x17dc] sm:$0xf]  ;;  %v9136_v16 = vor.u32 %v10389_v4, %v9133_v6  ;;  %v10467_v4 = vld [vmem:[%s15566_s1 + $0x174c] sm:$0xf] }
 0x1d8   :  { %5436 = vmatpush.bf16.msra.mxu0 %v8056_v25  ;;  %v10383_v25 = vld [vmem:[%s15566_s1 + $0x14ac] sm:$0xf]  ;;  %v9520_v31 = vor.u32 %v10485_v11, %v9517_v12  ;;  %v10317_v11 = vld [vmem:[%s15566_s1 + $0x129c] sm:$0xf]  ;;  %v8845_v12 = vld [vmem:[%s15566_s1 + $0x12b0] sm:$0xf0] }
 0x1d9   :  { %5449 = vmatpush.bf16.msra.mxu1 %v8248_v32  ;;  %v9109_v32 = vld [vmem:[%s15566_s1 + $0x14c0] sm:$0xf0] }
 0x1da   :  { %5462 = vmatpush.bf16.msra.mxu2 %v8440_v33  ;;  %v10431_v33 = vld [vmem:[%s15566_s1 + $0x162c] sm:$0xf] }
 0x1db   :  { %5475 = vmatpush.bf16.msra.mxu3 %v8632_v46  ;;  %v9112_v46 = vor.u32 %v10383_v25, %v9109_v32  ;;  %v9304_v47 = vor.u32 %v10431_v33, %v9301_v37  ;;  %v9421_v25 = vld [vmem:[%s15566_s1 + $0x1730] sm:$0xf0]  ;;  %v10311_v37 = vld [vmem:[%s15566_s1 + $0x126c] sm:$0xf] }
 0x1dc   :  { %5437 = vmatpush.bf16.msra.mxu0 %v8032_v52  ;;  %v9085_v52 = vld [vmem:[%s15566_s1 + $0x1490] sm:$0xf0] }
 0x1dd   :  { %5450 = vmatpush.bf16.msra.mxu1 %v8224_v55  ;;  %v10473_v55 = vld [vmem:[%s15566_s1 + $0x177c] sm:$0xf]  ;;  %v9088_v2 = vor.u32 %v10377_v48, %v9085_v52  ;;  %v10455_v52 = vld [vmem:[%s15566_s1 + $0x16ec] sm:$0xf] }
 0x1de   :  { %5463 = vmatpush.bf16.msra.mxu2 %v8416_v56  ;;  %v9469_v56 = vld [vmem:[%s15566_s1 + $0x1790] sm:$0xf0] }
 0x1df   :  { %5476 = vmatpush.bf16.msra.mxu3 %v8608_v9  ;;  %v8869_v9 = vld [vmem:[%s15566_s1 + $0x12e0] sm:$0xf0]  ;;  %v9472_v62 = vor.u32 %v10473_v55, %v9469_v56  ;;  %v8824_v55 = vor.u32 %v10311_v37, %v8821_v38  ;;  %v7027_v37 = vld [vmem:[%s15566_s1 + $0x460] sm:$0xf]  ;;  %v9865_v38 = vld [vmem:[%s15566_s1 + $0x474] sm:$0xf0] }
 0x1e0   :  { %5438 = vmatpush.bf16.msra.mxu0 %v8008_v5  ;;  %v5232_v1 = vpop.f32.mrf.mxu0  ;;  %v9445_v5 = vld [vmem:[%s15566_s1 + $0x1760] sm:$0xf0]  ;;  %v8872_v7 = vor.u32 %v10323_v60, %v8869_v9  ;;  %v10305_v60 = vld [vmem:[%s15566_s1 + $0x123c] sm:$0xf]  ;;  %v8797_v9 = vld [vmem:[%s15566_s1 + $0x1250] sm:$0xf0] }
 0x1e1   :  { %5451 = vmatpush.bf16.msra.mxu1 %v8200_v28  ;;  %v5233_v6 = vadd.f32 %v5232_v1, %v13540_v29  ;;  %v5245_v8 = vpop.f32.mrf.mxu1  ;;  %v9064_v28 = vor.u32 %v10371_v61, %v9061_v63  ;;  %v9448_v29 = vor.u32 %v10467_v4, %v9445_v5  ;;  %v10353_v61 = vld [vmem:[%s15566_s1 + $0x13bc] sm:$0xf]  ;;  %v8989_v63 = vld [vmem:[%s15566_s1 + $0x13d0] sm:$0xf0]  ;;  %v8800_v5 = vor.u32 %v10305_v60, %v8797_v9  ;;  %v7195_v60 = vld [vmem:[%s15566_s1 + $0x5b0] sm:$0xf] }
 0x1e2   :  { %5464 = vmatpush.bf16.msra.mxu2 %v8392_v10  ;;  %v9256_v10 = vor.u32 %v10419_v0, %v9253_v3  ;;  %v10401_v0 = vld [vmem:[%s15566_s1 + $0x153c] sm:$0xf]  ;;  %v9181_v3 = vld [vmem:[%s15566_s1 + $0x1550] sm:$0xf0]  ;;  %v9907_v9 = vld [vmem:[%s15566_s1 + $0x5c4] sm:$0xf0] }
 0x1e3   :  { %5477 = vmatpush.bf16.msra.mxu3 %v8584_v13  ;;  %5439 = vmatmul.bf16.vlgmr.msra.gmra.mxu0 %v11222_v19  ;;  %v10365_v13 = vld [vmem:[%s15566_s1 + $0x141c] sm:$0xf]  ;;  %v9373_v4 = vld [vmem:[%s15566_s1 + $0x16d0] sm:$0xf0] }
 0x1e4   :  { %5483 = vmatpush.bf16.msrb.mxu0 %v8944_v14  ;;  %5452 = vmatmul.bf16.vlgmr.msra.gmra.mxu1 %v11235_v24  ;;  %v5246_v14 = vadd.f32 %v5245_v8, %v5233_v6  ;;  %v10449_v1 = vld [vmem:[%s15566_s1 + $0x16bc] sm:$0xf]  ;;  %v10299_v6 = vld [vmem:[%s15566_s1 + $0x120c] sm:$0xf]  ;;  %v8992_v8 = vor.u32 %v10353_v61, %v8989_v63 }
 0x1e5   :  { %5496 = vmatpush.bf16.msrb.mxu1 %v9136_v16  ;;  %5465 = vmatmul.bf16.vlgmr.msra.gmra.mxu2 %v11233_v23  ;;  %v9037_v16 = vld [vmem:[%s15566_s1 + $0x1430] sm:$0xf0] }
 0x1e6   :  { %5509 = vmatpush.bf16.msrb.mxu2 %v9328_v17  ;;  %5478 = vmatmul.bf16.vlgmr.msra.gmra.mxu3 %v11243_v27  ;;  %v10413_v17 = vld [vmem:[%s15566_s1 + $0x159c] sm:$0xf]  ;;  %v9040_v32 = vor.u32 %v10365_v13, %v9037_v16  ;;  %v9376_v13 = vor.u32 %v10449_v1, %v9373_v4  ;;  %v9349_v16 = vld [vmem:[%s15566_s1 + $0x16a0] sm:$0xf0]  ;;  %v6787_v1 = vld [vmem:[%s15566_s1 + $0x280] sm:$0xf]  ;;  %v7196_v4 = vor.u32 %v9907_v9, %v7195_v60 }
 0x1e7   :  { %5522 = vmatpush.bf16.msrb.mxu3 %v9520_v31  ;;  %v8848_v31 = vor.u32 %v10317_v11, %v8845_v12  ;;  %v9232_v33 = vor.u32 %v10413_v17, %v9229_v18  ;;  %v8965_v11 = vld [vmem:[%s15566_s1 + $0x13a0] sm:$0xf0]  ;;  %v10395_v12 = vld [vmem:[%s15566_s1 + $0x150c] sm:$0xf]  ;;  %v6643_v18 = vld [vmem:[%s15566_s1 + $0x160] sm:$0xf] }
 0x1e8   :  { %5484 = vmatpush.bf16.msrb.mxu0 %v8920_v45  ;;  %v9424_v45 = vor.u32 %v10461_v22, %v9421_v25  ;;  %v5234_v54 = vpop.f32.mrf.mxu0  ;;  %v9769_v22 = vld [vmem:[%s15566_s1 + $0x174] sm:$0xf0]  ;;  %v6835_v25 = vld [vmem:[%s15566_s1 + $0x2e0] sm:$0xf]  ;;  %v9739_v60 = vld [vmem:[%s15566_s1 + $0x84] sm:$0xf0] }
 0x1e9   :  { %5497 = vmatpush.bf16.msrb.mxu1 %v9112_v46  ;;  %v5258_v46 = vpop.f32.mrf.mxu2  ;;  %v5247_v56 = vpop.f32.mrf.mxu1  ;;  %v6811_v54 = vld [vmem:[%s15566_s1 + $0x2b0] sm:$0xf] }
 0x1ea   :  { %5510 = vmatpush.bf16.msrb.mxu2 %v9304_v47  ;;  %v9013_v47 = vld [vmem:[%s15566_s1 + $0x1400] sm:$0xf0]  ;;  %v5259_v48 = vadd.f32 %v5258_v46, %v5246_v14  ;;  %v10443_v14 = vld [vmem:[%s15566_s1 + $0x168c] sm:$0xf]  ;;  %v7219_v46 = vld [vmem:[%s15566_s1 + $0x5e0] sm:$0xf] }
 0x1eb   :  { %5523 = vmatpush.bf16.msrb.mxu3 %v9496_v49  ;;  %v5271_v49 = vpop.f32.mrf.mxu3  ;;  %v9811_v56 = vld [vmem:[%s15566_s1 + $0x2c4] sm:$0xf0]  ;;  %v6715_v9 = vld [vmem:[%s15566_s1 + $0x1f0] sm:$0xf] }
 0x1ec   :  { %5485 = vmatpush.bf16.msrb.mxu0 %v8896_v57  ;;  %v13739_v57 = vadd.f32 %v5271_v49, %v5259_v48  ;;  %v7028_v49 = vor.u32 %v9865_v38, %v7027_v37 }
 0x1ed   :  { %5498 = vmatpush.bf16.msrb.mxu1 %v9088_v2  ;;  %v9016_v2 = vor.u32 %v10359_v41, %v9013_v47  ;;  %v9913_v47 = vld [vmem:[%s15566_s1 + $0x5f4] sm:$0xf0] }
 0x1ee   :  { %5511 = vmatpush.bf16.msrb.mxu2 %v9280_v59  ;;  %v9208_v59 = vor.u32 %v10407_v58, %v9205_v51  ;;  %v9352_v58 = vor.u32 %v10443_v14, %v9349_v16  ;;  %v6644_v51 = vor.u32 %v9769_v22, %v6643_v18  ;;  %v6763_v14 = vld [vmem:[%s15566_s1 + $0x250] sm:$0xf]  ;;  %v9847_v22 = vld [vmem:[%s15566_s1 + $0x3e4] sm:$0xf0] }
 0x1ef   :  { %5524 = vmatpush.bf16.msrb.mxu3 %v9472_v62  ;;  %v9400_v62 = vor.u32 %v10455_v52, %v9397_v53  ;;  %v6619_v52 = vld [vmem:[%s15566_s1 + $0x130] sm:$0xf]  ;;  %v9763_v53 = vld [vmem:[%s15566_s1 + $0x144] sm:$0xf0] }
 0x1f0   :  { %5486 = vmatpush.bf16.msrb.mxu0 %v8872_v7  ;;  %v8773_v7 = vld [vmem:[%s15566_s1 + $0x1220] sm:$0xf0]  ;;  %v6620_v61 = vor.u32 %v9763_v53, %v6619_v52  ;;  %v6955_v18 = vld [vmem:[%s15566_s1 + $0x3d0] sm:$0xf]  ;;  %v9841_v52 = vld [vmem:[%s15566_s1 + $0x3b4] sm:$0xf0] }
 0x1f1   :  { %5499 = vmatpush.bf16.msrb.mxu1 %v9064_v28  ;;  %v9184_v28 = vor.u32 %v10401_v0, %v9181_v3  ;;  %v5260_v17 = vpop.f32.mrf.mxu2  ;;  %v6595_v0 = vld [vmem:[%s15566_s1 + $0x100] sm:$0xf]  ;;  %v9757_v3 = vld [vmem:[%s15566_s1 + $0x114] sm:$0xf0] }
 0x1f2   :  { %5512 = vmatpush.bf16.msrb.mxu2 %v9256_v10  ;;  %v10347_v10 = vld [vmem:[%s15566_s1 + $0x138c] sm:$0xf]  ;;  %v9799_v17 = vld [vmem:[%s15566_s1 + $0x264] sm:$0xf0]  ;;  %v7123_v53 = vld [vmem:[%s15566_s1 + $0x520] sm:$0xf] }
 0x1f3   :  { %5525 = vmatpush.bf16.msrb.mxu3 %v9448_v29  ;;  %v9157_v29 = vld [vmem:[%s15566_s1 + $0x1520] sm:$0xf0]  ;;  %v8968_v41 = vor.u32 %v10347_v10, %v8965_v11  ;;  %v6596_v10 = vor.u32 %v9757_v3, %v6595_v0  ;;  %v6907_v0 = vld [vmem:[%s15566_s1 + $0x370] sm:$0xf]  ;;  %v9835_v3 = vld [vmem:[%s15566_s1 + $0x384] sm:$0xf0] }
 0x1f4   :  { %5487 = vmatpush.bf16.msrb.mxu0 %v8848_v31  ;;  %v5273_v31 = vpop.f32.mrf.mxu3 }
 0x1f5   :  { %5500 = vmatpush.bf16.msrb.mxu1 %v9040_v32  ;;  %v8776_v32 = vor.u32 %v10299_v6, %v8773_v7  ;;  %v6979_v6 = vld [vmem:[%s15566_s1 + $0x400] sm:$0xf]  ;;  %v9853_v7 = vld [vmem:[%s15566_s1 + $0x414] sm:$0xf0]  ;;  %v7147_v31 = vld [vmem:[%s15566_s1 + $0x550] sm:$0xf] }
 0x1f6   :  { %5513 = vmatpush.bf16.msrb.mxu2 %v9232_v33  ;;  %v9817_v33 = vld [vmem:[%s15566_s1 + $0x2f4] sm:$0xf0] }
 0x1f7   :  { %5526 = vmatpush.bf16.msrb.mxu3 %v9424_v45  ;;  %v9160_v45 = vor.u32 %v10395_v12, %v9157_v29  ;;  %v6836_v48 = vor.u32 %v9817_v33, %v6835_v25  ;;  %v6980_v12 = vor.u32 %v9853_v7, %v6979_v6  ;;  %v9751_v29 = vld [vmem:[%s15566_s1 + $0xe4] sm:$0xf0] }
 0x1f8   :  { %5488 = vmatpush.bf16.msrb.mxu0 %v8824_v55  ;;  %v7220_v55 = vor.u32 %v9913_v47, %v7219_v46  ;;  %v6547_v46 = vld [vmem:[%s15566_s1 + $0xa0] sm:$0xf]  ;;  %v9745_v47 = vld [vmem:[%s15566_s1 + $0xb4] sm:$0xf0]  ;;  %v9883_v6 = vld [vmem:[%s15566_s1 + $0x504] sm:$0xf0] }
 0x1f9   :  { %5501 = vmatpush.bf16.msrb.mxu1 %v9016_v2  ;;  %v7003_v2 = vld [vmem:[%s15566_s1 + $0x430] sm:$0xf] }
 0x1fa   :  { %5514 = vmatpush.bf16.msrb.mxu2 %v9208_v59  ;;  %v9859_v59 = vld [vmem:[%s15566_s1 + $0x444] sm:$0xf0] }
 0x1fb   :  { %5527 = vmatpush.bf16.msrb.mxu3 %v9400_v62  ;;  %v6812_v62 = vor.u32 %v9811_v56, %v6811_v54  ;;  %v7004_v63 = vor.u32 %v9859_v59, %v7003_v2  ;;  %v9889_v54 = vld [vmem:[%s15566_s1 + $0x534] sm:$0xf0]  ;;  %v6523_v59 = vld [vmem:[%s15566_s1 + $0x70] sm:$0xf] }
 0x1fc   :  { %5489 = vmatpush.bf16.msrb.mxu0 %v8800_v5  ;;  %v9805_v5 = vld [vmem:[%s15566_s1 + $0x294] sm:$0xf0] }
 0x1fd   :  { %5502 = vmatpush.bf16.msrb.mxu1 %v8992_v8  ;;  %v7171_v8 = vld [vmem:[%s15566_s1 + $0x580] sm:$0xf]  ;;  %v6788_v11 = vor.u32 %v9805_v5, %v6787_v1  ;;  %v7099_v5 = vld [vmem:[%s15566_s1 + $0x4f0] sm:$0xf] }
 0x1fe   :  { %5515 = vmatpush.bf16.msrb.mxu2 %v9184_v28  ;;  %v9901_v28 = vld [vmem:[%s15566_s1 + $0x594] sm:$0xf0] }
 0x1ff   :  { %5528 = vmatpush.bf16.msrb.mxu3 %v9376_v13  ;;  %v6571_v13 = vld [vmem:[%s15566_s1 + $0xd0] sm:$0xf]  ;;  %v7172_v16 = vor.u32 %v9901_v28, %v7171_v8  ;;  %v6524_v8 = vor.u32 %v9739_v60, %v6523_v59  ;;  %v7795_v59 = vld [vmem:[%s15566_s1 + $0xa60] sm:$0xf]  ;;  %v10057_v60 = vld [vmem:[%s15566_s1 + $0xa74] sm:$0xf0] }
 0x200   :  { %5490 = vmatpush.bf16.msrb.mxu0 %v8776_v32  ;;  %v5284_v25 = vpop.f32.mrf.mxu0  ;;  %v9895_v32 = vld [vmem:[%s15566_s1 + $0x564] sm:$0xf0]  ;;  %v6572_v37 = vor.u32 %v9751_v29, %v6571_v13  ;;  %v6499_v13 = vld [vmem:[%s15566_s1 + $0x40] sm:$0xf]  ;;  %v9733_v29 = vld [vmem:[%s15566_s1 + $0x54] sm:$0xf0] }
 0x201   :  { %5503 = vmatpush.bf16.msrb.mxu1 %v8968_v41  ;;  %v5285_v33 = vadd.f32 %v5284_v25, %v13739_v57  ;;  %v5297_v38 = vpop.f32.mrf.mxu1  ;;  %v6764_v41 = vor.u32 %v9799_v17, %v6763_v14  ;;  %v7148_v57 = vor.u32 %v9895_v32, %v7147_v31  ;;  %v6691_v14 = vld [vmem:[%s15566_s1 + $0x1c0] sm:$0xf]  ;;  %v9781_v17 = vld [vmem:[%s15566_s1 + $0x1d4] sm:$0xf0]  ;;  %v6500_v32 = vor.u32 %v9733_v29, %v6499_v13  ;;  %v7963_v13 = vld [vmem:[%s15566_s1 + $0xbb0] sm:$0xf] }
 0x202   :  { %5516 = vmatpush.bf16.msrb.mxu2 %v9160_v45  ;;  %v6956_v45 = vor.u32 %v9847_v22, %v6955_v18  ;;  %v6883_v18 = vld [vmem:[%s15566_s1 + $0x340] sm:$0xf]  ;;  %v9829_v22 = vld [vmem:[%s15566_s1 + $0x354] sm:$0xf0]  ;;  %v10099_v29 = vld [vmem:[%s15566_s1 + $0xbc4] sm:$0xf0] }
 0x203   :  { %5529 = vmatpush.bf16.msrb.mxu3 %v9352_v58  ;;  %5491 = vmatmul.bf16.vlgmr.msrb.gmra.mxu0 %v11426_v15  ;;  %v6739_v58 = vld [vmem:[%s15566_s1 + $0x220] sm:$0xf]  ;;  %v9877_v31 = vld [vmem:[%s15566_s1 + $0x4d4] sm:$0xf0] }
 0x204   :  { %5535 = vmatpush.bf16.msra.mxu0 %v6644_v51  ;;  %5504 = vmatmul.bf16.vlgmr.msrb.gmra.mxu1 %v11439_v21  ;;  %v5298_v51 = vadd.f32 %v5297_v38, %v5285_v33  ;;  %v7075_v25 = vld [vmem:[%s15566_s1 + $0x4c0] sm:$0xf]  ;;  %v6475_v33 = vld [vmem:[%s15566_s1 + $0x10] sm:$0xf]  ;;  %v6692_v38 = vor.u32 %v9781_v17, %v6691_v14 }
 0x205   :  { %5548 = vmatpush.bf16.msra.mxu1 %v6836_v48  ;;  %5517 = vmatmul.bf16.vlgmr.msrb.gmra.mxu2 %v11437_v20  ;;  %v9793_v48 = vld [vmem:[%s15566_s1 + $0x234] sm:$0xf0] }
 0x206   :  { %5561 = vmatpush.bf16.msra.mxu2 %v7028_v49  ;;  %5530 = vmatmul.bf16.vlgmr.msrb.gmra.mxu3 %v11447_v26  ;;  %v6931_v49 = vld [vmem:[%s15566_s1 + $0x3a0] sm:$0xf]  ;;  %v6740_v56 = vor.u32 %v9793_v48, %v6739_v58  ;;  %v7076_v58 = vor.u32 %v9877_v31, %v7075_v25  ;;  %v9871_v48 = vld [vmem:[%s15566_s1 + $0x4a4] sm:$0xf0]  ;;  %v7964_v31 = vor.u32 %v10099_v29, %v7963_v13 }
 0x207   :  { %5574 = vmatpush.bf16.msra.mxu3 %v7220_v55  ;;  %v6548_v55 = vor.u32 %v9745_v47, %v6547_v46  ;;  %v6932_v2 = vor.u32 %v9841_v52, %v6931_v49  ;;  %v9775_v46 = vld [vmem:[%s15566_s1 + $0x1a4] sm:$0xf0]  ;;  %v6859_v47 = vld [vmem:[%s15566_s1 + $0x310] sm:$0xf]  ;;  %v7411_v52 = vld [vmem:[%s15566_s1 + $0x760] sm:$0xf] }
 0x208   :  { %5536 = vmatpush.bf16.msra.mxu0 %v6620_v61  ;;  %v7124_v61 = vor.u32 %v9889_v54, %v7123_v53  ;;  %v5286_v7 = vpop.f32.mrf.mxu0  ;;  %v9961_v53 = vld [vmem:[%s15566_s1 + $0x774] sm:$0xf0]  ;;  %v7603_v54 = vld [vmem:[%s15566_s1 + $0x8e0] sm:$0xf] }
 0x209   :  { %5549 = vmatpush.bf16.msra.mxu1 %v6812_v62  ;;  %v5310_v62 = vpop.f32.mrf.mxu2  ;;  %v5299_v28 = vpop.f32.mrf.mxu1  ;;  %v7579_v7 = vld [vmem:[%s15566_s1 + $0x8b0] sm:$0xf]  ;;  %v7555_v25 = vld [vmem:[%s15566_s1 + $0x880] sm:$0xf] }
 0x20a   :  { %5562 = vmatpush.bf16.msra.mxu2 %v7004_v63  ;;  %v9787_v63 = vld [vmem:[%s15566_s1 + $0x204] sm:$0xf0]  ;;  %v5311_v1 = vadd.f32 %v5310_v62, %v5298_v51  ;;  %v7051_v51 = vld [vmem:[%s15566_s1 + $0x490] sm:$0xf]  ;;  %v7987_v62 = vld [vmem:[%s15566_s1 + $0xbe0] sm:$0xf] }
 0x20b   :  { %5575 = vmatpush.bf16.msra.mxu3 %v7196_v4  ;;  %v5323_v4 = vpop.f32.mrf.mxu3  ;;  %v10003_v28 = vld [vmem:[%s15566_s1 + $0x8c4] sm:$0xf0] }
 0x20c   :  { %5537 = vmatpush.bf16.msra.mxu0 %v6596_v10  ;;  %v13938_v10 = vadd.f32 %v5323_v4, %v5311_v1  ;;  %v7796_v4 = vor.u32 %v10057_v60, %v7795_v59 }
 0x20d   :  { %5550 = vmatpush.bf16.msra.mxu1 %v6788_v11  ;;  %v6716_v11 = vor.u32 %v9787_v63, %v6715_v9  ;;  %v10105_v63 = vld [vmem:[%s15566_s1 + $0xbf4] sm:$0xf0] }
 0x20e   :  { %5563 = vmatpush.bf16.msra.mxu2 %v6980_v12  ;;  %v6908_v12 = vor.u32 %v9835_v3, %v6907_v0  ;;  %v7052_v0 = vor.u32 %v9871_v48, %v7051_v51  ;;  %v7412_v3 = vor.u32 %v9961_v53, %v7411_v52  ;;  %v7531_v51 = vld [vmem:[%s15566_s1 + $0x850] sm:$0xf]  ;;  %v10545_v48 = vld [vmem:[%s15568_s2] sm:$0x3f]  ;;  %v9991_v53 = vld [vmem:[%s15566_s1 + $0x864] sm:$0xf0] }
 0x20f   :  { %5576 = vmatpush.bf16.msra.mxu3 %v7172_v16  ;;  %v7100_v16 = vor.u32 %v9883_v6, %v7099_v5  ;;  %v7387_v5 = vld [vmem:[%s15566_s1 + $0x730] sm:$0xf]  ;;  %v9955_v6 = vld [vmem:[%s15566_s1 + $0x744] sm:$0xf0] }
 0x210   :  { %5538 = vmatpush.bf16.msra.mxu0 %v6572_v37  ;;  %v9727_v37 = vld [vmem:[%s15566_s1 + $0x24] sm:$0xf0]  ;;  %v7388_v14 = vor.u32 %v9955_v6, %v7387_v5  ;;  %v9985_v5 = vld [vmem:[%s15566_s1 + $0x834] sm:$0xf0]  ;;  %v7699_v6 = vld [vmem:[%s15566_s1 + $0x9a0] sm:$0xf] }
 0x211   :  { %5551 = vmatpush.bf16.msra.mxu1 %v6764_v41  ;;  %v6884_v41 = vor.u32 %v9829_v22, %v6883_v18  ;;  %v5312_v49 = vpop.f32.mrf.mxu2  ;;  %v7363_v18 = vld [vmem:[%s15566_s1 + $0x700] sm:$0xf]  ;;  %v9949_v22 = vld [vmem:[%s15566_s1 + $0x714] sm:$0xf0] }
 0x212   :  { %5564 = vmatpush.bf16.msra.mxu2 %v6956_v45  ;;  %v6667_v45 = vld [vmem:[%s15566_s1 + $0x190] sm:$0xf]  ;;  %v854_v49 = vperm.slane %v10545_v48, 3  ;;  %v9925_v48 = vld [vmem:[%s15566_s1 + $0x654] sm:$0xf0] }
 0x213   :  { %5577 = vmatpush.bf16.msra.mxu3 %v7148_v57  ;;  %v9823_v57 = vld [vmem:[%s15566_s1 + $0x324] sm:$0xf0]  ;;  %v6668_v9 = vor.u32 %v9775_v46, %v6667_v45  ;;  %v7364_v45 = vor.u32 %v9949_v22, %v7363_v18  ;;  %v7339_v46 = vld [vmem:[%s15566_s1 + $0x6d0] sm:$0xf] }
 0x214   :  { %5539 = vmatpush.bf16.msra.mxu0 %v6548_v55  ;;  %v5325_v55 = vpop.f32.mrf.mxu3 }
 0x215   :  { %5552 = vmatpush.bf16.msra.mxu1 %v6740_v56  ;;  %v6476_v56 = vor.u32 %v9727_v37, %v6475_v33  ;;  %v7747_v33 = vld [vmem:[%s15566_s1 + $0xa00] sm:$0xf]  ;;  %v10045_v37 = vld [vmem:[%s15566_s1 + $0xa14] sm:$0xf0]  ;;  %v10039_v55 = vld [vmem:[%s15566_s1 + $0x9e4] sm:$0xf0] }
 0x216   :  { %5565 = vmatpush.bf16.msra.mxu2 %v6932_v2  ;;  %v10009_v2 = vld [vmem:[%s15566_s1 + $0x8f4] sm:$0xf0] }
 0x217   :  { %5578 = vmatpush.bf16.msra.mxu3 %v7124_v61  ;;  %v6860_v61 = vor.u32 %v9823_v57, %v6859_v47  ;;  %v7604_v1 = vor.u32 %v10009_v2, %v7603_v54  ;;  %v9943_v57 = vld [vmem:[%s15566_s1 + $0x6e4] sm:$0xf0]  ;;  %v7723_v54 = vld [vmem:[%s15566_s1 + $0x9d0] sm:$0xf] }
 0x218   :  { %5540 = vmatpush.bf16.msra.mxu0 %v6524_v8  ;;  %v7988_v8 = vor.u32 %v10105_v63, %v7987_v62  ;;  %v10087_v2 = vld [vmem:[%s15566_s1 + $0xb64] sm:$0xf0]  ;;  %v7340_v59 = vor.u32 %v9943_v57, %v7339_v46  ;;  %v7315_v62 = vld [vmem:[%s15566_s1 + $0x6a0] sm:$0xf]  ;;  %v9937_v63 = vld [vmem:[%s15566_s1 + $0x6b4] sm:$0xf0] }
 0x219   :  { %5553 = vmatpush.bf16.msra.mxu1 %v6716_v11  ;;  %v7771_v11 = vld [vmem:[%s15566_s1 + $0xa30] sm:$0xf] }
 0x21a   :  { %5566 = vmatpush.bf16.msra.mxu2 %v6908_v12  ;;  %v10051_v12 = vld [vmem:[%s15566_s1 + $0xa44] sm:$0xf0] }
 0x21b   :  { %5579 = vmatpush.bf16.msra.mxu3 %v7100_v16  ;;  %v7580_v16 = vor.u32 %v10003_v28, %v7579_v7  ;;  %v7772_v17 = vor.u32 %v10051_v12, %v7771_v11  ;;  %v10033_v7 = vld [vmem:[%s15566_s1 + $0x9b4] sm:$0xf0]  ;;  %v7316_v12 = vor.u32 %v9937_v63, %v7315_v62 }
 0x21c   :  { %5541 = vmatpush.bf16.msra.mxu0 %v6500_v32  ;;  %v9997_v32 = vld [vmem:[%s15566_s1 + $0x894] sm:$0xf0]  ;;  %v7700_v29 = vor.u32 %v10033_v7, %v7699_v6  ;;  %v10015_v6 = vld [vmem:[%s15566_s1 + $0x924] sm:$0xf0]  ;;  %v7819_v7 = vld [vmem:[%s15566_s1 + $0xa90] sm:$0xf] }
 0x21d   :  { %5554 = vmatpush.bf16.msra.mxu1 %v6692_v38  ;;  %v7939_v38 = vld [vmem:[%s15566_s1 + $0xb80] sm:$0xf]  ;;  %v7556_v47 = vor.u32 %v9997_v32, %v7555_v25  ;;  %v10081_v28 = vld [vmem:[%s15566_s1 + $0xb34] sm:$0xf0]  ;;  %v9979_v25 = vld [vmem:[%s15566_s1 + $0x804] sm:$0xf0] }
 0x21e   :  { %5567 = vmatpush.bf16.msra.mxu2 %v6884_v41  ;;  %v10093_v41 = vld [vmem:[%s15566_s1 + $0xb94] sm:$0xf0]  ;;  %v10027_v32 = vld [vmem:[%s15566_s1 + $0x984] sm:$0xf0] }
 0x21f   :  { %5580 = vmatpush.bf16.msra.mxu3 %v7076_v58  ;;  %v7748_v58 = vor.u32 %v10045_v37, %v7747_v33  ;;  %v7940_v52 = vor.u32 %v10093_v41, %v7939_v38  ;;  %v7867_v38 = vld [vmem:[%s15566_s1 + $0xaf0] sm:$0xf]  ;;  %v10075_v41 = vld [vmem:[%s15566_s1 + $0xb04] sm:$0xf0] }
 0x220   :  { %5542 = vmatpush.bf16.msra.mxu0 %v6476_v56  ;;  %v7915_v56 = vld [vmem:[%s15566_s1 + $0xb50] sm:$0xf]  ;;  %v5336_v60 = vpop.f32.mrf.mxu0 }
 0x221   :  { %5555 = vmatpush.bf16.msra.mxu1 %v6668_v9  ;;  %v7532_v9 = vor.u32 %v9991_v53, %v7531_v51  ;;  %v7267_v51 = vld [vmem:[%s15566_s1 + $0x640] sm:$0xf]  ;;  %v7868_v53 = vor.u32 %v10075_v41, %v7867_v38  ;;  %v8155_v41 = vld [vmem:[%s15566_s1 + $0xd30] sm:$0xf] }
 0x222   :  { %5568 = vmatpush.bf16.msra.mxu2 %v6860_v61  ;;  %v7724_v61 = vor.u32 %v10039_v55, %v7723_v54  ;;  %v9973_v54 = vld [vmem:[%s15566_s1 + $0x7d4] sm:$0xf0]  ;;  %v7651_v55 = vld [vmem:[%s15566_s1 + $0x940] sm:$0xf] }
 0x223   :  { %5581 = vmatpush.bf16.msra.mxu3 %v7052_v0  ;;  %5543 = vmatmul.bf16.vlgmr.msra.gmra.mxu0 %v10909_v36  ;;  %v7507_v0 = vld [vmem:[%s15566_s1 + $0x820] sm:$0xf] }
 0x224   :  { %5587 = vmatpush.bf16.msrb.mxu0 %v7412_v3  ;;  %5556 = vmatmul.bf16.vlgmr.msra.gmra.mxu1 %v10919_v43  ;;  %v5337_v3 = vadd.f32 %v5336_v60, %v854_v49  ;;  %v7508_v13 = vor.u32 %v9985_v5, %v7507_v0  ;;  %v7459_v49 = vld [vmem:[%s15566_s1 + $0x7c0] sm:$0xf]  ;;  %v7268_v60 = vor.u32 %v9925_v48, %v7267_v51  ;;  %v7435_v0 = vld [vmem:[%s15566_s1 + $0x790] sm:$0xf]  ;;  %v10243_v48 = vld [vmem:[%s15566_s1 + $0x1044] sm:$0xf0] }
 0x225   :  { %5600 = vmatpush.bf16.msrb.mxu1 %v7604_v1  ;;  %5569 = vmatmul.bf16.vlgmr.msra.gmra.mxu2 %v10907_v35  ;;  %v5349_v1 = vpop.f32.mrf.mxu1  ;;  %v7460_v62 = vor.u32 %v9973_v54, %v7459_v49  ;;  %v8539_v51 = vld [vmem:[%s15566_s1 + $0x1030] sm:$0xf] }
 0x226   :  { %5613 = vmatpush.bf16.msrb.mxu2 %v7796_v4  ;;  %5582 = vmatmul.bf16.vlgmr.msra.gmra.mxu3 %v10917_v42  ;;  %v7916_v4 = vor.u32 %v10087_v2, %v7915_v56  ;;  %v5350_v11 = vadd.f32 %v5349_v1, %v5337_v3  ;;  %v10021_v56 = vld [vmem:[%s15566_s1 + $0x954] sm:$0xf0]  ;;  %v7843_v2 = vld [vmem:[%s15566_s1 + $0xac0] sm:$0xf]  ;;  %v9967_v3 = vld [vmem:[%s15566_s1 + $0x7a4] sm:$0xf0] }
 0x227   :  { %5626 = vmatpush.bf16.msrb.mxu3 %v7988_v8  ;;  %v7891_v8 = vld [vmem:[%s15566_s1 + $0xb20] sm:$0xf]  ;;  %v7652_v63 = vor.u32 %v10021_v56, %v7651_v55  ;;  %v7627_v1 = vld [vmem:[%s15566_s1 + $0x910] sm:$0xf]  ;;  %v8540_v55 = vor.u32 %v10243_v48, %v8539_v51 }
 0x228   :  { %5588 = vmatpush.bf16.msrb.mxu0 %v7388_v14  ;;  %v7291_v14 = vld [vmem:[%s15566_s1 + $0x670] sm:$0xf]  ;;  %v5362_v18 = vpop.f32.mrf.mxu2  ;;  %v7892_v22 = vor.u32 %v10081_v28, %v7891_v8  ;;  %v10063_v8 = vld [vmem:[%s15566_s1 + $0xaa4] sm:$0xf0]  ;;  %v8131_v56 = vld [vmem:[%s15566_s1 + $0xd00] sm:$0xf] }
 0x229   :  { %5601 = vmatpush.bf16.msrb.mxu1 %v7580_v16  ;;  %v9931_v16 = vld [vmem:[%s15566_s1 + $0x684] sm:$0xf0]  ;;  %v5363_v33 = vadd.f32 %v5362_v18, %v5350_v11  ;;  %v5375_v37 = vpop.f32.mrf.mxu3  ;;  %v8179_v11 = vld [vmem:[%s15566_s1 + $0xd60] sm:$0xf]  ;;  %v7436_v18 = vor.u32 %v9967_v3, %v7435_v0  ;;  %v8731_v49 = vld [vmem:[%s15566_s1 + $0x11b0] sm:$0xf] }
 0x22a   :  { %5614 = vmatpush.bf16.msrb.mxu2 %v7772_v17  ;;  %v7483_v17 = vld [vmem:[%s15566_s1 + $0x7f0] sm:$0xf]  ;;  %v10285_v0 = vld [vmem:[%s15566_s1 + $0x1194] sm:$0xf0] }
 0x22b   :  { %5627 = vmatpush.bf16.msrb.mxu3 %v7964_v31  ;;  %v7675_v31 = vld [vmem:[%s15566_s1 + $0x970] sm:$0xf]  ;;  %v14139_v46 = vadd.f32 %v5375_v37, %v5363_v33 }
 0x22c   :  { %5589 = vmatpush.bf16.msrb.mxu0 %v7364_v45  ;;  %v7292_v45 = vor.u32 %v9931_v16, %v7291_v14  ;;  %v7676_v57 = vor.u32 %v10027_v32, %v7675_v31  ;;  %v10201_v14 = vld [vmem:[%s15566_s1 + $0xef4] sm:$0xf0]  ;;  %v8563_v16 = vld [vmem:[%s15566_s1 + $0x1060] sm:$0xf]  ;;  %v7820_v32 = vor.u32 %v10063_v8, %v7819_v7  ;;  %v8299_v7 = vld [vmem:[%s15566_s1 + $0xe50] sm:$0xf] }
 0x22d   :  { %5602 = vmatpush.bf16.msrb.mxu1 %v7556_v47  ;;  %v5338_v47 = vpop.f32.mrf.mxu0  ;;  %v10297_v31 = vld [vmem:[%s15566_s1 + $0x11f4] sm:$0xf0] }
 0x22e   :  { %5615 = vmatpush.bf16.msrb.mxu2 %v7748_v58  ;;  %v7484_v58 = vor.u32 %v9979_v25, %v7483_v17  ;;  %v10249_v17 = vld [vmem:[%s15566_s1 + $0x1074] sm:$0xf0]  ;;  %v8755_v25 = vld [vmem:[%s15566_s1 + $0x11e0] sm:$0xf]  ;;  %v8347_v47 = vld [vmem:[%s15566_s1 + $0xeb0] sm:$0xf] }
 0x22f   :  { %5628 = vmatpush.bf16.msrb.mxu3 %v7940_v52  ;;  %v5351_v52 = vpop.f32.mrf.mxu1  ;;  %v8564_v38 = vor.u32 %v10249_v17, %v8563_v16 }
 0x230   :  { %5590 = vmatpush.bf16.msrb.mxu0 %v7340_v59  ;;  %v10069_v59 = vld [vmem:[%s15566_s1 + $0xad4] sm:$0xf0]  ;;  %v10291_v52 = vld [vmem:[%s15566_s1 + $0x11c4] sm:$0xf0] }
 0x231   :  { %5603 = vmatpush.bf16.msrb.mxu1 %v7532_v9  ;;  %v7243_v9 = vld [vmem:[%s15566_s1 + $0x610] sm:$0xf]  ;;  %v7844_v5 = vor.u32 %v10069_v59, %v7843_v2  ;;  %v5377_v28 = vpop.f32.mrf.mxu3  ;;  %v10141_v2 = vld [vmem:[%s15566_s1 + $0xd14] sm:$0xf0]  ;;  %v8323_v59 = vld [vmem:[%s15566_s1 + $0xe80] sm:$0xf] }
 0x232   :  { %5616 = vmatpush.bf16.msrb.mxu2 %v7724_v61  ;;  %v9919_v61 = vld [vmem:[%s15566_s1 + $0x624] sm:$0xf0]  ;;  %v8132_v3 = vor.u32 %v10141_v2, %v8131_v56  ;;  %v8443_v2 = vld [vmem:[%s15566_s1 + $0xf70] sm:$0xf] }
 0x233   :  { %5629 = vmatpush.bf16.msrb.mxu3 %v7916_v4  ;;  %v5364_v4 = vpop.f32.mrf.mxu2  ;;  %v10183_v28 = vld [vmem:[%s15566_s1 + $0xe64] sm:$0xf0] }
 0x234   :  { %5591 = vmatpush.bf16.msrb.mxu0 %v7316_v12  ;;  %v10153_v12 = vld [vmem:[%s15566_s1 + $0xd74] sm:$0xf0]  ;;  %v8300_v17 = vor.u32 %v10183_v28, %v8299_v7  ;;  %v10171_v56 = vld [vmem:[%s15566_s1 + $0xe04] sm:$0xf0]  ;;  %v8227_v7 = vld [vmem:[%s15566_s1 + $0xdc0] sm:$0xf] }
 0x235   :  { %5604 = vmatpush.bf16.msrb.mxu1 %v7508_v13  ;;  %v8371_v13 = vld [vmem:[%s15566_s1 + $0xee0] sm:$0xf]  ;;  %v8180_v33 = vor.u32 %v10153_v12, %v8179_v11  ;;  %v8491_v11 = vld [vmem:[%s15566_s1 + $0xfd0] sm:$0xf]  ;;  %v10231_v12 = vld [vmem:[%s15566_s1 + $0xfe4] sm:$0xf0] }
 0x236   :  { %5617 = vmatpush.bf16.msrb.mxu2 %v7700_v29  ;;  %v7244_v29 = vor.u32 %v9919_v61, %v7243_v9  ;;  %v8372_v37 = vor.u32 %v10201_v14, %v8371_v13  ;;  %v10189_v9 = vld [vmem:[%s15566_s1 + $0xe94] sm:$0xf0]  ;;  %v8515_v61 = vld [vmem:[%s15566_s1 + $0x1000] sm:$0xf]  ;;  %v8683_v13 = vld [vmem:[%s15566_s1 + $0x1150] sm:$0xf] }
 0x237   :  { %5630 = vmatpush.bf16.msrb.mxu3 %v7892_v22  ;;  %v7628_v22 = vor.u32 %v10015_v6, %v7627_v1  ;;  %v8324_v1 = vor.u32 %v10189_v9, %v8323_v59  ;;  %v10135_v6 = vld [vmem:[%s15566_s1 + $0xce4] sm:$0xf0] }
 0x238   :  { %5592 = vmatpush.bf16.msrb.mxu0 %v7292_v45  ;;  %v10147_v45 = vld [vmem:[%s15566_s1 + $0xd44] sm:$0xf0] }
 0x239   :  { %5605 = vmatpush.bf16.msrb.mxu1 %v7484_v58  ;;  %v8756_v58 = vor.u32 %v10297_v31, %v8755_v25  ;;  %v10129_v25 = vld [vmem:[%s15566_s1 + $0xcb4] sm:$0xf0]  ;;  %v8275_v31 = vld [vmem:[%s15566_s1 + $0xe20] sm:$0xf]  ;;  %v10219_v59 = vld [vmem:[%s15566_s1 + $0xf84] sm:$0xf0] }
 0x23a   :  { %5618 = vmatpush.bf16.msrb.mxu2 %v7676_v57  ;;  %v10195_v57 = vld [vmem:[%s15566_s1 + $0xec4] sm:$0xf0] }
 0x23b   :  { %5631 = vmatpush.bf16.msrb.mxu3 %v7868_v53  ;;  %v8156_v53 = vor.u32 %v10147_v45, %v8155_v41  ;;  %v8348_v54 = vor.u32 %v10195_v57, %v8347_v47  ;;  %v8467_v41 = vld [vmem:[%s15566_s1 + $0xfa0] sm:$0xf]  ;;  %v10225_v45 = vld [vmem:[%s15566_s1 + $0xfb4] sm:$0xf0] }
 0x23c   :  { %5593 = vmatpush.bf16.msrb.mxu0 %v7268_v60  ;;  %v8732_v60 = vor.u32 %v10291_v52, %v8731_v49  ;;  %v8659_v47 = vld [vmem:[%s15566_s1 + $0x1120] sm:$0xf]  ;;  %v8468_v48 = vor.u32 %v10225_v45, %v8467_v41  ;;  %v8059_v49 = vld [vmem:[%s15566_s1 + $0xc70] sm:$0xf]  ;;  %v10123_v52 = vld [vmem:[%s15566_s1 + $0xc84] sm:$0xf0] }
 0x23d   :  { %5606 = vmatpush.bf16.msrb.mxu1 %v7460_v62  ;;  %v10237_v62 = vld [vmem:[%s15566_s1 + $0x1014] sm:$0xf0]  ;;  %v10207_v41 = vld [vmem:[%s15566_s1 + $0xf24] sm:$0xf0]  ;;  %v8587_v45 = vld [vmem:[%s15566_s1 + $0x1090] sm:$0xf] }
 0x23e   :  { %5619 = vmatpush.bf16.msrb.mxu2 %v7652_v63  ;;  %v8707_v63 = vld [vmem:[%s15566_s1 + $0x1180] sm:$0xf]  ;;  %v8516_v4 = vor.u32 %v10237_v62, %v8515_v61  ;;  %v8635_v61 = vld [vmem:[%s15566_s1 + $0x10f0] sm:$0xf]  ;;  %v10267_v62 = vld [vmem:[%s15566_s1 + $0x1104] sm:$0xf0] }
 0x23f   :  { %5632 = vmatpush.bf16.msrb.mxu3 %v7844_v5  ;;  %v8107_v5 = vld [vmem:[%s15566_s1 + $0xcd0] sm:$0xf]  ;;  %v8708_v8 = vor.u32 %v10285_v0, %v8707_v63  ;;  %v8060_v63 = vor.u32 %v10123_v52, %v8059_v49  ;;  %v8636_v28 = vor.u32 %v10267_v62, %v8635_v61  ;;  %v10393_v49 = vld [vmem:[%s15566_s1 + $0x14f4] sm:$0xf0]  ;;  %v9331_v52 = vld [vmem:[%s15566_s1 + $0x1660] sm:$0xf] }
 0x240   :  { %5594 = vmatpush.bf16.msrb.mxu0 %v7244_v29  ;;  %v10279_v29 = vld [vmem:[%s15566_s1 + $0x1164] sm:$0xf0]  ;;  %v8108_v14 = vor.u32 %v10135_v6, %v8107_v5  ;;  %v5388_v16 = vpop.f32.mrf.mxu0  ;;  %v8035_v5 = vld [vmem:[%s15566_s1 + $0xc40] sm:$0xf]  ;;  %v10117_v6 = vld [vmem:[%s15566_s1 + $0xc54] sm:$0xf0] }
 0x241   :  { %5607 = vmatpush.bf16.msrb.mxu1 %v7436_v18  ;;  %v8492_v18 = vor.u32 %v10231_v12, %v8491_v11  ;;  %v10165_v11 = vld [vmem:[%s15566_s1 + $0xdd4] sm:$0xf0]  ;;  %v8419_v12 = vld [vmem:[%s15566_s1 + $0xf40] sm:$0xf]  ;;  %v8923_v62 = vld [vmem:[%s15566_s1 + $0x1330] sm:$0xf] }
 0x242   :  { %5620 = vmatpush.bf16.msrb.mxu2 %v7628_v22  ;;  %v8083_v22 = vld [vmem:[%s15566_s1 + $0xca0] sm:$0xf] }
 0x243   :  { %5633 = vmatpush.bf16.msrb.mxu3 %v7820_v32  ;;  %5595 = vmatmul.bf16.vlgmr.msrb.gmra.mxu0 %v11035_v39  ;;  %v5389_v32 = vadd.f32 %v5388_v16, %v14139_v46  ;;  %v10273_v46 = vld [vmem:[%s15566_s1 + $0x1134] sm:$0xf0]  ;;  %v8084_v57 = vor.u32 %v10129_v25, %v8083_v22  ;;  %v8036_v16 = vor.u32 %v10117_v6, %v8035_v5  ;;  %v9307_v5 = vld [vmem:[%s15566_s1 + $0x1630] sm:$0xf]  ;;  %v10435_v6 = vld [vmem:[%s15566_s1 + $0x1644] sm:$0xf0] }
 0x244   :  { %5639 = vmatpush.bf16.msra.mxu0 %v8180_v33  ;;  %5608 = vmatmul.bf16.vlgmr.msrb.gmra.mxu1 %v11039_v44  ;;  %v5401_v33 = vpop.f32.mrf.mxu1  ;;  %v8228_v22 = vor.u32 %v10165_v11, %v8227_v7  ;;  %v9499_v7 = vld [vmem:[%s15566_s1 + $0x17b0] sm:$0xf] }
 0x245   :  { %5652 = vmatpush.bf16.msra.mxu1 %v8372_v37  ;;  %5621 = vmatmul.bf16.vlgmr.msrb.gmra.mxu2 %v11027_v34  ;;  %v8684_v37 = vor.u32 %v10279_v29, %v8683_v13  ;;  %v10213_v13 = vld [vmem:[%s15566_s1 + $0xf54] sm:$0xf0]  ;;  %v8611_v29 = vld [vmem:[%s15566_s1 + $0x10c0] sm:$0xf] }
 0x246   :  { %5665 = vmatpush.bf16.msra.mxu2 %v8564_v38  ;;  %5634 = vmatmul.bf16.vlgmr.msrb.gmra.mxu3 %v11037_v40  ;;  %v10177_v38 = vld [vmem:[%s15566_s1 + $0xe34] sm:$0xf0]  ;;  %v8420_v25 = vor.u32 %v10213_v13, %v8419_v12  ;;  %v9308_v12 = vor.u32 %v10435_v6, %v9307_v5  ;;  %v8899_v13 = vld [vmem:[%s15566_s1 + $0x1300] sm:$0xf] }
 0x247   :  { %5678 = vmatpush.bf16.msra.mxu3 %v8756_v58  ;;  %v5402_v58 = vadd.f32 %v5401_v33, %v5389_v32  ;;  %v8276_v51 = vor.u32 %v10177_v38, %v8275_v31  ;;  %v8203_v31 = vld [vmem:[%s15566_s1 + $0xd90] sm:$0xf]  ;;  %v10159_v32 = vld [vmem:[%s15566_s1 + $0xda4] sm:$0xf0] }
 0x248   :  { %5640 = vmatpush.bf16.msra.mxu0 %v8156_v53  ;;  %v8251_v53 = vld [vmem:[%s15566_s1 + $0xdf0] sm:$0xf] }
 0x249   :  { %5653 = vmatpush.bf16.msra.mxu1 %v8348_v54  ;;  %v5414_v54 = vpop.f32.mrf.mxu2  ;;  %v5427_v9 = vpop.f32.mrf.mxu3  ;;  %v8395_v33 = vld [vmem:[%s15566_s1 + $0xf10] sm:$0xf] }
 0x24a   :  { %5666 = vmatpush.bf16.msra.mxu2 %v8540_v55  ;;  %v8660_v55 = vor.u32 %v10273_v46, %v8659_v47  ;;  %v10255_v47 = vld [vmem:[%s15566_s1 + $0x10a4] sm:$0xf0] }
 0x24b   :  { %5679 = vmatpush.bf16.msra.mxu3 %v8732_v60  ;;  %v5415_v60 = vadd.f32 %v5414_v54, %v5402_v58  ;;  %v8947_v58 = vld [vmem:[%s15566_s1 + $0x1360] sm:$0xf]  ;;  %v8204_v54 = vor.u32 %v10159_v32, %v8203_v31  ;;  %v10477_v31 = vld [vmem:[%s15566_s1 + $0x1794] sm:$0xf0] }
 0x24c   :  { %5641 = vmatpush.bf16.msra.mxu0 %v8132_v3  ;;  %v5390_v3 = vpop.f32.mrf.mxu0 }
 0x24d   :  { %5654 = vmatpush.bf16.msra.mxu1 %v8324_v1  ;;  %v14338_v0 = vadd.f32 %v5427_v9, %v5415_v60  ;;  %v8252_v1 = vor.u32 %v10171_v56, %v8251_v53  ;;  %v10441_v53 = vld [vmem:[%s15566_s1 + $0x1674] sm:$0xf0]  ;;  %v9523_v56 = vld [vmem:[%s15566_s1 + $0x17e0] sm:$0xf]  ;;  %v9115_v3 = vld [vmem:[%s15566_s1 + $0x14b0] sm:$0xf] }
 0x24e   :  { %5667 = vmatpush.bf16.msra.mxu2 %v8516_v4  ;;  %v8444_v4 = vor.u32 %v10219_v59, %v8443_v2  ;;  %v10489_v2 = vld [vmem:[%s15566_s1 + $0x17f4] sm:$0xf0]  ;;  %v8588_v59 = vor.u32 %v10255_v47, %v8587_v45  ;;  %v9332_v61 = vor.u32 %v10441_v53, %v9331_v52  ;;  %v9067_v45 = vld [vmem:[%s15566_s1 + $0x1450] sm:$0xf] }
 0x24f   :  { %5680 = vmatpush.bf16.msra.mxu3 %v8708_v8  ;;  %v5403_v8 = vpop.f32.mrf.mxu1 }
 0x250   :  { %5642 = vmatpush.bf16.msra.mxu0 %v8108_v14  ;;  %v10261_v14 = vld [vmem:[%s15566_s1 + $0x10d4] sm:$0xf0]  ;;  %v10483_v8 = vld [vmem:[%s15566_s1 + $0x17c4] sm:$0xf0] }
 0x251   :  { %5655 = vmatpush.bf16.msra.mxu1 %v8300_v17  ;;  %v8011_v17 = vld [vmem:[%s15566_s1 + $0xc10] sm:$0xf]  ;;  %v8612_v38 = vor.u32 %v10261_v14, %v8611_v29  ;;  %v5429_v46 = vpop.f32.mrf.mxu3  ;;  %v10333_v29 = vld [vmem:[%s15566_s1 + $0x1314] sm:$0xf0]  ;;  %v9091_v14 = vld [vmem:[%s15566_s1 + $0x1480] sm:$0xf] }
 0x252   :  { %5668 = vmatpush.bf16.msra.mxu2 %v8492_v18  ;;  %v10111_v18 = vld [vmem:[%s15566_s1 + $0xc24] sm:$0xf0]  ;;  %v8900_v32 = vor.u32 %v10333_v29, %v8899_v13  ;;  %v9211_v29 = vld [vmem:[%s15566_s1 + $0x1570] sm:$0xf] }
 0x253   :  { %5681 = vmatpush.bf16.msra.mxu3 %v8684_v37  ;;  %v5416_v37 = vpop.f32.mrf.mxu2  ;;  %v10375_v46 = vld [vmem:[%s15566_s1 + $0x1464] sm:$0xf0] }
 0x254   :  { %5643 = vmatpush.bf16.msra.mxu0 %v8084_v57  ;;  %v10345_v57 = vld [vmem:[%s15566_s1 + $0x1374] sm:$0xf0]  ;;  %v10363_v13 = vld [vmem:[%s15566_s1 + $0x1404] sm:$0xf0] }
 0x255   :  { %5656 = vmatpush.bf16.msra.mxu1 %v8276_v51  ;;  %v9139_v51 = vld [vmem:[%s15566_s1 + $0x14e0] sm:$0xf]  ;;  %v8948_v60 = vor.u32 %v10345_v57, %v8947_v58  ;;  %v9259_v58 = vld [vmem:[%s15566_s1 + $0x15d0] sm:$0xf]  ;;  %v10423_v57 = vld [vmem:[%s15566_s1 + $0x15e4] sm:$0xf0] }
 0x256   :  { %5669 = vmatpush.bf16.msra.mxu2 %v8468_v48  ;;  %v8012_v48 = vor.u32 %v10111_v18, %v8011_v17  ;;  %v9140_v9 = vor.u32 %v10393_v49, %v9139_v51  ;;  %v10381_v17 = vld [vmem:[%s15566_s1 + $0x1494] sm:$0xf0]  ;;  %v9283_v18 = vld [vmem:[%s15566_s1 + $0x1600] sm:$0xf]  ;;  %v10471_v49 = vld [vmem:[%s15566_s1 + $0x1764] sm:$0xf0] }
 0x257   :  { %5682 = vmatpush.bf16.msra.mxu3 %v8660_v55  ;;  %v8396_v55 = vor.u32 %v10207_v41, %v8395_v33  ;;  %v9092_v33 = vor.u32 %v10381_v17, %v9091_v14  ;;  %v10327_v41 = vld [vmem:[%s15566_s1 + $0x12e4] sm:$0xf0] }
 0x258   :  { %5644 = vmatpush.bf16.msra.mxu0 %v8060_v63  ;;  %v10339_v63 = vld [vmem:[%s15566_s1 + $0x1344] sm:$0xf0] }
 0x259   :  { %5657 = vmatpush.bf16.msra.mxu1 %v8252_v1  ;;  %v9524_v1 = vor.u32 %v10489_v2, %v9523_v56  ;;  %v9260_v56 = vor.u32 %v10423_v57, %v9259_v58  ;;  %v8851_v2 = vld [vmem:[%s15566_s1 + $0x12a0] sm:$0xf]  ;;  %v10411_v14 = vld [vmem:[%s15566_s1 + $0x1584] sm:$0xf0]  ;;  %v10357_v58 = vld [vmem:[%s15566_s1 + $0x13d4] sm:$0xf0] }
 0x25a   :  { %5670 = vmatpush.bf16.msra.mxu2 %v8444_v4  ;;  %v10387_v4 = vld [vmem:[%s15566_s1 + $0x14c4] sm:$0xf0]  ;;  %v9187_v57 = vld [vmem:[%s15566_s1 + $0x1540] sm:$0xf] }
 0x25b   :  { %5683 = vmatpush.bf16.msra.mxu3 %v8636_v28  ;;  %v8924_v28 = vor.u32 %v10339_v63, %v8923_v62  ;;  %v9116_v11 = vor.u32 %v10387_v4, %v9115_v3  ;;  %v9235_v62 = vld [vmem:[%s15566_s1 + $0x15a0] sm:$0xf]  ;;  %v10417_v63 = vld [vmem:[%s15566_s1 + $0x15b4] sm:$0xf0] }
 0x25c   :  { %5645 = vmatpush.bf16.msra.mxu0 %v8036_v16  ;;  %v9500_v16 = vor.u32 %v10483_v8, %v9499_v7  ;;  %v9427_v3 = vld [vmem:[%s15566_s1 + $0x1720] sm:$0xf]  ;;  %v9236_v6 = vor.u32 %v10417_v63, %v9235_v62  ;;  %v8827_v7 = vld [vmem:[%s15566_s1 + $0x1270] sm:$0xf]  ;;  %v10315_v8 = vld [vmem:[%s15566_s1 + $0x1284] sm:$0xf0] }
 0x25d   :  { %5658 = vmatpush.bf16.msra.mxu1 %v8228_v22  ;;  %v10429_v22 = vld [vmem:[%s15566_s1 + $0x1614] sm:$0xf0]  ;;  %v10447_v62 = vld [vmem:[%s15566_s1 + $0x16a4] sm:$0xf0] }
 0x25e   :  { %5671 = vmatpush.bf16.msra.mxu2 %v8420_v25  ;;  %v9475_v25 = vld [vmem:[%s15566_s1 + $0x1780] sm:$0xf]  ;;  %v9284_v37 = vor.u32 %v10429_v22, %v9283_v18  ;;  %v9403_v18 = vld [vmem:[%s15566_s1 + $0x16f0] sm:$0xf]  ;;  %v10459_v22 = vld [vmem:[%s15566_s1 + $0x1704] sm:$0xf0] }
 0x25f   :  { %5684 = vmatpush.bf16.msra.mxu3 %v8612_v38  ;;  %v8875_v38 = vld [vmem:[%s15566_s1 + $0x12d0] sm:$0xf]  ;;  %v9476_v47 = vor.u32 %v10477_v31, %v9475_v25  ;;  %v8828_v31 = vor.u32 %v10315_v8, %v8827_v7  ;;  %v6837_v7 = vld [vmem:[%s15566_s1 + $0x2f8] sm:$0xf0]  ;;  %v9862_v8 = vld [vmem:[%s15566_s1 + $0x464] sm:$0xf] }
 0x260   :  { %5646 = vmatpush.bf16.msra.mxu0 %v8012_v48  ;;  %v5440_v51 = vpop.f32.mrf.mxu0  ;;  %v9451_v48 = vld [vmem:[%s15566_s1 + $0x1750] sm:$0xf]  ;;  %v8876_v53 = vor.u32 %v10327_v41, %v8875_v38  ;;  %v9212_v38 = vor.u32 %v10411_v14, %v9211_v29  ;;  %v8803_v41 = vld [vmem:[%s15566_s1 + $0x1240] sm:$0xf]  ;;  %v7221_v29 = vld [vmem:[%s15566_s1 + $0x5f8] sm:$0xf0] }
 0x261   :  { %5659 = vmatpush.bf16.msra.mxu1 %v8204_v54  ;;  %v5441_v52 = vadd.f32 %v5440_v51, %v14338_v0  ;;  %v5453_v54 = vpop.f32.mrf.mxu1  ;;  %v9452_v0 = vor.u32 %v10471_v49, %v9451_v48  ;;  %v10405_v51 = vld [vmem:[%s15566_s1 + $0x1554] sm:$0xf0]  ;;  %v9379_v48 = vld [vmem:[%s15566_s1 + $0x16c0] sm:$0xf] }
 0x262   :  { %5672 = vmatpush.bf16.msra.mxu2 %v8396_v55  ;;  %v9068_v55 = vor.u32 %v10375_v46, %v9067_v45  ;;  %v10309_v45 = vld [vmem:[%s15566_s1 + $0x1254] sm:$0xf0]  ;;  %v9404_v46 = vor.u32 %v10459_v22, %v9403_v18  ;;  %v9760_v22 = vld [vmem:[%s15566_s1 + $0x134] sm:$0xf] }
 0x263   :  { %5685 = vmatpush.bf16.msra.mxu3 %v8588_v59  ;;  %5647 = vmatmul.bf16.vlgmr.msra.gmra.mxu0 %v11222_v19  ;;  %v10321_v59 = vld [vmem:[%s15566_s1 + $0x12b4] sm:$0xf0] }
 0x264   :  { %5691 = vmatpush.bf16.msrb.mxu0 %v8948_v60  ;;  %5660 = vmatmul.bf16.vlgmr.msra.gmra.mxu1 %v11235_v24  ;;  %v9043_v60 = vld [vmem:[%s15566_s1 + $0x1420] sm:$0xf]  ;;  %v8852_v4 = vor.u32 %v10321_v59, %v8851_v2  ;;  %v10453_v49 = vld [vmem:[%s15566_s1 + $0x16d4] sm:$0xf0]  ;;  %v8971_v2 = vld [vmem:[%s15566_s1 + $0x1390] sm:$0xf] }
 0x265   :  { %5704 = vmatpush.bf16.msrb.mxu1 %v9140_v9  ;;  %5673 = vmatmul.bf16.vlgmr.msra.gmra.mxu2 %v11233_v23  ;;  %v5454_v9 = vadd.f32 %v5453_v54, %v5441_v52  ;;  %v8804_v52 = vor.u32 %v10309_v45, %v8803_v41  ;;  %v10303_v54 = vld [vmem:[%s15566_s1 + $0x1224] sm:$0xf0]  ;;  %v7005_v41 = vld [vmem:[%s15566_s1 + $0x448] sm:$0xf0]  ;;  %v9904_v45 = vld [vmem:[%s15566_s1 + $0x5b4] sm:$0xf] }
 0x266   :  { %5717 = vmatpush.bf16.msrb.mxu2 %v9332_v61  ;;  %5686 = vmatmul.bf16.vlgmr.msra.gmra.mxu3 %v11243_v27  ;;  %v10369_v61 = vld [vmem:[%s15566_s1 + $0x1434] sm:$0xf0]  ;;  %v10351_v59 = vld [vmem:[%s15566_s1 + $0x13a4] sm:$0xf0] }
 0x267   :  { %5730 = vmatpush.bf16.msrb.mxu3 %v9524_v1  ;;  %v10465_v1 = vld [vmem:[%s15566_s1 + $0x1734] sm:$0xf0]  ;;  %v9044_v5 = vor.u32 %v10369_v61, %v9043_v60  ;;  %v9163_v60 = vld [vmem:[%s15566_s1 + $0x1510] sm:$0xf] }
 0x268   :  { %5692 = vmatpush.bf16.msrb.mxu0 %v8924_v28  ;;  %v9019_v28 = vld [vmem:[%s15566_s1 + $0x13f0] sm:$0xf]  ;;  %v5442_v25 = vpop.f32.mrf.mxu0 }
 0x269   :  { %5705 = vmatpush.bf16.msrb.mxu1 %v9116_v11  ;;  %v9428_v11 = vor.u32 %v10465_v1, %v9427_v3  ;;  %v5479_v17 = vpop.f32.mrf.mxu3  ;;  %v9355_v61 = vld [vmem:[%s15566_s1 + $0x1690] sm:$0xf]  ;;  %v9766_v3 = vld [vmem:[%s15566_s1 + $0x164] sm:$0xf]  ;;  %v6645_v1 = vld [vmem:[%s15566_s1 + $0x178] sm:$0xf0] }
 0x26a   :  { %5718 = vmatpush.bf16.msrb.mxu2 %v9308_v12  ;;  %v5466_v12 = vpop.f32.mrf.mxu2  ;;  %v9356_v14 = vor.u32 %v10447_v62, %v9355_v61  ;;  %v6621_v25 = vld [vmem:[%s15566_s1 + $0x148] sm:$0xf0]  ;;  %v9796_v62 = vld [vmem:[%s15566_s1 + $0x254] sm:$0xf] }
 0x26b   :  { %5731 = vmatpush.bf16.msrb.mxu3 %v9500_v16  ;;  %v5467_v16 = vadd.f32 %v5466_v12, %v5454_v9  ;;  %v10399_v9 = vld [vmem:[%s15566_s1 + $0x1524] sm:$0xf0]  ;;  %v6573_v61 = vld [vmem:[%s15566_s1 + $0xe8] sm:$0xf0] }
 0x26c   :  { %5693 = vmatpush.bf16.msrb.mxu0 %v8900_v32  ;;  %v5455_v32 = vpop.f32.mrf.mxu1  ;;  %v9164_v12 = vor.u32 %v10399_v9, %v9163_v60  ;;  %v9748_v9 = vld [vmem:[%s15566_s1 + $0xd4] sm:$0xf] }
 0x26d   :  { %5706 = vmatpush.bf16.msrb.mxu1 %v9092_v33  ;;  %v14537_v33 = vadd.f32 %v5479_v17, %v5467_v16  ;;  %v6648_v16 = vor.u32 %v9766_v3, %v6645_v1  ;;  %v6765_v3 = vld [vmem:[%s15566_s1 + $0x268] sm:$0xf0]  ;;  %v9844_v1 = vld [vmem:[%s15566_s1 + $0x3d4] sm:$0xf] }
 0x26e   :  { %5719 = vmatpush.bf16.msrb.mxu2 %v9284_v37  ;;  %v9020_v37 = vor.u32 %v10363_v13, %v9019_v28  ;;  %v7029_v28 = vld [vmem:[%s15566_s1 + $0x478] sm:$0xf0]  ;;  %v9910_v13 = vld [vmem:[%s15566_s1 + $0x5e4] sm:$0xf] }
 0x26f   :  { %5732 = vmatpush.bf16.msrb.mxu3 %v9476_v47  ;;  %v8995_v47 = vld [vmem:[%s15566_s1 + $0x13c0] sm:$0xf]  ;;  %v7032_v18 = vor.u32 %v9862_v8, %v7029_v28  ;;  %v7224_v32 = vor.u32 %v9910_v13, %v7221_v29  ;;  %v6576_v28 = vor.u32 %v9748_v9, %v6573_v61  ;;  %v9742_v29 = vld [vmem:[%s15566_s1 + $0xa4] sm:$0xf] }
 0x270   :  { %5694 = vmatpush.bf16.msrb.mxu0 %v8876_v53  ;;  %v8779_v53 = vld [vmem:[%s15566_s1 + $0x1210] sm:$0xf]  ;;  %v9730_v61 = vld [vmem:[%s15566_s1 + $0x44] sm:$0xf] }
 0x271   :  { %5707 = vmatpush.bf16.msrb.mxu1 %v9068_v55  ;;  %v8996_v55 = vor.u32 %v10357_v58, %v8995_v47  ;;  %v7197_v47 = vld [vmem:[%s15566_s1 + $0x5c8] sm:$0xf0] }
 0x272   :  { %5720 = vmatpush.bf16.msrb.mxu2 %v9260_v56  ;;  %v9188_v56 = vor.u32 %v10405_v51, %v9187_v57  ;;  %v5468_v63 = vpop.f32.mrf.mxu2  ;;  %v9754_v51 = vld [vmem:[%s15566_s1 + $0x104] sm:$0xf] }
 0x273   :  { %5733 = vmatpush.bf16.msrb.mxu3 %v9452_v0  ;;  %v9380_v0 = vor.u32 %v10453_v49, %v9379_v48  ;;  %v6597_v48 = vld [vmem:[%s15566_s1 + $0x118] sm:$0xf0]  ;;  %v9802_v49 = vld [vmem:[%s15566_s1 + $0x284] sm:$0xf] }
 0x274   :  { %5695 = vmatpush.bf16.msrb.mxu0 %v8852_v4  ;;  %v9814_v4 = vld [vmem:[%s15566_s1 + $0x2e4] sm:$0xf] }
 0x275   :  { %5708 = vmatpush.bf16.msrb.mxu1 %v9044_v5  ;;  %v5481_v5 = vpop.f32.mrf.mxu3  ;;  %v6840_v17 = vor.u32 %v9814_v4, %v6837_v7  ;;  %v6957_v4 = vld [vmem:[%s15566_s1 + $0x3e8] sm:$0xf0] }
 0x276   :  { %5721 = vmatpush.bf16.msrb.mxu2 %v9236_v6  ;;  %v8780_v6 = vor.u32 %v10303_v54, %v8779_v53  ;;  %v6789_v53 = vld [vmem:[%s15566_s1 + $0x298] sm:$0xf0]  ;;  %v9850_v54 = vld [vmem:[%s15566_s1 + $0x404] sm:$0xf]  ;;  %v7149_v7 = vld [vmem:[%s15566_s1 + $0x568] sm:$0xf0]  ;;  %v6960_v13 = vor.u32 %v9844_v1, %v6957_v4 }
 0x277   :  { %5734 = vmatpush.bf16.msrb.mxu3 %v9428_v11  ;;  %v8972_v11 = vor.u32 %v10351_v59, %v8971_v2  ;;  %v7173_v2 = vld [vmem:[%s15566_s1 + $0x598] sm:$0xf0]  ;;  %v6600_v59 = vor.u32 %v9754_v51, %v6597_v48  ;;  %v6792_v60 = vor.u32 %v9802_v49, %v6789_v53  ;;  %v6717_v51 = vld [vmem:[%s15566_s1 + $0x208] sm:$0xf0]  ;;  %v9832_v48 = vld [vmem:[%s15566_s1 + $0x374] sm:$0xf] }
 0x278   :  { %5696 = vmatpush.bf16.msrb.mxu0 %v8828_v31  ;;  %v9808_v31 = vld [vmem:[%s15566_s1 + $0x2b4] sm:$0xf]  ;;  %v6909_v49 = vld [vmem:[%s15566_s1 + $0x388] sm:$0xf0]  ;;  %v6693_v1 = vld [vmem:[%s15566_s1 + $0x1d8] sm:$0xf0] }
 0x279   :  { %5709 = vmatpush.bf16.msrb.mxu1 %v9020_v37  ;;  %v6813_v37 = vld [vmem:[%s15566_s1 + $0x2c8] sm:$0xf0]  ;;  %v6912_v9 = vor.u32 %v9832_v48, %v6909_v49  ;;  %v9826_v4 = vld [vmem:[%s15566_s1 + $0x344] sm:$0xf]  ;;  %v7989_v48 = vld [vmem:[%s15566_s1 + $0xbf8] sm:$0xf0] }
 0x27a   :  { %5722 = vmatpush.bf16.msrb.mxu2 %v9212_v38  ;;  %v9856_v38 = vld [vmem:[%s15566_s1 + $0x434] sm:$0xf]  ;;  %v6816_v58 = vor.u32 %v9808_v31, %v6813_v37  ;;  %v9886_v31 = vld [vmem:[%s15566_s1 + $0x524] sm:$0xf] }
 0x27b   :  { %5735 = vmatpush.bf16.msrb.mxu3 %v9404_v46  ;;  %v6624_v46 = vor.u32 %v9760_v22, %v6621_v25  ;;  %v7008_v57 = vor.u32 %v9856_v38, %v7005_v41  ;;  %v9838_v22 = vld [vmem:[%s15566_s1 + $0x3a4] sm:$0xf]  ;;  %v6933_v25 = vld [vmem:[%s15566_s1 + $0x3b8] sm:$0xf0] }
 0x27c   :  { %5697 = vmatpush.bf16.msrb.mxu0 %v8804_v52  ;;  %v7200_v52 = vor.u32 %v9904_v45, %v7197_v47  ;;  %v6936_v41 = vor.u32 %v9838_v22, %v6933_v25  ;;  %v9736_v45 = vld [vmem:[%s15566_s1 + $0x74] sm:$0xf]  ;;  %v6525_v47 = vld [vmem:[%s15566_s1 + $0x88] sm:$0xf0] }
 0x27d   :  { %5710 = vmatpush.bf16.msrb.mxu1 %v8996_v55  ;;  %v6981_v55 = vld [vmem:[%s15566_s1 + $0x418] sm:$0xf0]  ;;  %v7053_v22 = vld [vmem:[%s15566_s1 + $0x4a8] sm:$0xf0] }
 0x27e   :  { %5723 = vmatpush.bf16.msrb.mxu2 %v9188_v56  ;;  %v9898_v56 = vld [vmem:[%s15566_s1 + $0x584] sm:$0xf] }
 0x27f   :  { %5736 = vmatpush.bf16.msrb.mxu3 %v9380_v0  ;;  %v6984_v0 = vor.u32 %v9850_v54, %v6981_v55  ;;  %v7176_v63 = vor.u32 %v9898_v56, %v7173_v2  ;;  %v9880_v54 = vld [vmem:[%s15566_s1 + $0x4f4] sm:$0xf]  ;;  %v7101_v55 = vld [vmem:[%s15566_s1 + $0x508] sm:$0xf0]  ;;  %v6528_v2 = vor.u32 %v9736_v45, %v6525_v47  ;;  %v7605_v45 = vld [vmem:[%s15566_s1 + $0x8f8] sm:$0xf0] }
 0x280   :  { %5698 = vmatpush.bf16.msrb.mxu0 %v8780_v6  ;;  %v5492_v5 = vpop.f32.mrf.mxu0  ;;  %v9892_v6 = vld [vmem:[%s15566_s1 + $0x554] sm:$0xf]  ;;  %v10054_v47 = vld [vmem:[%s15566_s1 + $0xa64] sm:$0xf] }
 0x281   :  { %5711 = vmatpush.bf16.msrb.mxu1 %v8972_v11  ;;  %v5493_v8 = vadd.f32 %v5492_v5, %v14537_v33  ;;  %v5505_v11 = vpop.f32.mrf.mxu1  ;;  %v7152_v33 = vor.u32 %v9892_v6, %v7149_v7  ;;  %v6885_v5 = vld [vmem:[%s15566_s1 + $0x358] sm:$0xf0]  ;;  %v9874_v6 = vld [vmem:[%s15566_s1 + $0x4c4] sm:$0xf] }
 0x282   :  { %5724 = vmatpush.bf16.msrb.mxu2 %v9164_v12  ;;  %v6768_v12 = vor.u32 %v9796_v62, %v6765_v3  ;;  %v6501_v62 = vld [vmem:[%s15566_s1 + $0x58] sm:$0xf0]  ;;  %v7104_v3 = vor.u32 %v9880_v54, %v7101_v55  ;;  %v9952_v55 = vld [vmem:[%s15566_s1 + $0x734] sm:$0xf] }
 0x283   :  { %5737 = vmatpush.bf16.msrb.mxu3 %v9356_v14  ;;  %5699 = vmatmul.bf16.vlgmr.msrb.gmra.mxu0 %v11426_v15  ;;  %v6549_v14 = vld [vmem:[%s15566_s1 + $0xb8] sm:$0xf0] }
 0x284   :  { %5743 = vmatpush.bf16.msra.mxu0 %v6648_v16  ;;  %5712 = vmatmul.bf16.vlgmr.msrb.gmra.mxu1 %v11439_v21  ;;  %v9790_v16 = vld [vmem:[%s15566_s1 + $0x224] sm:$0xf]  ;;  %v6552_v37 = vor.u32 %v9742_v29, %v6549_v14  ;;  %v7077_v7 = vld [vmem:[%s15566_s1 + $0x4d8] sm:$0xf0]  ;;  %v9772_v29 = vld [vmem:[%s15566_s1 + $0x194] sm:$0xf] }
 0x285   :  { %5756 = vmatpush.bf16.msra.mxu1 %v6840_v17  ;;  %5725 = vmatmul.bf16.vlgmr.msrb.gmra.mxu2 %v11437_v20  ;;  %v5506_v17 = vadd.f32 %v5505_v11, %v5493_v8  ;;  %v6504_v8 = vor.u32 %v9730_v61, %v6501_v62  ;;  %v6477_v11 = vld [vmem:[%s15566_s1 + $0x28] sm:$0xf0]  ;;  %v10096_v62 = vld [vmem:[%s15566_s1 + $0xbb4] sm:$0xf] }
 0x286   :  { %5769 = vmatpush.bf16.msra.mxu2 %v7032_v18  ;;  %5738 = vmatmul.bf16.vlgmr.msrb.gmra.mxu3 %v11447_v26  ;;  %v6741_v18 = vld [vmem:[%s15566_s1 + $0x238] sm:$0xf0]  ;;  %v6669_v14 = vld [vmem:[%s15566_s1 + $0x1a8] sm:$0xf0] }
 0x287   :  { %5782 = vmatpush.bf16.msra.mxu3 %v7224_v32  ;;  %v7125_v32 = vld [vmem:[%s15566_s1 + $0x538] sm:$0xf0]  ;;  %v6744_v38 = vor.u32 %v9790_v16, %v6741_v18  ;;  %v9820_v16 = vld [vmem:[%s15566_s1 + $0x314] sm:$0xf]  ;;  %v7773_v61 = vld [vmem:[%s15566_s1 + $0xa48] sm:$0xf0] }
 0x288   :  { %5744 = vmatpush.bf16.msra.mxu0 %v6624_v46  ;;  %v9784_v46 = vld [vmem:[%s15566_s1 + $0x1f4] sm:$0xf]  ;;  %v5494_v56 = vpop.f32.mrf.mxu0 }
 0x289   :  { %5757 = vmatpush.bf16.msra.mxu1 %v6816_v58  ;;  %v7128_v58 = vor.u32 %v9886_v31, %v7125_v32  ;;  %v5531_v53 = vpop.f32.mrf.mxu3  ;;  %v9868_v18 = vld [vmem:[%s15566_s1 + $0x494] sm:$0xf]  ;;  %v9958_v31 = vld [vmem:[%s15566_s1 + $0x764] sm:$0xf]  ;;  %v7413_v32 = vld [vmem:[%s15566_s1 + $0x778] sm:$0xf0] }
 0x28a   :  { %5770 = vmatpush.bf16.msra.mxu2 %v7008_v57  ;;  %v5518_v57 = vpop.f32.mrf.mxu2  ;;  %v7056_v49 = vor.u32 %v9868_v18, %v7053_v22  ;;  %v7389_v56 = vld [vmem:[%s15566_s1 + $0x748] sm:$0xf0] }
 0x28b   :  { %5783 = vmatpush.bf16.msra.mxu3 %v7200_v52  ;;  %v5519_v52 = vadd.f32 %v5518_v57, %v5506_v17  ;;  %v6861_v17 = vld [vmem:[%s15566_s1 + $0x328] sm:$0xf0] }
 0x28c   :  { %5745 = vmatpush.bf16.msra.mxu0 %v6600_v59  ;;  %v5507_v59 = vpop.f32.mrf.mxu1  ;;  %v6864_v57 = vor.u32 %v9820_v16, %v6861_v17  ;;  %v9940_v16 = vld [vmem:[%s15566_s1 + $0x6d4] sm:$0xf]  ;;  %v7341_v17 = vld [vmem:[%s15566_s1 + $0x6e8] sm:$0xf0] }
 0x28d   :  { %5758 = vmatpush.bf16.msra.mxu1 %v6792_v60  ;;  %v14736_v60 = vadd.f32 %v5531_v53, %v5519_v52  ;;  %v7416_v52 = vor.u32 %v9958_v31, %v7413_v32  ;;  %v7533_v22 = vld [vmem:[%s15566_s1 + $0x868] sm:$0xf0]  ;;  %v10084_v32 = vld [vmem:[%s15566_s1 + $0xb54] sm:$0xf] }
 0x28e   :  { %5771 = vmatpush.bf16.msra.mxu2 %v6984_v0  ;;  %v6720_v0 = vor.u32 %v9784_v46, %v6717_v51  ;;  %v7797_v46 = vld [vmem:[%s15566_s1 + $0xa78] sm:$0xf0]  ;;  %v10102_v51 = vld [vmem:[%s15566_s1 + $0xbe4] sm:$0xf]  ;;  %v7725_v31 = vld [vmem:[%s15566_s1 + $0x9e8] sm:$0xf0] }
 0x28f   :  { %5784 = vmatpush.bf16.msra.mxu3 %v7176_v63  ;;  %v9778_v63 = vld [vmem:[%s15566_s1 + $0x1c4] sm:$0xf]  ;;  %v7800_v54 = vor.u32 %v10054_v47, %v7797_v46  ;;  %v7992_v59 = vor.u32 %v10102_v51, %v7989_v48 }
 0x290   :  { %5746 = vmatpush.bf16.msra.mxu0 %v6576_v28  ;;  %v9724_v28 = vld [vmem:[%s15566_s1 + $0x14] sm:$0xf]  ;;  %v9934_v46 = vld [vmem:[%s15566_s1 + $0x6a4] sm:$0xf] }
 0x291   :  { %5759 = vmatpush.bf16.msra.mxu1 %v6768_v12  ;;  %v6696_v12 = vor.u32 %v9778_v63, %v6693_v1  ;;  %v7965_v63 = vld [vmem:[%s15566_s1 + $0xbc8] sm:$0xf0] }
 0x292   :  { %5772 = vmatpush.bf16.msra.mxu2 %v6960_v13  ;;  %v6888_v13 = vor.u32 %v9826_v4, %v6885_v5  ;;  %v5520_v25 = vpop.f32.mrf.mxu2  ;;  %v9946_v5 = vld [vmem:[%s15566_s1 + $0x704] sm:$0xf] }
 0x293   :  { %5785 = vmatpush.bf16.msra.mxu3 %v7152_v33  ;;  %v7080_v33 = vor.u32 %v9874_v6, %v7077_v7  ;;  %v7365_v6 = vld [vmem:[%s15566_s1 + $0x718] sm:$0xf0]  ;;  %v9994_v7 = vld [vmem:[%s15566_s1 + $0x884] sm:$0xf]  ;;  %v10036_v25 = vld [vmem:[%s15566_s1 + $0x9d4] sm:$0xf] }
 0x294   :  { %5747 = vmatpush.bf16.msra.mxu0 %v6552_v37  ;;  %v10006_v37 = vld [vmem:[%s15566_s1 + $0x8e4] sm:$0xf]  ;;  %v7728_v47 = vor.u32 %v10036_v25, %v7725_v31  ;;  %v7653_v25 = vld [vmem:[%s15566_s1 + $0x958] sm:$0xf0] }
 0x295   :  { %5760 = vmatpush.bf16.msra.mxu1 %v6744_v38  ;;  %v5533_v38 = vpop.f32.mrf.mxu3  ;;  %v7608_v53 = vor.u32 %v10006_v37, %v7605_v45  ;;  %v7917_v37 = vld [vmem:[%s15566_s1 + $0xb68] sm:$0xf0]  ;;  %v10066_v31 = vld [vmem:[%s15566_s1 + $0xac4] sm:$0xf] }
 0x296   :  { %5773 = vmatpush.bf16.msra.mxu2 %v6936_v41  ;;  %v6480_v41 = vor.u32 %v9724_v28, %v6477_v11  ;;  %v7557_v28 = vld [vmem:[%s15566_s1 + $0x898] sm:$0xf0]  ;;  %v10042_v11 = vld [vmem:[%s15566_s1 + $0xa04] sm:$0xf]  ;;  %v7344_v38 = vor.u32 %v9940_v16, %v7341_v17 }
 0x297   :  { %5786 = vmatpush.bf16.msra.mxu3 %v7128_v58  ;;  %v6672_v58 = vor.u32 %v9772_v29, %v6669_v14  ;;  %v7941_v29 = vld [vmem:[%s15566_s1 + $0xb98] sm:$0xf0]  ;;  %v7368_v14 = vor.u32 %v9946_v5, %v7365_v6  ;;  %v10024_v5 = vld [vmem:[%s15566_s1 + $0x974] sm:$0xf]  ;;  %v7677_v6 = vld [vmem:[%s15566_s1 + $0x988] sm:$0xf0] }
 0x298   :  { %5748 = vmatpush.bf16.msra.mxu0 %v6528_v2  ;;  %v10000_v2 = vld [vmem:[%s15566_s1 + $0x8b4] sm:$0xf]  ;;  %v7680_v16 = vor.u32 %v10024_v5, %v7677_v6  ;;  %v9970_v17 = vld [vmem:[%s15566_s1 + $0x7c4] sm:$0xf] }
 0x299   :  { %5761 = vmatpush.bf16.msra.mxu1 %v6720_v0  ;;  %v7581_v0 = vld [vmem:[%s15566_s1 + $0x8c8] sm:$0xf0] }
 0x29a   :  { %5774 = vmatpush.bf16.msra.mxu2 %v6912_v9  ;;  %v10048_v9 = vld [vmem:[%s15566_s1 + $0xa34] sm:$0xf]  ;;  %v7584_v1 = vor.u32 %v10000_v2, %v7581_v0 }
 0x29b   :  { %5787 = vmatpush.bf16.msra.mxu3 %v7104_v3  ;;  %v7392_v3 = vor.u32 %v9952_v55, %v7389_v56  ;;  %v7776_v4 = vor.u32 %v10048_v9, %v7773_v61  ;;  %v10078_v55 = vld [vmem:[%s15566_s1 + $0xb24] sm:$0xf]  ;;  %v7893_v56 = vld [vmem:[%s15566_s1 + $0xb38] sm:$0xf0]  ;;  %v9928_v61 = vld [vmem:[%s15566_s1 + $0x674] sm:$0xf] }
 0x29c   :  { %5749 = vmatpush.bf16.msra.mxu0 %v6504_v8  ;;  %v7968_v8 = vor.u32 %v10096_v62, %v7965_v63  ;;  %v7293_v62 = vld [vmem:[%s15566_s1 + $0x688] sm:$0xf0]  ;;  %v9976_v63 = vld [vmem:[%s15566_s1 + $0x7f4] sm:$0xf] }
 0x29d   :  { %5762 = vmatpush.bf16.msra.mxu1 %v6696_v12  ;;  %v7749_v12 = vld [vmem:[%s15566_s1 + $0xa18] sm:$0xf0] }
 0x29e   :  { %5775 = vmatpush.bf16.msra.mxu2 %v6888_v13  ;;  %v10090_v13 = vld [vmem:[%s15566_s1 + $0xb84] sm:$0xf] }
 0x29f   :  { %5788 = vmatpush.bf16.msra.mxu3 %v7080_v33  ;;  %v7752_v33 = vor.u32 %v10042_v11, %v7749_v12  ;;  %v7869_v11 = vld [vmem:[%s15566_s1 + $0xb08] sm:$0xf0]  ;;  %v7296_v12 = vor.u32 %v9928_v61, %v7293_v62  ;;  %v8565_v61 = vld [vmem:[%s15566_s1 + $0x1078] sm:$0xf0] }
 0x2a0   :  { %5750 = vmatpush.bf16.msra.mxu0 %v6480_v41  ;;  %v5544_v41 = vpop.f32.mrf.mxu0 }
 0x2a1   :  { %5763 = vmatpush.bf16.msra.mxu1 %v6672_v58  ;;  %v7317_v58 = vld [vmem:[%s15566_s1 + $0x6b8] sm:$0xf0]  ;;  %v5557_v48 = vpop.f32.mrf.mxu1 }
 0x2a2   :  { %5776 = vmatpush.bf16.msra.mxu2 %v6864_v57  ;;  %v9982_v57 = vld [vmem:[%s15566_s1 + $0x824] sm:$0xf] }
 0x2a3   :  { %5789 = vmatpush.bf16.msra.mxu3 %v7056_v49  ;;  %5751 = vmatmul.bf16.vlgmr.msra.gmra.mxu0 %v10909_v36  ;;  %v9988_v36 = vld [vmem:[%s15566_s1 + $0x854] sm:$0xf]  ;;  %v7920_v49 = vor.u32 %v10084_v32, %v7917_v37  ;;  %v7845_v32 = vld [vmem:[%s15566_s1 + $0xad8] sm:$0xf0] }
 0x2a4   :  { %5795 = vmatpush.bf16.msrb.mxu0 %v7416_v52  ;;  %5764 = vmatmul.bf16.vlgmr.msra.gmra.mxu1 %v10919_v43  ;;  %v7944_v43 = vor.u32 %v10090_v13, %v7941_v29  ;;  %v7536_v45 = vor.u32 %v9988_v36, %v7533_v22  ;;  %v7509_v52 = vld [vmem:[%s15566_s1 + $0x838] sm:$0xf0]  ;;  %v10018_v22 = vld [vmem:[%s15566_s1 + $0x944] sm:$0xf] }
 0x2a5   :  { %5808 = vmatpush.bf16.msrb.mxu1 %v7608_v53  ;;  %5777 = vmatmul.bf16.vlgmr.msra.gmra.mxu2 %v10907_v35  ;;  %v7560_v35 = vor.u32 %v9994_v7, %v7557_v28  ;;  %v10030_v53 = vld [vmem:[%s15566_s1 + $0x9a4] sm:$0xf]  ;;  %v7512_v0 = vor.u32 %v9982_v57, %v7509_v52  ;;  %v10072_v28 = vld [vmem:[%s15566_s1 + $0xaf4] sm:$0xf] }
 0x2a6   :  { %5821 = vmatpush.bf16.msrb.mxu2 %v7800_v54  ;;  %5790 = vmatmul.bf16.vlgmr.msra.gmra.mxu3 %v10917_v42  ;;  %v14874_v42 = vld [vmem:[%s15568_s2] sm:$0x3f]  ;;  %v7701_v54 = vld [vmem:[%s15566_s1 + $0x9b8] sm:$0xf0]  ;;  %v10012_v57 = vld [vmem:[%s15566_s1 + $0x914] sm:$0xf] }
 0x2a7   :  { %5834 = vmatpush.bf16.msrb.mxu3 %v7992_v59  ;;  %v855_v18 = vperm.slane %v14874_v42, 4  ;;  %v7320_v59 = vor.u32 %v9934_v46, %v7317_v58  ;;  %v7704_v9 = vor.u32 %v10030_v53, %v7701_v54  ;;  %v9964_v46 = vld [vmem:[%s15566_s1 + $0x794] sm:$0xf]  ;;  %v7437_v58 = vld [vmem:[%s15566_s1 + $0x7a8] sm:$0xf0] }
 0x2a8   :  { %5796 = vmatpush.bf16.msrb.mxu0 %v7392_v3  ;;  %v5570_v3 = vpop.f32.mrf.mxu2  ;;  %v5546_v29 = vpop.f32.mrf.mxu0  ;;  %v10060_v52 = vld [vmem:[%s15566_s1 + $0xa94] sm:$0xf]  ;;  %v7821_v53 = vld [vmem:[%s15566_s1 + $0xaa8] sm:$0xf0]  ;;  %v7440_v62 = vor.u32 %v9964_v46, %v7437_v58 }
 0x2a9   :  { %5809 = vmatpush.bf16.msrb.mxu1 %v7584_v1  ;;  %v5545_v51 = vadd.f32 %v5544_v41, %v855_v18  ;;  %v7896_v1 = vor.u32 %v10078_v55, %v7893_v56  ;;  %v5559_v36 = vpop.f32.mrf.mxu1  ;;  %v7872_v18 = vor.u32 %v10072_v28, %v7869_v11  ;;  %v7245_v41 = vld [vmem:[%s15566_s1 + $0x628] sm:$0xf0]  ;;  %v10150_v55 = vld [vmem:[%s15566_s1 + $0xd64] sm:$0xf]  ;;  %v8181_v56 = vld [vmem:[%s15566_s1 + $0xd78] sm:$0xf0] }
 0x2aa   :  { %5822 = vmatpush.bf16.msrb.mxu2 %v7776_v4  ;;  %v7485_v4 = vld [vmem:[%s15566_s1 + $0x808] sm:$0xf0]  ;;  %v8184_v5 = vor.u32 %v10150_v55, %v8181_v56  ;;  %v10192_v11 = vld [vmem:[%s15566_s1 + $0xeb4] sm:$0xf] }
 0x2ab   :  { %5835 = vmatpush.bf16.msrb.mxu3 %v7968_v8  ;;  %v5558_v2 = vadd.f32 %v5557_v48, %v5545_v51  ;;  %v5583_v8 = vpop.f32.mrf.mxu3  ;;  %v7848_v48 = vor.u32 %v10066_v31, %v7845_v32  ;;  %v8157_v28 = vld [vmem:[%s15566_s1 + $0xd48] sm:$0xf0]  ;;  %v8325_v32 = vld [vmem:[%s15566_s1 + $0xe98] sm:$0xf0]  ;;  %v10132_v58 = vld [vmem:[%s15566_s1 + $0xcd4] sm:$0xf] }
 0x2ac   :  { %5797 = vmatpush.bf16.msrb.mxu0 %v7368_v14  ;;  %v7488_v14 = vor.u32 %v9976_v63, %v7485_v4  ;;  %v7824_v4 = vor.u32 %v10060_v52, %v7821_v53  ;;  %v8349_v29 = vld [vmem:[%s15566_s1 + $0xec8] sm:$0xf0] }
 0x2ad   :  { %5810 = vmatpush.bf16.msrb.mxu1 %v7560_v35  ;;  %v5571_v7 = vadd.f32 %v5570_v3, %v5558_v2  ;;  %v9922_v35 = vld [vmem:[%s15566_s1 + $0x644] sm:$0xf]  ;;  %v8352_v36 = vor.u32 %v10192_v11, %v8349_v29  ;;  %v8685_v52 = vld [vmem:[%s15566_s1 + $0x1168] sm:$0xf0] }
 0x2ae   :  { %5823 = vmatpush.bf16.msrb.mxu2 %v7752_v33  ;;  %v7269_v33 = vld [vmem:[%s15566_s1 + $0x658] sm:$0xf0]  ;;  %v10198_v2 = vld [vmem:[%s15566_s1 + $0xee4] sm:$0xf]  ;;  %v8061_v11 = vld [vmem:[%s15566_s1 + $0xc88] sm:$0xf0] }
 0x2af   :  { %5836 = vmatpush.bf16.msrb.mxu3 %v7944_v43  ;;  %v14940_v13 = vadd.f32 %v5583_v8, %v5571_v7  ;;  %v7461_v43 = vld [vmem:[%s15566_s1 + $0x7d8] sm:$0xf0]  ;;  %v7272_v37 = vor.u32 %v9922_v35, %v7269_v33  ;;  %v10294_v3 = vld [vmem:[%s15566_s1 + $0x11e4] sm:$0xf]  ;;  %v10144_v8 = vld [vmem:[%s15566_s1 + $0xd34] sm:$0xf] }
 0x2b0   :  { %5798 = vmatpush.bf16.msrb.mxu0 %v7344_v38  ;;  %v9916_v38 = vld [vmem:[%s15566_s1 + $0x614] sm:$0xf]  ;;  %v5572_v51 = vpop.f32.mrf.mxu2  ;;  %v8733_v33 = vld [vmem:[%s15566_s1 + $0x11c8] sm:$0xf0] }
 0x2b1   :  { %5811 = vmatpush.bf16.msrb.mxu1 %v7536_v45  ;;  %v7464_v45 = vor.u32 %v9970_v17, %v7461_v43  ;;  %v10288_v35 = vld [vmem:[%s15566_s1 + $0x11b4] sm:$0xf]  ;;  %v8160_v17 = vor.u32 %v10144_v8, %v8157_v28  ;;  %v10138_v43 = vld [vmem:[%s15566_s1 + $0xd04] sm:$0xf] }
 0x2b2   :  { %5824 = vmatpush.bf16.msrb.mxu2 %v7728_v47  ;;  %v7656_v47 = vor.u32 %v10018_v22, %v7653_v25  ;;  %v8133_v22 = vld [vmem:[%s15566_s1 + $0xd18] sm:$0xf0]  ;;  %v10186_v25 = vld [vmem:[%s15566_s1 + $0xe84] sm:$0xf]  ;;  %v8736_v31 = vor.u32 %v10288_v35, %v8733_v33  ;;  %v10228_v51 = vld [vmem:[%s15566_s1 + $0xfd4] sm:$0xf] }
 0x2b3   :  { %5837 = vmatpush.bf16.msrb.mxu3 %v7920_v49  ;;  %v7629_v49 = vld [vmem:[%s15566_s1 + $0x928] sm:$0xf0]  ;;  %v5585_v54 = vpop.f32.mrf.mxu3  ;;  %v10120_v28 = vld [vmem:[%s15566_s1 + $0xc74] sm:$0xf] }
 0x2b4   :  { %5799 = vmatpush.bf16.msrb.mxu0 %v7320_v59  ;;  %v7248_v59 = vor.u32 %v9916_v38, %v7245_v41  ;;  %v7632_v63 = vor.u32 %v10012_v57, %v7629_v49  ;;  %v8517_v38 = vld [vmem:[%s15566_s1 + $0x1018] sm:$0xf0]  ;;  %v10282_v41 = vld [vmem:[%s15566_s1 + $0x1184] sm:$0xf]  ;;  %v8109_v57 = vld [vmem:[%s15566_s1 + $0xce8] sm:$0xf0] }
 0x2b5   :  { %5812 = vmatpush.bf16.msrb.mxu1 %v7512_v0  ;;  %v8373_v0 = vld [vmem:[%s15566_s1 + $0xef8] sm:$0xf0]  ;;  %v10276_v49 = vld [vmem:[%s15566_s1 + $0x1154] sm:$0xf]  ;;  %v8112_v53 = vor.u32 %v10132_v58, %v8109_v57  ;;  %v8445_v33 = vld [vmem:[%s15566_s1 + $0xf88] sm:$0xf0] }
 0x2b6   :  { %5825 = vmatpush.bf16.msrb.mxu2 %v7704_v9  ;;  %v10246_v9 = vld [vmem:[%s15566_s1 + $0x1064] sm:$0xf]  ;;  %v8376_v6 = vor.u32 %v10198_v2, %v8373_v0  ;;  %v10216_v35 = vld [vmem:[%s15566_s1 + $0xf74] sm:$0xf]  ;;  %v8421_v57 = vld [vmem:[%s15566_s1 + $0xf58] sm:$0xf0] }
 0x2b7   :  { %5838 = vmatpush.bf16.msrb.mxu3 %v7896_v1  ;;  %v8757_v1 = vld [vmem:[%s15566_s1 + $0x11f8] sm:$0xf0]  ;;  %v8568_v7 = vor.u32 %v10246_v9, %v8565_v61  ;;  %v10126_v2 = vld [vmem:[%s15566_s1 + $0xca4] sm:$0xf] }
 0x2b8   :  { %5800 = vmatpush.bf16.msrb.mxu0 %v7296_v12  ;;  %v8760_v12 = vor.u32 %v10294_v3, %v8757_v1  ;;  %v10174_v0 = vld [vmem:[%s15566_s1 + $0xe24] sm:$0xf]  ;;  %v8469_v1 = vld [vmem:[%s15566_s1 + $0xfb8] sm:$0xf0] }
 0x2b9   :  { %5813 = vmatpush.bf16.msrb.mxu1 %v7488_v14  ;;  %v10240_v14 = vld [vmem:[%s15566_s1 + $0x1034] sm:$0xf]  ;;  %v10222_v3 = vld [vmem:[%s15566_s1 + $0xfa4] sm:$0xf] }
 0x2ba   :  { %5826 = vmatpush.bf16.msrb.mxu2 %v7680_v16  ;;  %v8541_v16 = vld [vmem:[%s15566_s1 + $0x1048] sm:$0xf0]  ;;  %v8472_v8 = vor.u32 %v10222_v3, %v8469_v1  ;;  %v10210_v58 = vld [vmem:[%s15566_s1 + $0xf44] sm:$0xf] }
 0x2bb   :  { %5839 = vmatpush.bf16.msrb.mxu3 %v7872_v18  ;;  %v8544_v18 = vor.u32 %v10240_v14, %v8541_v16  ;;  %v8253_v16 = vld [vmem:[%s15566_s1 + $0xe08] sm:$0xf0]  ;;  %v10390_v3 = vld [vmem:[%s15566_s1 + $0x14e4] sm:$0xf] }
 0x2bc   :  { %5801 = vmatpush.bf16.msrb.mxu0 %v7272_v37  ;;  %v10234_v37 = vld [vmem:[%s15566_s1 + $0x1004] sm:$0xf] }
 0x2bd   :  { %5814 = vmatpush.bf16.msrb.mxu1 %v7464_v45  ;;  %v8136_v45 = vor.u32 %v10138_v43, %v8133_v22  ;;  %v8520_v46 = vor.u32 %v10234_v37, %v8517_v38  ;;  %v8637_v43 = vld [vmem:[%s15566_s1 + $0x1108] sm:$0xf0]  ;;  %v8064_v22 = vor.u32 %v10120_v28, %v8061_v11  ;;  %v8448_v37 = vor.u32 %v10216_v35, %v8445_v33  ;;  %v10114_v38 = vld [vmem:[%s15566_s1 + $0xc44] sm:$0xf]  ;;  %v9525_v28 = vld [vmem:[%s15566_s1 + $0x17f8] sm:$0xf0] }
 0x2be   :  { %5827 = vmatpush.bf16.msrb.mxu2 %v7656_v47  ;;  %v8328_v47 = vor.u32 %v10186_v25, %v8325_v32  ;;  %v8925_v35 = vld [vmem:[%s15566_s1 + $0x1348] sm:$0xf0]  ;;  %v10384_v33 = vld [vmem:[%s15566_s1 + $0x14b4] sm:$0xf] }
 0x2bf   :  { %5840 = vmatpush.bf16.msrb.mxu3 %v7848_v48  ;;  %v8493_v48 = vld [vmem:[%s15566_s1 + $0xfe8] sm:$0xf0] }
 0x2c0   :  { %5802 = vmatpush.bf16.msrb.mxu0 %v7248_v59  ;;  %v5596_v54 = vpop.f32.mrf.mxu0  ;;  %v8496_v56 = vor.u32 %v10228_v51, %v8493_v48  ;;  %v8085_v59 = vld [vmem:[%s15566_s1 + $0xcb8] sm:$0xf0]  ;;  %v10108_v51 = vld [vmem:[%s15566_s1 + $0xc14] sm:$0xf]  ;;  %v8013_v48 = vld [vmem:[%s15566_s1 + $0xc28] sm:$0xf0] }
 0x2c1   :  { %5815 = vmatpush.bf16.msrb.mxu1 %v7440_v62  ;;  %v5597_v9 = vadd.f32 %v5596_v54, %v14940_v13  ;;  %v5609_v61 = vpop.f32.mrf.mxu1  ;;  %v8688_v62 = vor.u32 %v10276_v49, %v8685_v52  ;;  %v8661_v13 = vld [vmem:[%s15566_s1 + $0x1138] sm:$0xf0]  ;;  %v8424_v52 = vor.u32 %v10210_v58, %v8421_v57  ;;  %v8205_v54 = vld [vmem:[%s15566_s1 + $0xda8] sm:$0xf0]  ;;  %v8016_v1 = vor.u32 %v10108_v51, %v8013_v48  ;;  %v10426_v58 = vld [vmem:[%s15566_s1 + $0x1604] sm:$0xf] }
 0x2c2   :  { %5828 = vmatpush.bf16.msrb.mxu2 %v7632_v63  ;;  %v8277_v63 = vld [vmem:[%s15566_s1 + $0xe38] sm:$0xf0]  ;;  %v10372_v48 = vld [vmem:[%s15566_s1 + $0x1454] sm:$0xf] }
 0x2c3   :  { %5841 = vmatpush.bf16.msrb.mxu3 %v7824_v4  ;;  %5803 = vmatmul.bf16.vlgmr.msrb.gmra.mxu0 %v11035_v39  ;;  %v10180_v39 = vld [vmem:[%s15566_s1 + $0xe54] sm:$0xf]  ;;  %v10270_v4 = vld [vmem:[%s15566_s1 + $0x1124] sm:$0xf]  ;;  %v9285_v57 = vld [vmem:[%s15566_s1 + $0x1618] sm:$0xf0] }
 0x2c4   :  { %5847 = vmatpush.bf16.msra.mxu0 %v8184_v5  ;;  %5816 = vmatmul.bf16.vlgmr.msrb.gmra.mxu1 %v11039_v44  ;;  %v8301_v44 = vld [vmem:[%s15566_s1 + $0xe68] sm:$0xf0]  ;;  %v5610_v5 = vadd.f32 %v5609_v61, %v5597_v9  ;;  %v8664_v14 = vor.u32 %v10270_v4, %v8661_v13  ;;  %v9141_v4 = vld [vmem:[%s15566_s1 + $0x14f8] sm:$0xf0]  ;;  %v10438_v13 = vld [vmem:[%s15566_s1 + $0x1664] sm:$0xf]  ;;  %v9288_v51 = vor.u32 %v10426_v58, %v9285_v57 }
 0x2c5   :  { %5860 = vmatpush.bf16.msra.mxu1 %v8376_v6  ;;  %5829 = vmatmul.bf16.vlgmr.msrb.gmra.mxu2 %v11027_v34  ;;  %v8709_v34 = vld [vmem:[%s15566_s1 + $0x1198] sm:$0xf0]  ;;  %v8304_v55 = vor.u32 %v10180_v39, %v8301_v44  ;;  %v8088_v6 = vor.u32 %v10126_v2, %v8085_v59  ;;  %v10258_v39 = vld [vmem:[%s15566_s1 + $0x10c4] sm:$0xf]  ;;  %v8397_v59 = vld [vmem:[%s15566_s1 + $0xf28] sm:$0xf0] }
 0x2c6   :  { %5873 = vmatpush.bf16.msra.mxu2 %v8568_v7  ;;  %5842 = vmatmul.bf16.vlgmr.msrb.gmra.mxu3 %v11037_v40  ;;  %v8712_v40 = vor.u32 %v10282_v41, %v8709_v34  ;;  %v8280_v7 = vor.u32 %v10174_v0, %v8277_v63  ;;  %v8037_v41 = vld [vmem:[%s15566_s1 + $0xc58] sm:$0xf0]  ;;  %v10162_v34 = vld [vmem:[%s15566_s1 + $0xdc4] sm:$0xf]  ;;  %v10252_v0 = vld [vmem:[%s15566_s1 + $0x1094] sm:$0xf] }
 0x2c7   :  { %5886 = vmatpush.bf16.msra.mxu3 %v8760_v12  ;;  %v10168_v12 = vld [vmem:[%s15566_s1 + $0xdf4] sm:$0xf]  ;;  %v8040_v44 = vor.u32 %v10114_v38, %v8037_v41  ;;  %v8589_v9 = vld [vmem:[%s15566_s1 + $0x10a8] sm:$0xf0]  ;;  %v8949_v63 = vld [vmem:[%s15566_s1 + $0x1378] sm:$0xf0] }
 0x2c8   :  { %5848 = vmatpush.bf16.msra.mxu0 %v8160_v17  ;;  %v5622_v29 = vpop.f32.mrf.mxu2  ;;  %v8256_v32 = vor.u32 %v10168_v12, %v8253_v16  ;;  %v8592_v11 = vor.u32 %v10252_v0, %v8589_v9  ;;  %v10336_v16 = vld [vmem:[%s15566_s1 + $0x1334] sm:$0xf]  ;;  %v10330_v41 = vld [vmem:[%s15566_s1 + $0x1304] sm:$0xf]  ;;  %v8997_v58 = vld [vmem:[%s15566_s1 + $0x13d8] sm:$0xf0] }
 0x2c9   :  { %5861 = vmatpush.bf16.msra.mxu1 %v8352_v36  ;;  %v5623_v17 = vadd.f32 %v5622_v29, %v5610_v5  ;;  %v5635_v36 = vpop.f32.mrf.mxu3  ;;  %v9333_v5 = vld [vmem:[%s15566_s1 + $0x1678] sm:$0xf0]  ;;  %v9144_v29 = vor.u32 %v10390_v3, %v9141_v4  ;;  %v10366_v3 = vld [vmem:[%s15566_s1 + $0x1424] sm:$0xf] }
 0x2ca   :  { %5874 = vmatpush.bf16.msra.mxu2 %v8544_v18  ;;  %v10264_v18 = vld [vmem:[%s15566_s1 + $0x10f4] sm:$0xf]  ;;  %v9045_v4 = vld [vmem:[%s15566_s1 + $0x1438] sm:$0xf0]  ;;  %v10402_v57 = vld [vmem:[%s15566_s1 + $0x1544] sm:$0xf] }
 0x2cb   :  { %5887 = vmatpush.bf16.msra.mxu3 %v8736_v31  ;;  %v15139_v25 = vadd.f32 %v5635_v36, %v5623_v17  ;;  %v5598_v31 = vpop.f32.mrf.mxu0  ;;  %v9117_v36 = vld [vmem:[%s15566_s1 + $0x14c8] sm:$0xf0] }
 0x2cc   :  { %5849 = vmatpush.bf16.msra.mxu0 %v8136_v45  ;;  %v5611_v45 = vpop.f32.mrf.mxu1  ;;  %v9501_v31 = vld [vmem:[%s15566_s1 + $0x17c8] sm:$0xf0] }
 0x2cd   :  { %5862 = vmatpush.bf16.msra.mxu1 %v8328_v47  ;;  %v8640_v47 = vor.u32 %v10264_v18, %v8637_v43  ;;  %v10432_v18 = vld [vmem:[%s15566_s1 + $0x1634] sm:$0xf]  ;;  %v9309_v43 = vld [vmem:[%s15566_s1 + $0x1648] sm:$0xf0]  ;;  %v10378_v45 = vld [vmem:[%s15566_s1 + $0x1484] sm:$0xf] }
 0x2ce   :  { %5875 = vmatpush.bf16.msra.mxu2 %v8520_v46  ;;  %v8229_v46 = vld [vmem:[%s15566_s1 + $0xdd8] sm:$0xf0]  ;;  %v9312_v38 = vor.u32 %v10432_v18, %v9309_v43  ;;  %v10456_v43 = vld [vmem:[%s15566_s1 + $0x16f4] sm:$0xf] }
 0x2cf   :  { %5888 = vmatpush.bf16.msra.mxu3 %v8712_v40  ;;  %v8613_v40 = vld [vmem:[%s15566_s1 + $0x10d8] sm:$0xf0]  ;;  %v8232_v49 = vor.u32 %v10162_v34, %v8229_v46 }
 0x2d0   :  { %5850 = vmatpush.bf16.msra.mxu0 %v8112_v53  ;;  %v10156_v53 = vld [vmem:[%s15566_s1 + $0xd94] sm:$0xf]  ;;  %v8616_v2 = vor.u32 %v10258_v39, %v8613_v40  ;;  %v8901_v34 = vld [vmem:[%s15566_s1 + $0x1318] sm:$0xf0] }
 0x2d1   :  { %5863 = vmatpush.bf16.msra.mxu1 %v8304_v55  ;;  %v10204_v55 = vld [vmem:[%s15566_s1 + $0xf14] sm:$0xf]  ;;  %v5637_v61 = vpop.f32.mrf.mxu3  ;;  %v9093_v46 = vld [vmem:[%s15566_s1 + $0x1498] sm:$0xf0]  ;;  %v8904_v40 = vor.u32 %v10330_v41, %v8901_v34  ;;  %v10306_v34 = vld [vmem:[%s15566_s1 + $0x1244] sm:$0xf] }
 0x2d2   :  { %5876 = vmatpush.bf16.msra.mxu2 %v8496_v56  ;;  %v5624_v56 = vpop.f32.mrf.mxu2  ;;  %v9477_v39 = vld [vmem:[%s15566_s1 + $0x1798] sm:$0xf0] }
 0x2d3   :  { %5889 = vmatpush.bf16.msra.mxu3 %v8688_v62  ;;  %v10342_v62 = vld [vmem:[%s15566_s1 + $0x1364] sm:$0xf]  ;;  %v9453_v56 = vld [vmem:[%s15566_s1 + $0x1768] sm:$0xf0] }
 0x2d4   :  { %5851 = vmatpush.bf16.msra.mxu0 %v8088_v6  ;;  %v8208_v6 = vor.u32 %v10156_v53, %v8205_v54  ;;  %v8952_v12 = vor.u32 %v10342_v62, %v8949_v63  ;;  %v9261_v53 = vld [vmem:[%s15566_s1 + $0x15e8] sm:$0xf0]  ;;  %v10318_v62 = vld [vmem:[%s15566_s1 + $0x12a4] sm:$0xf]  ;;  %v8853_v63 = vld [vmem:[%s15566_s1 + $0x12b8] sm:$0xf0] }
 0x2d5   :  { %5864 = vmatpush.bf16.msra.mxu1 %v8280_v7  ;;  %v8400_v7 = vor.u32 %v10204_v55, %v8397_v59  ;;  %v10468_v55 = vld [vmem:[%s15566_s1 + $0x1754] sm:$0xf] }
 0x2d6   :  { %5877 = vmatpush.bf16.msra.mxu2 %v8472_v8  ;;  %v10486_v8 = vld [vmem:[%s15566_s1 + $0x17e4] sm:$0xf] }
 0x2d7   :  { %5890 = vmatpush.bf16.msra.mxu3 %v8664_v14  ;;  %v9336_v14 = vor.u32 %v10438_v13, %v9333_v5  ;;  %v9528_v17 = vor.u32 %v10486_v8, %v9525_v28  ;;  %v10414_v13 = vld [vmem:[%s15566_s1 + $0x15a4] sm:$0xf]  ;;  %v9237_v5 = vld [vmem:[%s15566_s1 + $0x15b8] sm:$0xf0]  ;;  %v8856_v8 = vor.u32 %v10318_v62, %v8853_v63  ;;  %v9048_v28 = vor.u32 %v10366_v3, %v9045_v4 }
 0x2d8   :  { %5852 = vmatpush.bf16.msra.mxu0 %v8064_v22  ;;  %v10480_v22 = vld [vmem:[%s15566_s1 + $0x17b4] sm:$0xf]  ;;  %v10497_v63 = vld [vmem:[%s15569_s3 + $0x38] sm:$0xff] }
 0x2d9   :  { %5865 = vmatpush.bf16.msra.mxu1 %v8256_v32  ;;  %v8928_v32 = vor.u32 %v10336_v16, %v8925_v35  ;;  %v10505_v3 = vld [vmem:[%s15569_s3 + $0x78] sm:$0xff] }
 0x2da   :  { %5878 = vmatpush.bf16.msra.mxu2 %v8448_v37  ;;  %v9120_v37 = vor.u32 %v10384_v33, %v9117_v36  ;;  %v9021_v33 = vld [vmem:[%s15566_s1 + $0x1408] sm:$0xf0]  ;;  %v10521_v4 = vld [vmem:[%s15569_s3 + $0xf8] sm:$0xff] }
 0x2db   :  { %5891 = vmatpush.bf16.msra.mxu3 %v8640_v47  ;;  %v9504_v47 = vor.u32 %v10480_v22, %v9501_v31  ;;  %v9213_v36 = vld [vmem:[%s15566_s1 + $0x1588] sm:$0xf0] }
 0x2dc   :  { %5853 = vmatpush.bf16.msra.mxu0 %v8040_v44  ;;  %v9096_v44 = vor.u32 %v10378_v45, %v9093_v46  ;;  %v9405_v22 = vld [vmem:[%s15566_s1 + $0x1708] sm:$0xf0]  ;;  %v8805_v45 = vld [vmem:[%s15566_s1 + $0x1258] sm:$0xf0] }
 0x2dd   :  { %5866 = vmatpush.bf16.msra.mxu1 %v8232_v49  ;;  %v9069_v49 = vld [vmem:[%s15566_s1 + $0x1468] sm:$0xf0]  ;;  %v9408_v46 = vor.u32 %v10456_v43, %v9405_v22 }
 0x2de   :  { %5879 = vmatpush.bf16.msra.mxu2 %v8424_v52  ;;  %v10420_v52 = vld [vmem:[%s15566_s1 + $0x15d4] sm:$0xf]  ;;  %v9072_v9 = vor.u32 %v10372_v48, %v9069_v49  ;;  %v8781_v48 = vld [vmem:[%s15566_s1 + $0x1228] sm:$0xf0] }
 0x2df   :  { %5892 = vmatpush.bf16.msra.mxu3 %v8616_v2  ;;  %v9264_v61 = vor.u32 %v10420_v52, %v9261_v53  ;;  %v8973_v52 = vld [vmem:[%s15566_s1 + $0x13a8] sm:$0xf0]  ;;  %v10396_v53 = vld [vmem:[%s15566_s1 + $0x1514] sm:$0xf] }
 0x2e0   :  { %5854 = vmatpush.bf16.msra.mxu0 %v8016_v1  ;;  %v5648_v54 = vpop.f32.mrf.mxu0 }
 0x2e1   :  { %5867 = vmatpush.bf16.msra.mxu1 %v8208_v6  ;;  %v5649_v2 = vadd.f32 %v5648_v54, %v15139_v25  ;;  %v5661_v0 = vpop.f32.mrf.mxu1  ;;  %v9456_v25 = vor.u32 %v10468_v55, %v9453_v56  ;;  %v10462_v6 = vld [vmem:[%s15566_s1 + $0x1724] sm:$0xf]  ;;  %v9165_v54 = vld [vmem:[%s15566_s1 + $0x1528] sm:$0xf0]  ;;  %v10444_v56 = vld [vmem:[%s15566_s1 + $0x1694] sm:$0xf] }
 0x2e2   :  { %5880 = vmatpush.bf16.msra.mxu2 %v8400_v7  ;;  %v9429_v7 = vld [vmem:[%s15566_s1 + $0x1738] sm:$0xf0] }
 0x2e3   :  { %5893 = vmatpush.bf16.msra.mxu3 %v8592_v11  ;;  %5855 = vmatmul.bf16.vlgmr.msra.gmra.mxu0 %v11222_v19  ;;  %v10474_v19 = vld [vmem:[%s15566_s1 + $0x1784] sm:$0xf]  ;;  %v15299_v1 = vadd.f32 %v5661_v0, %v5649_v2  ;;  %v9240_v11 = vor.u32 %v10414_v13, %v9237_v5  ;;  %v9432_v16 = vor.u32 %v10462_v6, %v9429_v7  ;;  %v9357_v2 = vld [vmem:[%s15566_s1 + $0x16a8] sm:$0xf0]  ;;  %v10496_v13 = vld [vmem:[%s15569_s3 + $0x30] sm:$0xff] }
 0x2e4   :  { %5899 = vmatpush.bf16.msrb.mxu0 %v8952_v12  ;;  %5868 = vmatmul.bf16.vlgmr.msra.gmra.mxu1 %v11235_v24  ;;  %v8877_v24 = vld [vmem:[%s15566_s1 + $0x12e8] sm:$0xf0]  ;;  %v10312_v12 = vld [vmem:[%s15566_s1 + $0x1274] sm:$0xf]  ;;  %v9360_v62 = vor.u32 %v10444_v56, %v9357_v2  ;;  %v10526_v56 = vld [vmem:[%s15569_s3 + $0x120] sm:$0xff] }
 0x2e5   :  { %5912 = vmatpush.bf16.msrb.mxu1 %v9144_v29  ;;  %5881 = vmatmul.bf16.vlgmr.msra.gmra.mxu2 %v11233_v23  ;;  %v10324_v23 = vld [vmem:[%s15566_s1 + $0x12d4] sm:$0xf]  ;;  %v8829_v29 = vld [vmem:[%s15566_s1 + $0x1288] sm:$0xf0] }
 0x2e6   :  { %5925 = vmatpush.bf16.msrb.mxu2 %v9336_v14  ;;  %5894 = vmatmul.bf16.vlgmr.msra.gmra.mxu3 %v11243_v27  ;;  %v9480_v27 = vor.u32 %v10474_v19, %v9477_v39  ;;  %v8880_v59 = vor.u32 %v10324_v23, %v8877_v24  ;;  %v10360_v14 = vld [vmem:[%s15566_s1 + $0x13f4] sm:$0xf]  ;;  %v9189_v19 = vld [vmem:[%s15566_s1 + $0x1558] sm:$0xf0]  ;;  %v10450_v39 = vld [vmem:[%s15566_s1 + $0x16c4] sm:$0xf] }
 0x2e7   :  { %5938 = vmatpush.bf16.msrb.mxu3 %v9528_v17  ;;  %v10408_v17 = vld [vmem:[%s15566_s1 + $0x1574] sm:$0xf]  ;;  %v9192_v23 = vor.u32 %v10402_v57, %v9189_v19 }
 0x2e8   :  { %5900 = vmatpush.bf16.msrb.mxu0 %v8928_v32  ;;  %v15325_v35 = vpop.f32.mrf.mxu2  ;;  %v5650_v31 = vpop.f32.mrf.mxu0  ;;  %v8832_v32 = vor.u32 %v10312_v12, %v8829_v29  ;;  %v9216_v41 = vor.u32 %v10408_v17, %v9213_v36  ;;  %v10300_v24 = vld [vmem:[%s15566_s1 + $0x1214] sm:$0xf]  ;;  %v10502_v12 = vld [vmem:[%s15569_s3 + $0x60] sm:$0xff]  ;;  %v10509_v17 = vld [vmem:[%s15569_s3 + $0x98] sm:$0xff] }
 0x2e9   :  { %5913 = vmatpush.bf16.msrb.mxu1 %v9120_v37  ;;  %v15336_v18 = vpop.f32.mrf.mxu3  ;;  %v5663_v37 = vpop.f32.mrf.mxu1  ;;  %v8784_v0 = vor.u32 %v10300_v24, %v8781_v48  ;;  %v10504_v5 = vld [vmem:[%s15569_s3 + $0x70] sm:$0xff]  ;;  %v10510_v29 = vld [vmem:[%s15569_s3 + $0xa0] sm:$0xff]  ;;  %v10517_v36 = vld [vmem:[%s15569_s3 + $0xd8] sm:$0xff]  ;;  %v5953_v24 = vmax.f32 %v13938_v10, 0.0 }
 0x2ea   :  { %5926 = vmatpush.bf16.msrb.mxu2 %v9312_v38  ;;  %v9024_v38 = vor.u32 %v10360_v14, %v9021_v33  ;;  %v10512_v6 = vld [vmem:[%s15569_s3 + $0xb0] sm:$0xff]  ;;  %v10518_v14 = vld [vmem:[%s15569_s3 + $0xe0] sm:$0xff]  ;;  %v10501_v33 = vld [vmem:[%s15569_s3 + $0x58] sm:$0xff] }
 0x2eb   :  { %5939 = vmatpush.bf16.msrb.mxu3 %v9504_v47  ;;  %v10354_v47 = vld [vmem:[%s15566_s1 + $0x13c4] sm:$0xf]  ;;  %v10520_v7 = vld [vmem:[%s15569_s3 + $0xf0] sm:$0xff] }
 0x2ec   :  { %5901 = vmatpush.bf16.msrb.mxu0 %v8904_v40  ;;  %v9381_v40 = vld [vmem:[%s15566_s1 + $0x16d8] sm:$0xf0]  ;;  %v10514_v48 = vld [vmem:[%s15569_s3 + $0xc0] sm:$0xff] }
 0x2ed   :  { %5914 = vmatpush.bf16.msrb.mxu1 %v9096_v44  ;;  %v8808_v44 = vor.u32 %v10306_v34, %v8805_v45  ;;  %v9384_v49 = vor.u32 %v10450_v39, %v9381_v40  ;;  %v10516_v34 = vld [vmem:[%s15569_s3 + $0xd0] sm:$0xff]  ;;  %v10491_v45 = vld [vmem:[%s15569_s3 + $0x8] sm:$0xff]  ;;  %v10490_v39 = vld [vmem:[%s15569_s3] sm:$0xff]  ;;  %v5951_v40 = vmax.f32 %v12342_v30, 0.0 }
 0x2ee   :  { %5927 = vmatpush.bf16.msrb.mxu2 %v9288_v51  ;;  %v9000_v51 = vor.u32 %v10354_v47, %v8997_v58  ;;  %v10499_v47 = vld [vmem:[%s15569_s3 + $0x48] sm:$0xff]  ;;  %v10529_v30 = vld [vmem:[%s15569_s3 + $0x138] sm:$0xff] }
 0x2ef   :  { %5940 = vmatpush.bf16.msrb.mxu3 %v9480_v27  ;;  %v10348_v27 = vld [vmem:[%s15566_s1 + $0x1394] sm:$0xf]  ;;  %v10515_v58 = vld [vmem:[%s15569_s3 + $0xc8] sm:$0xff] }
 0x2f0   :  { %5902 = vmatpush.bf16.msrb.mxu0 %v8880_v59  ;;  %v5676_v55 = vpop.f32.mrf.mxu2 }
 0x2f1   :  { %5915 = vmatpush.bf16.msrb.mxu1 %v9072_v9  ;;  %v5689_v59 = vpop.f32.mrf.mxu3  ;;  %v8976_v9 = vor.u32 %v10348_v27, %v8973_v52  ;;  %v5954_v27 = vmax.f32 %v14736_v60, 0.0  ;;  %v10527_v60 = vld [vmem:[%s15569_s3 + $0x128] sm:$0xff]  ;;  %v856_v55 = vperm.slane %v14874_v42, 5 }
 0x2f2   :  { %5928 = vmatpush.bf16.msrb.mxu2 %v9264_v61  ;;  %v9168_v61 = vor.u32 %v10396_v53, %v9165_v54  ;;  %v5959_v53 = vpack.c.bf16 %v5953_v24, %v5953_v24  ;;  %v5675_v54 = vadd.f32 %v15325_v35, %v15299_v1  ;;  %v10525_v1 = vld [vmem:[%s15569_s3 + $0x118] sm:$0xff] }
 0x2f3   :  { %5941 = vmatpush.bf16.msrb.mxu3 %v9456_v25  ;;  %v10513_v25 = vld [vmem:[%s15569_s3 + $0xb8] sm:$0xff]  ;;  %v5960_v10 = vpack.c.bf16 %v5954_v27, %v5954_v27 }
 0x2f4   :  { %5903 = vmatpush.bf16.msrb.mxu0 %v8856_v8  ;;  %v10495_v8 = vld [vmem:[%s15569_s3 + $0x28] sm:$0xff]  ;;  %v5688_v59 = vadd.f32 %v15336_v18, %v5675_v54  ;;  %v10524_v18 = vld [vmem:[%s15569_s3 + $0x110] sm:$0xff] }
 0x2f5   :  { %5916 = vmatpush.bf16.msrb.mxu1 %v9048_v28  ;;  %v10511_v28 = vld [vmem:[%s15569_s3 + $0xa8] sm:$0xff] }
 0x2f6   :  { %5929 = vmatpush.bf16.msrb.mxu2 %v9240_v11 }
 0x2f7   :  { %5942 = vmatpush.bf16.msrb.mxu3 %v9432_v16  ;;  %v10493_v16 = vld [vmem:[%s15569_s3 + $0x18] sm:$0xff] }
 0x2f8   :  { %5904 = vmatpush.bf16.msrb.mxu0 %v8832_v32  ;;  %v10492_v32 = vld [vmem:[%s15569_s3 + $0x10] sm:$0xff] }
 0x2f9   :  { %5917 = vmatpush.bf16.msrb.mxu1 %v9024_v38  ;;  %v10500_v38 = vld [vmem:[%s15569_s3 + $0x50] sm:$0xff] }
 0x2fa   :  { %5930 = vmatpush.bf16.msrb.mxu2 %v9216_v41  ;;  %v10508_v41 = vld [vmem:[%s15569_s3 + $0x90] sm:$0xff] }
 0x2fb   :  { %5943 = vmatpush.bf16.msrb.mxu3 %v9408_v46  ;;  %v10507_v46 = vld [vmem:[%s15569_s3 + $0x88] sm:$0xff] }
 0x2fc   :  { %5905 = vmatpush.bf16.msrb.mxu0 %v8808_v44  ;;  %v10498_v44 = vld [vmem:[%s15569_s3 + $0x40] sm:$0xff] }
 0x2fd   :  { %5918 = vmatpush.bf16.msrb.mxu1 %v9000_v51  ;;  %v10506_v51 = vld [vmem:[%s15569_s3 + $0x80] sm:$0xff] }
 0x2fe   :  { %5931 = vmatpush.bf16.msrb.mxu2 %v9192_v23  ;;  %v5952_v23 = vmax.f32 %v13140_v50, 0.0  ;;  %v10528_v50 = vld [vmem:[%s15569_s3 + $0x130] sm:$0xff] }
 0x2ff   :  { %5944 = vmatpush.bf16.msrb.mxu3 %v9384_v49  ;;  %v5957_v49 = vpack.c.bf16 %v5951_v40, %v5951_v40 }
 0x300   :  { %5906 = vmatpush.bf16.msrb.mxu0 %v8784_v0  ;;  %v5958_v52 = vpack.c.bf16 %v5952_v23, %v5952_v23 }
 0x301   :  { %5919 = vmatpush.bf16.msrb.mxu1 %v8976_v9  ;;  %v15437_v11 = vpop.f32.mrf.mxu1 }
 0x302   :  { %5932 = vmatpush.bf16.msrb.mxu2 %v9168_v61 }
 0x303   :  { %5945 = vmatpush.bf16.msrb.mxu3 %v9360_v62  ;;  %5907 = vmatmul.bf16.vlgmr.msrb.gmra.mxu0 %v11426_v15  ;;  %v10503_v15 = vld [vmem:[%s15569_s3 + $0x68] sm:$0xff] }
 0x304   :  { %6351 = vmatpush.bf16.msra.mxu0 %v10497_v63  ;;  %5920 = vmatmul.bf16.vlgmr.msrb.gmra.mxu1 %v11439_v21  ;;  %v15432_v21 = vpop.f32.mrf.mxu0 }
 0x305   :  { %6364 = vmatpush.bf16.msra.mxu1 %v10505_v3  ;;  %5933 = vmatmul.bf16.vlgmr.msrb.gmra.mxu2 %v11437_v20  ;;  %v10519_v20 = vld [vmem:[%s15569_s3 + $0xe8] sm:$0xff]  ;;  %v5701_v61 = vadd.f32 %v15432_v21, %v5688_v59 }
 0x306   :  { %6377 = vmatpush.bf16.msra.mxu2 %v10513_v25  ;;  %5946 = vmatmul.bf16.vlgmr.msrb.gmra.mxu3 %v11447_v26  ;;  %v10494_v26 = vld [vmem:[%s15569_s3 + $0x20] sm:$0xff] }
 0x307   :  { %6390 = vmatpush.bf16.msra.mxu3 %v10521_v4  ;;  %v5714_v3 = vadd.f32 %v15437_v11, %v5701_v61 }
 0x308   :  { %6352 = vmatpush.bf16.msra.mxu0 %v10496_v13  ;;  %v15460_v43 = vpop.f32.mrf.mxu2 }
 0x309   :  { %6365 = vmatpush.bf16.msra.mxu1 %v10504_v5  ;;  %v15462_v22 = vpop.f32.mrf.mxu3  ;;  %v5715_v37 = vpop.f32.mrf.mxu1  ;;  %v5727_v13 = vadd.f32 %v15460_v43, %v5714_v3  ;;  %v10535_v43 = vld [vmem:[%s15569_s3 + $0x168] sm:$0xff] }
 0x30a   :  { %6378 = vmatpush.bf16.msra.mxu2 %v10512_v6  ;;  %v10523_v6 = vld [vmem:[%s15569_s3 + $0x108] sm:$0xff] }
 0x30b   :  { %6391 = vmatpush.bf16.msra.mxu3 %v10520_v7  ;;  %v5740_v7 = vadd.f32 %v15462_v22, %v5727_v13 }
 0x30c   :  { %6353 = vmatpush.bf16.msra.mxu0 %v10495_v8  ;;  %v5702_v31 = vpop.f32.mrf.mxu0 }
 0x30d   :  { %6366 = vmatpush.bf16.msra.mxu1 %v10503_v15  ;;  %v10534_v31 = vld [vmem:[%s15569_s3 + $0x160] sm:$0xff] }
 0x30e   :  { %6379 = vmatpush.bf16.msra.mxu2 %v10511_v28  ;;  %v10522_v28 = vld [vmem:[%s15569_s3 + $0x100] sm:$0xff] }
 0x30f   :  { %6392 = vmatpush.bf16.msra.mxu3 %v10519_v20  ;;  %v5955_v20 = vmax.f32 %v5740_v7, 0.0 }
 0x310   :  { %6354 = vmatpush.bf16.msra.mxu0 %v10494_v26  ;;  %v5728_v57 = vpop.f32.mrf.mxu2 }
 0x311   :  { %6367 = vmatpush.bf16.msra.mxu1 %v10502_v12  ;;  %v5741_v19 = vpop.f32.mrf.mxu3  ;;  %v5961_v21 = vpack.c.bf16 %v5955_v20, %v5955_v20 }
 0x312   :  { %6380 = vmatpush.bf16.msra.mxu2 %v10510_v29 }
 0x313   :  { %6393 = vmatpush.bf16.msra.mxu3 %v10518_v14  ;;  %v10537_v14 = vld [vmem:[%s15569_s3 + $0x178] sm:$0xff] }
 0x314   :  { %6355 = vmatpush.bf16.msra.mxu0 %v10493_v16 }
 0x315   :  { %6368 = vmatpush.bf16.msra.mxu1 %v10501_v33 }
 0x316   :  { %6381 = vmatpush.bf16.msra.mxu2 %v10509_v17  ;;  %v10536_v17 = vld [vmem:[%s15569_s3 + $0x170] sm:$0xff] }
 0x317   :  { %6394 = vmatpush.bf16.msra.mxu3 %v10517_v36 }
 0x318   :  { %6356 = vmatpush.bf16.msra.mxu0 %v10492_v32  ;;  %v10533_v32 = vld [vmem:[%s15569_s3 + $0x158] sm:$0xff] }
 0x319   :  { %6369 = vmatpush.bf16.msra.mxu1 %v10500_v38 }
 0x31a   :  { %6382 = vmatpush.bf16.msra.mxu2 %v10508_v41  ;;  %v10532_v41 = vld [vmem:[%s15569_s3 + $0x150] sm:$0xff] }
 0x31b   :  { %6395 = vmatpush.bf16.msra.mxu3 %v10516_v34 }
 0x31c   :  { %6357 = vmatpush.bf16.msra.mxu0 %v10491_v45  ;;  %v10531_v45 = vld [vmem:[%s15569_s3 + $0x148] sm:$0xff] }
 0x31d   :  { %6370 = vmatpush.bf16.msra.mxu1 %v10499_v47 }
 0x31e   :  { %6383 = vmatpush.bf16.msra.mxu2 %v10507_v46 }
 0x31f   :  { %6396 = vmatpush.bf16.msra.mxu3 %v10515_v58 }
 0x320   :  { %6358 = vmatpush.bf16.msra.mxu0 %v10490_v39  ;;  %v5752_v2 = vpop.f32.mrf.mxu0  ;;  %v10530_v39 = vld [vmem:[%s15569_s3 + $0x140] sm:$0xff] }
 0x321   :  { %6371 = vmatpush.bf16.msra.mxu1 %v10498_v44  ;;  %v5753_v0 = vadd.f32 %v5752_v2, %v856_v55  ;;  %v5765_v9 = vpop.f32.mrf.mxu1 }
 0x322   :  { %6384 = vmatpush.bf16.msra.mxu2 %v10506_v51 }
 0x323   :  { %6397 = vmatpush.bf16.msra.mxu3 %v10514_v48  ;;  %6359 = vmatmul.bf16.vlgmr.msra.gmra.mxu0 %v5957_v49  ;;  %v5766_v62 = vadd.f32 %v5765_v9, %v5753_v0 }
 0x324   :  { %6403 = vmatpush.bf16.msrb.mxu0 %v10529_v30  ;;  %6372 = vmatmul.bf16.vlgmr.msra.gmra.mxu1 %v5958_v52 }
 0x325   :  { %6385 = vmatmul.bf16.vlgmr.msra.gmra.mxu2 %v5959_v53  ;;  %6416 = vmatpush.bf16.msrb.mxu1 %v10537_v14 }
 0x326   :  { %6398 = vmatmul.bf16.vlgmr.msra.gmra.mxu3 %v5960_v10 }
 0x328   :  { %6404 = vmatpush.bf16.msrb.mxu0 %v10528_v50  ;;  %v5778_v35 = vpop.f32.mrf.mxu2  ;;  %v5754_v4 = vpop.f32.mrf.mxu0 }
 0x329   :  { %v5779_v42 = vadd.f32 %v5778_v35, %v5766_v62  ;;  %v5791_v63 = vpop.f32.mrf.mxu3  ;;  %v5767_v5 = vpop.f32.mrf.mxu1  ;;  %6417 = vmatpush.bf16.msrb.mxu1 %v10536_v17  ;;  %v10538_v62 = vld [vmem:[%s15570_s4] ss:$0 sm:$0xff] }
 0x32b   :  { %v5792_v25 = vadd.f32 %v5791_v63, %v5779_v42 }
 0x32c   :  { %6405 = vmatpush.bf16.msrb.mxu0 %v10527_v60 }
 0x32d   :  { %6418 = vmatpush.bf16.msrb.mxu1 %v10535_v43 }
 0x330   :  { %6406 = vmatpush.bf16.msrb.mxu0 %v10526_v56  ;;  %v5780_v8 = vpop.f32.mrf.mxu2 }
 0x331   :  { %v5793_v15 = vpop.f32.mrf.mxu3  ;;  %6419 = vmatpush.bf16.msrb.mxu1 %v10534_v31 }
 0x334   :  { %6407 = vmatpush.bf16.msrb.mxu0 %v10525_v1 }
 0x335   :  { %6420 = vmatpush.bf16.msrb.mxu1 %v10533_v32 }
 0x338   :  { %6408 = vmatpush.bf16.msrb.mxu0 %v10524_v18 }
 0x339   :  { %6421 = vmatpush.bf16.msrb.mxu1 %v10532_v41 }
 0x33c   :  { %6409 = vmatpush.bf16.msrb.mxu0 %v10523_v6 }
 0x33d   :  { %6422 = vmatpush.bf16.msrb.mxu1 %v10531_v45 }
 0x340   :  { %6410 = vmatpush.bf16.msrb.mxu0 %v10522_v28  ;;  %v5804_v26 = vpop.f32.mrf.mxu0 }
 0x341   :  { %v5817_v11 = vpop.f32.mrf.mxu1  ;;  %v5805_v34 = vadd.f32 %v5804_v26, %v5792_v25  ;;  %6423 = vmatpush.bf16.msrb.mxu1 %v10530_v39 }
 0x343   :  { %6411 = vmatmul.bf16.vlgmr.msrb.gmra.mxu0 %v5961_v21  ;;  %v5818_v19 = vadd.f32 %v5817_v11, %v5805_v34 }
 0x348   :  { %v5830_v12 = vpop.f32.mrf.mxu2  ;;  %v5806_v16 = vpop.f32.mrf.mxu0 }
 0x349   :  { %v5843_v29 = vpop.f32.mrf.mxu3  ;;  %v5819_v33 = vpop.f32.mrf.mxu1  ;;  %v5831_v40 = vadd.f32 %v5830_v12, %v5818_v19  ;;  %v6429_v16 = vlaneseq }
 0x34b   :  { %v5844_v23 = vadd.f32 %v5843_v29, %v5831_v40 }
 0x350   :  { %v5832_v36 = vpop.f32.mrf.mxu2 }
 0x351   :  { %v5845_v22 = vpop.f32.mrf.mxu3  ;;  %v6430_v36 = vand.u32 127, %v6429_v16 }
 0x353   :  { %vm6431_vm2 = vcmp.eq.s32.totalorder %v6430_v36, 5 }
 0x360   :  { %v5856_v37 = vpop.f32.mrf.mxu0 }
 0x361   :  { %v5869_v38 = vpop.f32.mrf.mxu1  ;;  %v5857_v24 = vadd.f32 %v5856_v37, %v5844_v23 }
 0x363   :  { %v5870_v48 = vadd.f32 %v5869_v38, %v5857_v24 }
 0x368   :  { %v5882_v47 = vpop.f32.mrf.mxu2  ;;  %v5858_v58 = vpop.f32.mrf.mxu0 }
 0x369   :  { %v5895_v46 = vpop.f32.mrf.mxu3  ;;  %v5871_v57 = vpop.f32.mrf.mxu1  ;;  %v5883_v30 = vadd.f32 %v5882_v47, %v5870_v48 }
 0x36b   :  { %v5896_v27 = vadd.f32 %v5895_v46, %v5883_v30 }
 0x370   :  { %v5884_v44 = vpop.f32.mrf.mxu2 }
 0x371   :  { %v5897_v51 = vpop.f32.mrf.mxu3 }
 0x380   :  { %v5908_v49 = vpop.f32.mrf.mxu0 }
 0x381   :  { %v5921_v52 = vpop.f32.mrf.mxu1  ;;  %v5909_v53 = vadd.f32 %v5908_v49, %v5896_v27 }
 0x383   :  { %v5922_v50 = vadd.f32 %v5921_v52, %v5909_v53 }
 0x388   :  { %v5934_v10 = vpop.f32.mrf.mxu2  ;;  %v5910_v55 = vpop.f32.mrf.mxu0 }
 0x389   :  { %v5935_v60 = vadd.f32 %v5934_v10, %v5922_v50  ;;  %v5947_v54 = vpop.f32.mrf.mxu3  ;;  %v5923_v56 = vpop.f32.mrf.mxu1 }
 0x38b   :  { %v5948_v2 = vadd.f32 %v5947_v54, %v5935_v60 }
 0x38d   :  { %v5956_v59 = vmax.f32 %v5948_v2, 0.0 }
 0x38f   :  { %v5962_v0 = vpack.c.bf16 %v5956_v59, %v5956_v59 }
 0x390   :  { %v5936_v9 = vpop.f32.mrf.mxu2 }
 0x391   :  { %v5949_v61 = vpop.f32.mrf.mxu3  ;;  %6424 = vmatmul.bf16.vlgmr.msrb.gmra.mxu1 %v5962_v0 }
 0x3a0   :  { %v6360_v1 = vpop.f32.mrf.mxu0 }
 0x3a1   :  { %v6361_v35 = vadd.f32 %v10538_v62, %v6360_v1  ;;  %v6373_v42 = vpop.f32.mrf.mxu1 }
 0x3a3   :  { %v6374_v63 = vadd.f32 %v6373_v42, %v6361_v35 }
 0x3a8   :  { %v6386_v3 = vpop.f32.mrf.mxu2  ;;  %v6362_v4 = vpop.f32.mrf.mxu0 }
 0x3a9   :  { %v6387_v18 = vadd.f32 %v6386_v3, %v6374_v63  ;;  %v6399_v25 = vpop.f32.mrf.mxu3  ;;  %v6375_v13 = vpop.f32.mrf.mxu1 }
 0x3ab   :  { %v6400_v5 = vadd.f32 %v6399_v25, %v6387_v18 }
 0x3b0   :  { %v6388_v6 = vpop.f32.mrf.mxu2 }
 0x3b1   :  { %v6401_v7 = vpop.f32.mrf.mxu3 }
 0x3c0   :  { %v6412_v8 = vpop.f32.mrf.mxu0 }
 0x3c1   :  { %v6413_v15 = vadd.f32 %v6412_v8, %v6400_v5 }
 0x3c8   :  { %v6414_v28 = vpop.f32.mrf.mxu0 }
 0x40e   :  { %v6425_v20 = vpop.f32.mrf.mxu1 }
 0x40f   :  { %v6426_v21 = vadd.f32 %v6425_v20, %v6413_v15 }
 0x411   :  { %v9721_v26 = vmul.f32 -1.442695, %v6426_v21 }
 0x413   :  { %10539 = vpow2.f32 %v9721_v26 }
 0x416   :  { %v6427_v11 = vpop.f32.mrf.mxu1 }
 0x419   :  { %v10540_v12 = vpop.eup %10539 }
 0x41a   :  { %v6435_v29 = vadd.f32 1.0, %v10540_v12 }
 0x41c   :  { %10541 = vrcp.f32 %v6435_v29  ;;  %v6447_v43 = vand.u32 2147483648, %v6435_v29  ;;  %v6445_v31 = vand.u32 2147483647, %v6435_v29  ;;  %vm6441_vm1 = vweird.f32 %v6435_v29 }
 0x41e   :  { %v6448_v37 = vor.u32 1.1754944e-38, %v6447_v43  ;;  %vm6446_vm4 = vcmp.eq.f32.partialorder %v6445_v31, 8.507059e+37 }
 0x422   :  { %v10542_v14 = vpop.eup %10541 }
 0x423   :  { %v6437_v33 = vmul.f32 %v10542_v14, %v6435_v29  ;;  %vm6442_vm0 = vweird.f32 %v10542_v14 }
 0x424   :  { %vm6443_vm3 = vmor %vm6441_vm1, %vm6442_vm0 }
 0x425   :  { %v6438_v17 = vsub.f32 1.0, %v6437_v33 }
 0x427   :  { %v6439_v22 = vmul.f32 %v10542_v14, %v6438_v17 }
 0x429   :  { %v6440_v32 = vadd.f32 %v10542_v14, %v6439_v22 }
 0x42b   :  { %v6444_v38 = vsel %vm6443_vm3, %v10542_v14, %v6440_v32 }
 0x42c   :  { %v6449_v41 = vsel %vm6446_vm4, %v6448_v37, %v6444_v38 }
 0x42d   :  { %v6451_v34 = vsel %vm6431_vm2, %v6449_v41, %v6426_v21 }
 0x42e   :  { %6452 = vst [vmem:[%s15571_s5] sm:$0x3] %v6451_v34 }

</bundles_post_ra>
